<compile_context>
chip_gen: v6e
topology: v6e:2x2x1
jax: 0.10.0
libtpu: 0.0.40
codegen_flags: <defaults>
</compile_context>

<pallas_src>
import jax
import jax.numpy as jnp
from jax.experimental import pallas as pl
from jax.experimental.pallas import tpu as pltpu

HIDDEN = 1024          # fixed by the module (Linear(1024, ...), LayerNorm([4, 1024]))
SEQ = 16               # small text sequence length
NUM_CHOICES = 4        # LayerNorm([4, 1024]) forces batch * num_choices == 4
BATCH = 1
N = BATCH * NUM_CHOICES

TILE = 256             # hidden-dim tile streamed per grid step (multiple of 128)
NT = HIDDEN // TILE    # grid length


def _mcan_kernel(text_ref, img_ref, cls_ref,
                 wkv_ref, bkv_ref, wq_ref, bq_ref, wti_ref,
                 bt_ref, bi_ref, ln_w_ref, ln_b_ref, wc_ref, bc_ref,
                 logits_ref,
                 acc_s, acc_x, acc_vw):
    j = pl.program_id(0)
    n, l, h = text_ref.shape
    t = TILE

    @pl.when(j == 0)
    def _init():
        acc_s[...] = jnp.zeros_like(acc_s)
        acc_x[...] = jnp.zeros_like(acc_x)
        acc_vw[...] = jnp.zeros_like(acc_vw)

    text2d = text_ref[...].reshape(n * l, h).astype(jnp.bfloat16)   # (64, 1024)
    img = img_ref[...].astype(jnp.bfloat16)                         # (4, 1024)
    cls_t = cls_ref[...].astype(jnp.bfloat16)                       # (4, T) column tile

    # Fused K/V projection for this hidden tile: one (64,1024)@(1024,2T) bf16 matmul,
    # f32 accumulation, bias + tanh applied column-wise (exact per-tile decomposition).
    kv = jnp.tanh(jnp.dot(text2d, wkv_ref[0],
                          preferred_element_type=jnp.float32) + bkv_ref[0])      # (64, 2T)
    k_t = kv[:, :t].reshape(n, l, t)                                 # (4, 16, T)
    v_t = kv[:, t:]                                                  # (64, T)

    # Q projection for this hidden tile.
    q_t = jnp.tanh(jnp.dot(img, wq_ref[...],
                           preferred_element_type=jnp.float32) + bq_ref[...])    # (4, T)

    # Partial attention scores: contract over this hidden tile (batched MXU einsum).
    acc_s[...] += jnp.einsum('nqt,nlt->nql', q_t[:, None, :], k_t,
                             preferred_element_type=jnp.float32)[:, 0, :]        # (4, 16)

    # Final linears, streamed as row tiles of the packed [W_text | W_img] weight:
    #   x  += cls[:, tile]     @ W_text[tile, :]
    #   vw += V[:, :, tile]    @ W_img [tile, :]        (later: fi = alpha @ vw + b_img)
    wti = wti_ref[...]                                               # (T, 2H) bf16
    acc_x[...] += jnp.dot(cls_t, wti[:, :h], preferred_element_type=jnp.float32)
    acc_vw[...] += jnp.dot(v_t.astype(jnp.bfloat16), wti[:, h:],
                           preferred_element_type=jnp.float32).reshape(n, l, h)

    @pl.when(j == pl.num_programs(0) - 1)
    def _finalize():
        # softmax(Q_img @ K_text^T / sqrt(1024)) over the text length
        s = acc_s[...] * (1.0 / 32.0)                                # 1/sqrt(1024)
        s = s - jnp.max(s, axis=-1, keepdims=True)
        p = jnp.exp(s)
        alpha = p / jnp.sum(p, axis=-1, keepdims=True)               # (4, 16)

        # final_img_linear(GA_out) = alpha @ (V @ W_img) + b_img
        fi = jnp.einsum('nql,nlh->nqh', alpha[:, None, :], acc_vw[...],
                        preferred_element_type=jnp.float32)[:, 0, :]             # (4, 1024)
        x = acc_x[...] + bt_ref[...] + fi + bi_ref[...]              # (4, 1024)

        # LayerNorm([4, 1024]): statistics over BOTH dims of the (4, H) slab, affine (4, H)
        mean = jnp.mean(x, keepdims=True)
        var = jnp.mean((x - mean) * (x - mean), keepdims=True)
        y = (x - mean) * jax.lax.rsqrt(var + 1e-5) * ln_w_ref[...] + ln_b_ref[...]

        # TODO(synk): Dropout(0.1) is identity in eval mode; training-mode RNG dropout omitted.
        # classifier Linear(1024, 1) -> (N, 1), then .view(-1, num_choices) -> (1, N)
        logits_ref[...] = (jnp.sum(y * wc_ref[...], axis=-1).reshape(1, n)
                           + bc_ref[...])


def _pack_col_tiles(mats):
    """[M0, M1, ...] (each (K, H)) -> (NT, K, len*TILE); slot j = [M0[:, jT:(j+1)T] | M1[...] | ...]."""
    parts = [m.reshape(m.shape[0], NT, TILE).transpose(1, 0, 2) for m in mats]
    return jnp.concatenate(parts, axis=-1)


def vit_mcan_forward(text_feats, img_feats, params):
    """Returns reshaped_logits of shape (batch, num_choices) = (1, 4)."""
    bf = jnp.bfloat16
    # One-time weight prep: bf16 storage + tile packing for streaming through the grid.
    w_kv = _pack_col_tiles([params["wk"].astype(bf), params["wv"].astype(bf)])   # (NT, H, 2T)
    b_kv = _pack_col_tiles([params["bk"], params["bv"]])                         # (NT, 1, 2T)
    w_q = params["wq"].astype(bf)                                                # (H, H)
    w_ti = jnp.concatenate([params["wt"].astype(bf), params["wi"].astype(bf)],
                           axis=1)                                               # (H, 2H)
    cls_text = text_feats[:, 0, :]                                               # (N, H)

    args = (text_feats, img_feats, cls_text,
            w_kv, b_kv, w_q, params["bq"], w_ti,
            params["bt"], params["bi"], params["ln_w"], params["ln_b"],
            params["wc"], params["bc"])

    resident2 = lambda j: (0, 0)
    resident3 = lambda j: (0, 0, 0)
    in_specs = [
        pl.BlockSpec((N, SEQ, HIDDEN), resident3),                  # text (VMEM-resident)
        pl.BlockSpec((N, HIDDEN), resident2),                       # image CLS features
        pl.BlockSpec((N, TILE), lambda j: (0, j)),                  # text CLS column tile
        pl.BlockSpec((1, HIDDEN, 2 * TILE), lambda j: (j, 0, 0)),   # [Wk|Wv] column tile
        pl.BlockSpec((1, 1, 2 * TILE), lambda j: (j, 0, 0)),        # [bk|bv] column tile
        pl.BlockSpec((HIDDEN, TILE), lambda j: (0, j)),             # Wq column tile
        pl.BlockSpec((1, TILE), lambda j: (0, j)),                  # bq column tile
        pl.BlockSpec((TILE, 2 * HIDDEN), lambda j: (j, 0)),         # [Wt|Wi] row tile
        pl.BlockSpec((1, HIDDEN), resident2),                       # bt
        pl.BlockSpec((1, HIDDEN), resident2),                       # bi
        pl.BlockSpec((N, HIDDEN), resident2),                       # ln_w
        pl.BlockSpec((N, HIDDEN), resident2),                       # ln_b
        pl.BlockSpec((1, HIDDEN), resident2),                       # wc
        pl.BlockSpec((1, 1), resident2),                            # bc
    ]
    return pl.pallas_call(
        _mcan_kernel,
        out_shape=jax.ShapeDtypeStruct((BATCH, NUM_CHOICES), jnp.float32),
        grid=(NT,),
        in_specs=in_specs,
        out_specs=pl.BlockSpec((BATCH, NUM_CHOICES), resident2),
        scratch_shapes=[
            pltpu.VMEM((N, SEQ), jnp.float32),          # attention-score accumulator
            pltpu.VMEM((N, HIDDEN), jnp.float32),       # text-linear partial sums
            pltpu.VMEM((N, SEQ, HIDDEN), jnp.float32),  # V @ W_img accumulator
        ],
        compiler_params=pltpu.CompilerParams(
            # The grid axis carries accumulators, so it must stay "arbitrary"
            # (cannot be megacore-sharded on v7x without a cross-core reduction).
            dimension_semantics=("arbitrary",),
            vmem_limit_bytes=32 * 1024 * 1024,
        ),
    )(*args)


def cross_entropy_loss(logits, labels):
    # plain-JAX glue, matches torch.nn.CrossEntropyLoss on (1, num_choices) logits
    logz = jax.nn.logsumexp(logits, axis=-1)
    picked = jnp.take_along_axis(logits, labels[:, None], axis=-1)[:, 0]
    return jnp.mean(logz - picked)


def init_params(key):
    ks = jax.random.split(key, 8)

    def lin(k, din, dout, scale=0.02):
        return (jax.random.normal(k, (din, dout), jnp.float32) * scale,
                jnp.zeros((1, dout), jnp.float32))

    wq, bq = lin(ks[0], HIDDEN, HIDDEN)
    wk, bk = lin(ks[1], HIDDEN, HIDDEN)
    wv, bv = lin(ks[2], HIDDEN, HIDDEN)
    wt, bt = lin(ks[3], HIDDEN, HIDDEN)
    wi, bi = lin(ks[4], HIDDEN, HIDDEN)
    wc = jax.random.normal(ks[5], (1, HIDDEN), jnp.float32) * 0.02   # classifier weight row
    bc = jnp.zeros((1, 1), jnp.float32)
    ln_w = jnp.ones((N, HIDDEN), jnp.float32)
    ln_b = jnp.zeros((N, HIDDEN), jnp.float32)
    return dict(wq=wq, bq=bq, wk=wk, bk=bk, wv=wv, bv=bv,
                wt=wt, bt=bt, wi=wi, bi=bi,
                ln_w=ln_w, ln_b=ln_b, wc=wc, bc=bc)


def _reference(text, img, p):
    """Pure-JAX reference (f32, HIGHEST precision), mirroring the kernel's bf16
    weight/activation rounding points so the comparison isolates kernel correctness."""
    hp = jax.lax.Precision.HIGHEST
    f32, bf = jnp.float32, jnp.bfloat16
    q8 = lambda a: a.astype(bf).astype(f32)

    wq, wk, wv, wt, wi = (q8(p[k]) for k in ("wq", "wk", "wv", "wt", "wi"))
    t2d = q8(text.reshape(-1, HIDDEN))
    q = jnp.tanh(jnp.dot(q8(img), wq, precision=hp) + p["bq"])
    k = jnp.tanh(jnp.dot(t2d, wk, precision=hp) + p["bk"]).reshape(N, SEQ, HIDDEN)
    v = jnp.tanh(jnp.dot(t2d, wv, precision=hp) + p["bv"]).reshape(N, SEQ, HIDDEN)
    scores = jnp.einsum("nh,nlh->nl", q, k, precision=hp) / jnp.sqrt(1024.0)
    alpha = jax.nn.softmax(scores, axis=-1)
    ga = jnp.einsum("nl,nlh->nh", alpha, q8(v), precision=hp)
    x = (jnp.dot(q8(text[:, 0, :]), wt, precision=hp) + p["bt"]
         + jnp.dot(ga, wi, precision=hp) + p["bi"])
    mean = jnp.mean(x)
    var = jnp.mean((x - mean) ** 2)
    y = (x - mean) / jnp.sqrt(var + 1e-5) * p["ln_w"] + p["ln_b"]
    return jnp.sum(y * p["wc"], axis=-1).reshape(1, N) + p["bc"]


if __name__ == "__main__":
    key = jax.random.PRNGKey(0)
    k_text, k_img, k_param = jax.random.split(key, 3)

    # synthetic backbone outputs (stand-ins for roberta last_hidden_state / ViT CLS)
    text_feats = jax.random.normal(k_text, (N, SEQ, HIDDEN), jnp.float32)
    img_feats = jax.random.normal(k_img, (N, HIDDEN), jnp.float32)
    params = init_params(k_param)

    logits = jax.block_until_ready(vit_mcan_forward(text_feats, img_feats, params))
    ref = _reference(text_feats, img_feats, params)

    assert logits.shape == (BATCH, NUM_CHOICES)
    assert jnp.allclose(logits, ref, atol=1e-2, rtol=1e-2), (logits, ref)

    # optional labels path (plain-JAX glue, mirrors torch CrossEntropyLoss)
    labels = jnp.array([0], dtype=jnp.int32)
    loss = jax.block_until_ready(cross_entropy_loss(logits, labels))
    del loss

    print("KERNEL_OK")
</pallas_src>

<mosaic_0001>
module attributes {stable_mosaic.version = 11 : i64} {
  func.func @_mcan_kernel(%arg0: i32, %arg1: memref<4x16x1024xf32, #tpu.memory_space<vmem>>, %arg2: memref<4x1024xf32, #tpu.memory_space<vmem>>, %arg3: memref<4x256xf32, #tpu.memory_space<vmem>>, %arg4: memref<1x1024x512xbf16, #tpu.memory_space<vmem>>, %arg5: memref<1x1x512xf32, #tpu.memory_space<vmem>>, %arg6: memref<1024x256xbf16, #tpu.memory_space<vmem>>, %arg7: memref<1x256xf32, #tpu.memory_space<vmem>>, %arg8: memref<256x2048xbf16, #tpu.memory_space<vmem>>, %arg9: memref<1x1024xf32, #tpu.memory_space<vmem>>, %arg10: memref<1x1024xf32, #tpu.memory_space<vmem>>, %arg11: memref<4x1024xf32, #tpu.memory_space<vmem>>, %arg12: memref<4x1024xf32, #tpu.memory_space<vmem>>, %arg13: memref<1x1024xf32, #tpu.memory_space<vmem>>, %arg14: memref<1x1xf32, #tpu.memory_space<vmem>>, %arg15: memref<1x4xf32, #tpu.memory_space<vmem>>, %arg16: memref<4x16xf32, #tpu.memory_space<vmem>>, %arg17: memref<4x1024xf32, #tpu.memory_space<vmem>>, %arg18: memref<4x16x1024xf32, #tpu.memory_space<vmem>>) attributes {dimension_semantics = [#tpu.dimension_semantics<arbitrary>], iteration_bounds = array<i64: 4>, scalar_prefetch = 0 : i64, scratch_operands = 3 : i64, tpu.core_type = #tpu.core_type<tc>, window_params = [{pipeline_mode = #tpu.pipeline_mode<synchronous>, transform_indices = @transform_0, window_bounds = array<i64: 4, 16, 1024>}, {pipeline_mode = #tpu.pipeline_mode<synchronous>, transform_indices = @transform_1, window_bounds = array<i64: 4, 1024>}, {transform_indices = @transform_2, window_bounds = array<i64: 4, 256>}, {transform_indices = @transform_3, window_bounds = array<i64: 1, 1024, 512>}, {transform_indices = @transform_4, window_bounds = array<i64: 1, 1, 512>}, {transform_indices = @transform_5, window_bounds = array<i64: 1024, 256>}, {transform_indices = @transform_6, window_bounds = array<i64: 1, 256>}, {transform_indices = @transform_7, window_bounds = array<i64: 256, 2048>}, {pipeline_mode = #tpu.pipeline_mode<synchronous>, transform_indices = @transform_8, window_bounds = array<i64: 1, 1024>}, {pipeline_mode = #tpu.pipeline_mode<synchronous>, transform_indices = @transform_9, window_bounds = array<i64: 1, 1024>}, {pipeline_mode = #tpu.pipeline_mode<synchronous>, transform_indices = @transform_10, window_bounds = array<i64: 4, 1024>}, {pipeline_mode = #tpu.pipeline_mode<synchronous>, transform_indices = @transform_11, window_bounds = array<i64: 4, 1024>}, {pipeline_mode = #tpu.pipeline_mode<synchronous>, transform_indices = @transform_12, window_bounds = array<i64: 1, 1024>}, {pipeline_mode = #tpu.pipeline_mode<synchronous>, transform_indices = @transform_13, window_bounds = array<i64: 1, 1>}, {pipeline_mode = #tpu.pipeline_mode<synchronous>, transform_indices = @transform_14, window_bounds = array<i64: 1, 4>}]} {
    %c0_i32 = arith.constant 0 : i32
    %0 = arith.cmpi eq, %arg0, %c0_i32 : i32
    %1 = arith.extui %0 : i1 to i32
    %c0_i32_0 = arith.constant 0 : i32
    %2 = arith.cmpi ne, %1, %c0_i32_0 : i32
    scf.if %2 {
      %cst_38 = arith.constant 0.000000e+00 : f32
      %49 = vector.broadcast %cst_38 : f32 to vector<4x16xf32>
      %c0_39 = arith.constant 0 : index
      %c0_40 = arith.constant 0 : index
      %50 = vector.load %arg16[%c0_39, %c0_40] : memref<4x16xf32, #tpu.memory_space<vmem>>, vector<4x16xf32>
      tpu.vector_store %arg16[%c0_39, %c0_40], %49 {strides = array<i32>} : memref<4x16xf32, #tpu.memory_space<vmem>>, vector<4x16xf32>,
      %cst_41 = arith.constant 0.000000e+00 : f32
      %51 = vector.broadcast %cst_41 : f32 to vector<4x1024xf32>
      %c0_42 = arith.constant 0 : index
      %c0_43 = arith.constant 0 : index
      %52 = vector.load %arg17[%c0_42, %c0_43] : memref<4x1024xf32, #tpu.memory_space<vmem>>, vector<4x1024xf32>
      tpu.vector_store %arg17[%c0_42, %c0_43], %51 {strides = array<i32>} : memref<4x1024xf32, #tpu.memory_space<vmem>>, vector<4x1024xf32>,
      %cst_44 = arith.constant 0.000000e+00 : f32
      %53 = vector.broadcast %cst_44 : f32 to vector<4x16x1024xf32>
      %c0_45 = arith.constant 0 : index
      %c0_46 = arith.constant 0 : index
      %c0_47 = arith.constant 0 : index
      %54 = vector.load %arg18[%c0_45, %c0_46, %c0_47] : memref<4x16x1024xf32, #tpu.memory_space<vmem>>, vector<4x16x1024xf32>
      tpu.vector_store %arg18[%c0_45, %c0_46, %c0_47], %53 {strides = array<i32>} : memref<4x16x1024xf32, #tpu.memory_space<vmem>>, vector<4x16x1024xf32>,
    } else {
    }
    %c0 = arith.constant 0 : index
    %c0_1 = arith.constant 0 : index
    %c0_2 = arith.constant 0 : index
    %3 = vector.load %arg1[%c0, %c0_1, %c0_2] : memref<4x16x1024xf32, #tpu.memory_space<vmem>>, vector<4x16x1024xf32>
    %4 = vector.shape_cast %3 : vector<4x16x1024xf32> to vector<64x1024xf32>
    %5 = arith.truncf %4 : vector<64x1024xf32> to vector<64x1024xbf16>
    %c0_3 = arith.constant 0 : index
    %c0_4 = arith.constant 0 : index
    %6 = vector.load %arg2[%c0_3, %c0_4] : memref<4x1024xf32, #tpu.memory_space<vmem>>, vector<4x1024xf32>
    %7 = arith.truncf %6 : vector<4x1024xf32> to vector<4x1024xbf16>
    %c0_5 = arith.constant 0 : index
    %c0_6 = arith.constant 0 : index
    %8 = vector.load %arg3[%c0_5, %c0_6] : memref<4x256xf32, #tpu.memory_space<vmem>>, vector<4x256xf32>
    %9 = arith.truncf %8 : vector<4x256xf32> to vector<4x256xbf16>
    %c0_7 = arith.constant 0 : index
    %c0_8 = arith.constant 0 : index
    %c0_9 = arith.constant 0 : index
    %10 = vector.load %arg4[%c0_7, %c0_8, %c0_9] : memref<1x1024x512xbf16, #tpu.memory_space<vmem>>, vector<1x1024x512xbf16>
    %11 = vector.shape_cast %10 : vector<1x1024x512xbf16> to vector<1024x512xbf16>
    %cst = arith.constant dense<0.000000e+00> : vector<64x512xf32>
    %12 = tpu.matmul %5, %11, %cst {dimension_numbers = #tpu.dot_dimension_numbers<[1], [0], [0], [1], [0, 0, 1, 1], [], []>} : vector<64x1024xbf16>, vector<1024x512xbf16>, vector<64x512xf32> -> vector<64x512xf32>
    %c0_10 = arith.constant 0 : index
    %c0_11 = arith.constant 0 : index
    %c0_12 = arith.constant 0 : index
    %13 = vector.load %arg5[%c0_10, %c0_11, %c0_12] : memref<1x1x512xf32, #tpu.memory_space<vmem>>, vector<1x1x512xf32>
    %14 = vector.shape_cast %13 : vector<1x1x512xf32> to vector<1x512xf32>
    %15 = vector.broadcast %14 : vector<1x512xf32> to vector<64x512xf32>
    %16 = arith.addf %12, %15 : vector<64x512xf32>
    %17 = math.tanh %16 : vector<64x512xf32>
    %18 = vector.extract_strided_slice %17 {offsets = [0, 0], sizes = [64, 256], strides = [1, 1]} : vector<64x512xf32> to vector<64x256xf32>
    %19 = vector.shape_cast %18 : vector<64x256xf32> to vector<4x16x256xf32>
    %20 = vector.extract_strided_slice %17 {offsets = [0, 256], sizes = [64, 256], strides = [1, 1]} : vector<64x512xf32> to vector<64x256xf32>
    %c0_13 = arith.constant 0 : index
    %c0_14 = arith.constant 0 : index
    %21 = vector.load %arg6[%c0_13, %c0_14] : memref<1024x256xbf16, #tpu.memory_space<vmem>>, vector<1024x256xbf16>
    %cst_15 = arith.constant dense<0.000000e+00> : vector<4x256xf32>
    %22 = tpu.matmul %7, %21, %cst_15 {dimension_numbers = #tpu.dot_dimension_numbers<[1], [0], [0], [1], [0, 0, 1, 1], [], []>} : vector<4x1024xbf16>, vector<1024x256xbf16>, vector<4x256xf32> -> vector<4x256xf32>
    %c0_16 = arith.constant 0 : index
    %c0_17 = arith.constant 0 : index
    %23 = vector.load %arg7[%c0_16, %c0_17] : memref<1x256xf32, #tpu.memory_space<vmem>>, vector<1x256xf32>
    %24 = vector.broadcast %23 : vector<1x256xf32> to vector<4x256xf32>
    %25 = arith.addf %22, %24 : vector<4x256xf32>
    %26 = math.tanh %25 : vector<4x256xf32>
    %c0_18 = arith.constant 0 : index
    %c0_19 = arith.constant 0 : index
    %27 = vector.load %arg16[%c0_18, %c0_19] : memref<4x16xf32, #tpu.memory_space<vmem>>, vector<4x16xf32>
    %28 = vector.shape_cast %26 : vector<4x256xf32> to vector<4x1x256xf32>
    "tpu.trace_start"() <{level = 10 : i32, message = "nqt,nlt->nql"}> : () -> ()
    %cst_20 = arith.constant dense<0.000000e+00> : vector<4x1x16xf32>
    %29 = tpu.matmul %28, %19, %cst_20 {dimension_numbers = #tpu.dot_dimension_numbers<[2], [2], [1], [1], [0, 0, 0, 1, 1, 1], [0], [0]>} : vector<4x1x256xf32>, vector<4x16x256xf32>, vector<4x1x16xf32> -> vector<4x1x16xf32>
    "tpu.trace_stop"() : () -> ()
    %30 = vector.shape_cast %29 : vector<4x1x16xf32> to vector<4x16xf32>
    %31 = arith.addf %27, %30 : vector<4x16xf32>
    %c0_21 = arith.constant 0 : index
    %c0_22 = arith.constant 0 : index
    %32 = vector.load %arg16[%c0_21, %c0_22] : memref<4x16xf32, #tpu.memory_space<vmem>>, vector<4x16xf32>
    tpu.vector_store %arg16[%c0_21, %c0_22], %31 {strides = array<i32>} : memref<4x16xf32, #tpu.memory_space<vmem>>, vector<4x16xf32>,
    %c0_23 = arith.constant 0 : index
    %c0_24 = arith.constant 0 : index
    %33 = vector.load %arg8[%c0_23, %c0_24] : memref<256x2048xbf16, #tpu.memory_space<vmem>>, vector<256x2048xbf16>
    %c0_25 = arith.constant 0 : index
    %c0_26 = arith.constant 0 : index
    %34 = vector.load %arg17[%c0_25, %c0_26] : memref<4x1024xf32, #tpu.memory_space<vmem>>, vector<4x1024xf32>
    %35 = vector.extract_strided_slice %33 {offsets = [0, 0], sizes = [256, 1024], strides = [1, 1]} : vector<256x2048xbf16> to vector<256x1024xbf16>
    %cst_27 = arith.constant dense<0.000000e+00> : vector<4x1024xf32>
    %36 = tpu.matmul %9, %35, %cst_27 {dimension_numbers = #tpu.dot_dimension_numbers<[1], [0], [0], [1], [0, 0, 1, 1], [], []>} : vector<4x256xbf16>, vector<256x1024xbf16>, vector<4x1024xf32> -> vector<4x1024xf32>
    %37 = arith.addf %34, %36 : vector<4x1024xf32>
    %c0_28 = arith.constant 0 : index
    %c0_29 = arith.constant 0 : index
    %38 = vector.load %arg17[%c0_28, %c0_29] : memref<4x1024xf32, #tpu.memory_space<vmem>>, vector<4x1024xf32>
    tpu.vector_store %arg17[%c0_28, %c0_29], %37 {strides = array<i32>} : memref<4x1024xf32, #tpu.memory_space<vmem>>, vector<4x1024xf32>,
    %c0_30 = arith.constant 0 : index
    %c0_31 = arith.constant 0 : index
    %c0_32 = arith.constant 0 : index
    %39 = vector.load %arg18[%c0_30, %c0_31, %c0_32] : memref<4x16x1024xf32, #tpu.memory_space<vmem>>, vector<4x16x1024xf32>
    %40 = arith.truncf %20 : vector<64x256xf32> to vector<64x256xbf16>
    %41 = vector.extract_strided_slice %33 {offsets = [0, 1024], sizes = [256, 1024], strides = [1, 1]} : vector<256x2048xbf16> to vector<256x1024xbf16>
    %cst_33 = arith.constant dense<0.000000e+00> : vector<64x1024xf32>
    %42 = tpu.matmul %40, %41, %cst_33 {dimension_numbers = #tpu.dot_dimension_numbers<[1], [0], [0], [1], [0, 0, 1, 1], [], []>} : vector<64x256xbf16>, vector<256x1024xbf16>, vector<64x1024xf32> -> vector<64x1024xf32>
    %43 = vector.shape_cast %42 : vector<64x1024xf32> to vector<4x16x1024xf32>
    %44 = arith.addf %39, %43 : vector<4x16x1024xf32>
    %c0_34 = arith.constant 0 : index
    %c0_35 = arith.constant 0 : index
    %c0_36 = arith.constant 0 : index
    %45 = vector.load %arg18[%c0_34, %c0_35, %c0_36] : memref<4x16x1024xf32, #tpu.memory_space<vmem>>, vector<4x16x1024xf32>
    tpu.vector_store %arg18[%c0_34, %c0_35, %c0_36], %44 {strides = array<i32>} : memref<4x16x1024xf32, #tpu.memory_space<vmem>>, vector<4x16x1024xf32>,
    %c3_i32 = arith.constant 3 : i32
    %46 = arith.cmpi eq, %arg0, %c3_i32 : i32
    %47 = arith.extui %46 : i1 to i32
    %c0_i32_37 = arith.constant 0 : i32
    %48 = arith.cmpi ne, %47, %c0_i32_37 : i32
    scf.if %48 {
      %c0_38 = arith.constant 0 : index
      %c0_39 = arith.constant 0 : index
      %49 = vector.load %arg16[%c0_38, %c0_39] : memref<4x16xf32, #tpu.memory_space<vmem>>, vector<4x16xf32>
      %cst_40 = arith.constant 3.125000e-02 : f32
      %50 = vector.broadcast %cst_40 : f32 to vector<4x16xf32>
      %51 = arith.mulf %49, %50 : vector<4x16xf32>
      %cst_41 = arith.constant dense<0xFF800000> : vector<4xf32>
      %52 = vector.multi_reduction <maximumf>, %51, %cst_41 [1] : vector<4x16xf32> to vector<4xf32>
      %53 = vector.shape_cast %52 : vector<4xf32> to vector<4x1xf32>
      %54 = vector.broadcast %53 : vector<4x1xf32> to vector<4x16xf32>
      %55 = arith.subf %51, %54 : vector<4x16xf32>
      %56 = math.exp %55 : vector<4x16xf32>
      %cst_42 = arith.constant dense<0.000000e+00> : vector<4xf32>
      %57 = vector.multi_reduction <add>, %56, %cst_42 [1] : vector<4x16xf32> to vector<4xf32>
      %58 = vector.shape_cast %57 : vector<4xf32> to vector<4x1xf32>
      %59 = vector.broadcast %58 : vector<4x1xf32> to vector<4x16xf32>
      %60 = arith.divf %56, %59 : vector<4x16xf32>
      %61 = vector.shape_cast %60 : vector<4x16xf32> to vector<4x1x16xf32>
      %c0_43 = arith.constant 0 : index
      %c0_44 = arith.constant 0 : index
      %c0_45 = arith.constant 0 : index
      %62 = vector.load %arg18[%c0_43, %c0_44, %c0_45] : memref<4x16x1024xf32, #tpu.memory_space<vmem>>, vector<4x16x1024xf32>
      "tpu.trace_start"() <{level = 10 : i32, message = "nql,nlh->nqh"}> : () -> ()
      %cst_46 = arith.constant dense<0.000000e+00> : vector<4x1x1024xf32>
      %63 = tpu.matmul %61, %62, %cst_46 {dimension_numbers = #tpu.dot_dimension_numbers<[2], [1], [1], [2], [0, 0, 0, 1, 1, 2], [0], [0]>} : vector<4x1x16xf32>, vector<4x16x1024xf32>, vector<4x1x1024xf32> -> vector<4x1x1024xf32>
      "tpu.trace_stop"() : () -> ()
      %64 = vector.shape_cast %63 : vector<4x1x1024xf32> to vector<4x1024xf32>
      %c0_47 = arith.constant 0 : index
      %c0_48 = arith.constant 0 : index
      %65 = vector.load %arg17[%c0_47, %c0_48] : memref<4x1024xf32, #tpu.memory_space<vmem>>, vector<4x1024xf32>
      %c0_49 = arith.constant 0 : index
      %c0_50 = arith.constant 0 : index
      %66 = vector.load %arg9[%c0_49, %c0_50] : memref<1x1024xf32, #tpu.memory_space<vmem>>, vector<1x1024xf32>
      %67 = vector.broadcast %66 : vector<1x1024xf32> to vector<4x1024xf32>
      %68 = arith.addf %65, %67 : vector<4x1024xf32>
      %69 = arith.addf %68, %64 : vector<4x1024xf32>
      %c0_51 = arith.constant 0 : index
      %c0_52 = arith.constant 0 : index
      %70 = vector.load %arg10[%c0_51, %c0_52] : memref<1x1024xf32, #tpu.memory_space<vmem>>, vector<1x1024xf32>
      %71 = vector.broadcast %70 : vector<1x1024xf32> to vector<4x1024xf32>
      %72 = arith.addf %69, %71 : vector<4x1024xf32>
      %73 = vector.shape_cast %72 : vector<4x1024xf32> to vector<1x4x1024xf32>
      %cst_53 = arith.constant dense<0.000000e+00> : vector<1xf32>
      %74 = vector.multi_reduction <add>, %73, %cst_53 [1, 2] : vector<1x4x1024xf32> to vector<1xf32>
      %75 = vector.shape_cast %74 : vector<1xf32> to vector<1x1x1xf32>
      %76 = vector.extract %75[0, 0, 0] : f32 from vector<1x1x1xf32>
      %77 = vector.broadcast %76 : f32 to vector<1x1xf32>
      %cst_54 = arith.constant 4.096000e+03 : f32
      %78 = vector.broadcast %cst_54 : f32 to vector<1x1xf32>
      %79 = arith.divf %77, %78 : vector<1x1xf32>
      %80 = vector.broadcast %79 : vector<1x1xf32> to vector<4x1024xf32>
      %81 = arith.subf %72, %80 : vector<4x1024xf32>
      %82 = vector.broadcast %79 : vector<1x1xf32> to vector<4x1024xf32>
      %83 = arith.subf %72, %82 : vector<4x1024xf32>
      %84 = arith.mulf %81, %83 : vector<4x1024xf32>
      %85 = vector.shape_cast %84 : vector<4x1024xf32> to vector<1x4x1024xf32>
      %cst_55 = arith.constant dense<0.000000e+00> : vector<1xf32>
      %86 = vector.multi_reduction <add>, %85, %cst_55 [1, 2] : vector<1x4x1024xf32> to vector<1xf32>
      %87 = vector.shape_cast %86 : vector<1xf32> to vector<1x1x1xf32>
      %88 = vector.extract %87[0, 0, 0] : f32 from vector<1x1x1xf32>
      %89 = vector.broadcast %88 : f32 to vector<1x1xf32>
      %cst_56 = arith.constant 4.096000e+03 : f32
      %90 = vector.broadcast %cst_56 : f32 to vector<1x1xf32>
      %91 = arith.divf %89, %90 : vector<1x1xf32>
      %92 = vector.broadcast %79 : vector<1x1xf32> to vector<4x1024xf32>
      %93 = arith.subf %72, %92 : vector<4x1024xf32>
      %cst_57 = arith.constant 9.99999974E-6 : f32
      %94 = vector.broadcast %cst_57 : f32 to vector<1x1xf32>
      %95 = arith.addf %91, %94 : vector<1x1xf32>
      %96 = math.rsqrt %95 : vector<1x1xf32>
      %97 = vector.broadcast %96 : vector<1x1xf32> to vector<4x1024xf32>
      %98 = arith.mulf %93, %97 : vector<4x1024xf32>
      %c0_58 = arith.constant 0 : index
      %c0_59 = arith.constant 0 : index
      %99 = vector.load %arg11[%c0_58, %c0_59] : memref<4x1024xf32, #tpu.memory_space<vmem>>, vector<4x1024xf32>
      %100 = arith.mulf %98, %99 : vector<4x1024xf32>
      %c0_60 = arith.constant 0 : index
      %c0_61 = arith.constant 0 : index
      %101 = vector.load %arg12[%c0_60, %c0_61] : memref<4x1024xf32, #tpu.memory_space<vmem>>, vector<4x1024xf32>
      %102 = arith.addf %100, %101 : vector<4x1024xf32>
      %c0_62 = arith.constant 0 : index
      %c0_63 = arith.constant 0 : index
      %103 = vector.load %arg13[%c0_62, %c0_63] : memref<1x1024xf32, #tpu.memory_space<vmem>>, vector<1x1024xf32>
      %104 = vector.broadcast %103 : vector<1x1024xf32> to vector<4x1024xf32>
      %105 = arith.mulf %102, %104 : vector<4x1024xf32>
      %cst_64 = arith.constant dense<0.000000e+00> : vector<4xf32>
      %106 = vector.multi_reduction <add>, %105, %cst_64 [1] : vector<4x1024xf32> to vector<4xf32>
      %107 = vector.shape_cast %106 : vector<4xf32> to vector<1x4xf32>
      %c0_65 = arith.constant 0 : index
      %c0_66 = arith.constant 0 : index
      %108 = vector.load %arg14[%c0_65, %c0_66] : memref<1x1xf32, #tpu.memory_space<vmem>>, vector<1x1xf32>
      %109 = vector.broadcast %108 : vector<1x1xf32> to vector<1x4xf32>
      %110 = arith.addf %107, %109 : vector<1x4xf32>
      %c0_67 = arith.constant 0 : index
      %c0_68 = arith.constant 0 : index
      %111 = vector.load %arg15[%c0_67, %c0_68] : memref<1x4xf32, #tpu.memory_space<vmem>>, vector<1x4xf32>
      tpu.vector_store %arg15[%c0_67, %c0_68], %110 {strides = array<i32>} : memref<1x4xf32, #tpu.memory_space<vmem>>, vector<1x4xf32>,
    } else {
    }
    return
  }
  func.func @transform_0(%arg0: i32) -> (i32, i32, i32) {
    %c0_i32 = arith.constant 0 : i32
    %c0_i32_0 = arith.constant 0 : i32
    %c0_i32_1 = arith.constant 0 : i32
    %c0_i32_2 = arith.constant 0 : i32
    return %c0_i32, %c0_i32_0, %c0_i32_1 : i32, i32, i32
  }
  func.func @transform_1(%arg0: i32) -> (i32, i32) {
    %c0_i32 = arith.constant 0 : i32
    %c0_i32_0 = arith.constant 0 : i32
    %c0_i32_1 = arith.constant 0 : i32
    return %c0_i32, %c0_i32_0 : i32, i32
  }
  func.func @transform_2(%arg0: i32) -> (i32, i32) {
    %c0_i32 = arith.constant 0 : i32
    %c0_i32_0 = arith.constant 0 : i32
    return %c0_i32, %arg0 : i32, i32
  }
  func.func @transform_3(%arg0: i32) -> (i32, i32, i32) {
    %c0_i32 = arith.constant 0 : i32
    %c0_i32_0 = arith.constant 0 : i32
    %c0_i32_1 = arith.constant 0 : i32
    return %arg0, %c0_i32, %c0_i32_0 : i32, i32, i32
  }
  func.func @transform_4(%arg0: i32) -> (i32, i32, i32) {
    %c0_i32 = arith.constant 0 : i32
    %c0_i32_0 = arith.constant 0 : i32
    %c0_i32_1 = arith.constant 0 : i32
    return %arg0, %c0_i32, %c0_i32_0 : i32, i32, i32
  }
  func.func @transform_5(%arg0: i32) -> (i32, i32) {
    %c0_i32 = arith.constant 0 : i32
    %c0_i32_0 = arith.constant 0 : i32
    return %c0_i32, %arg0 : i32, i32
  }
  func.func @transform_6(%arg0: i32) -> (i32, i32) {
    %c0_i32 = arith.constant 0 : i32
    %c0_i32_0 = arith.constant 0 : i32
    return %c0_i32, %arg0 : i32, i32
  }
  func.func @transform_7(%arg0: i32) -> (i32, i32) {
    %c0_i32 = arith.constant 0 : i32
    %c0_i32_0 = arith.constant 0 : i32
    return %arg0, %c0_i32 : i32, i32
  }
  func.func @transform_8(%arg0: i32) -> (i32, i32) {
    %c0_i32 = arith.constant 0 : i32
    %c0_i32_0 = arith.constant 0 : i32
    %c0_i32_1 = arith.constant 0 : i32
    return %c0_i32, %c0_i32_0 : i32, i32
  }
  func.func @transform_9(%arg0: i32) -> (i32, i32) {
    %c0_i32 = arith.constant 0 : i32
    %c0_i32_0 = arith.constant 0 : i32
    %c0_i32_1 = arith.constant 0 : i32
    return %c0_i32, %c0_i32_0 : i32, i32
  }
  func.func @transform_10(%arg0: i32) -> (i32, i32) {
    %c0_i32 = arith.constant 0 : i32
    %c0_i32_0 = arith.constant 0 : i32
    %c0_i32_1 = arith.constant 0 : i32
    return %c0_i32, %c0_i32_0 : i32, i32
  }
  func.func @transform_11(%arg0: i32) -> (i32, i32) {
    %c0_i32 = arith.constant 0 : i32
    %c0_i32_0 = arith.constant 0 : i32
    %c0_i32_1 = arith.constant 0 : i32
    return %c0_i32, %c0_i32_0 : i32, i32
  }
  func.func @transform_12(%arg0: i32) -> (i32, i32) {
    %c0_i32 = arith.constant 0 : i32
    %c0_i32_0 = arith.constant 0 : i32
    %c0_i32_1 = arith.constant 0 : i32
    return %c0_i32, %c0_i32_0 : i32, i32
  }
  func.func @transform_13(%arg0: i32) -> (i32, i32) {
    %c0_i32 = arith.constant 0 : i32
    %c0_i32_0 = arith.constant 0 : i32
    %c0_i32_1 = arith.constant 0 : i32
    return %c0_i32, %c0_i32_0 : i32, i32
  }
  func.func @transform_14(%arg0: i32) -> (i32, i32) {
    %c0_i32 = arith.constant 0 : i32
    %c0_i32_0 = arith.constant 0 : i32
    %c0_i32_1 = arith.constant 0 : i32
    return %c0_i32, %c0_i32_0 : i32, i32
  }
}

</mosaic_0001>

<bundles_post_ra>
// kernel: tpu_custom_call.1
= control target key start
LH: loop header
LB: loop body
LE: loop exit
PB: predicated region body
PF: predicated region fallthrough
CT: control target
= control target key end

     0   :  { %s12328_s0 = inlined_call_operand.hbm [shape: f32[4,16,1024], index: 0, kind: input, shape index: {}]   ;;  %s12329_s1 = inlined_call_operand.hbm [shape: f32[4,1024], index: 1, kind: input, shape index: {}]   ;;  %s12330_s2 = inlined_call_operand.hbm [shape: f32[4,1024], index: 2, kind: input, shape index: {}]   ;;  %s12331_s3 = inlined_call_operand.hbm [shape: bf16[4,1024,512], index: 3, kind: input, shape index: {}]   ;;  %s12332_s4 = inlined_call_operand.hbm [shape: f32[4,1,512], index: 4, kind: input, shape index: {}]   ;;  %s12333_s5 = inlined_call_operand.hbm [shape: bf16[1024,1024], index: 5, kind: input, shape index: {}]   ;;  %s12334_s6 = inlined_call_operand.hbm [shape: f32[1,1024], index: 6, kind: input, shape index: {}]   ;;  %s12335_s7 = inlined_call_operand.hbm [shape: bf16[1024,2048], index: 7, kind: input, shape index: {}]   ;;  %s12336_s8 = inlined_call_operand.hbm [shape: f32[1,1024], index: 8, kind: input, shape index: {}]   ;;  %s12337_s9 = inlined_call_operand.hbm [shape: f32[1,1024], index: 9, kind: input, shape index: {}]   ;;  %s12338_s10 = inlined_call_operand.hbm [shape: f32[4,1024], index: 10, kind: input, shape index: {}]   ;;  %s12339_s11 = inlined_call_operand.hbm [shape: f32[4,1024], index: 11, kind: input, shape index: {}]   ;;  %s12340_s12 = inlined_call_operand.hbm [shape: f32[1,1024], index: 12, kind: input, shape index: {}]   ;;  %s12341_s13 = inlined_call_operand.<no memory space> [shape: f32[1,1], index: 13, kind: input, shape index: {}]   ;;  %s12342_s14 = inlined_call_operand.hbm [shape: f32[1,4], index: 14, kind: output, shape index: {}]  }
   0x1   :  { %12376 = sst [smem:[#allocation42_spill]] %s12328_s0  ;;  %v19_v0 = vstv %s12341_s13 }
   0x2   :  { %12377 = sst [smem:[#allocation43_spill]] %s12329_s1  ;;  %20 = vst [vmem:[#allocation5] sm:$0x1] %v19_v0 }
   0x3   :  { %12378 = sst [smem:[#allocation44_spill]] %s12330_s2 }
   0x4   :  { %12379 = sst [smem:[#allocation45_spill]] %s12331_s3 }
   0x5   :  { %12380 = sst [smem:[#allocation46_spill]] %s12340_s12 }
   0x6   :  { %12381 = sst [smem:[#allocation47_spill]] %s12342_s14 }
   0x7   :  { %21 = vsyncpa [#allocation7], 0 }
   0x8   :  { %22 = vsyncpa [#allocation10], 0 }
   0x9   :  { %23 = vsyncpa [#allocation19], 0 }
   0xa   :  { %24 = vsyncpa [#allocation22], 0 }
   0xb   :  { %25 = vsyncpa [#allocation8], 0  ;;  %s10584_s15 = smov 0   ;;  %s10586_s16 = smov 0  }
   0xc   :  { %s10588_s17 = smov 0   ;;  %s10590_s18 = smov 0  }
   0xd LB: > { %12382 = sst [smem:[#allocation32_spill]] %s10471_s16  ;;  %s10481_s13 = smov [#allocation6]   ;;  %s10479_s18 = sphi %s10590_s18, %s12440_s18   ;;  %s10475_s17 = sphi %s10588_s17, %s12443_s17   ;;  %s10471_s16 = sphi %s10586_s16, %s12442_s16   ;;  %s10467_s15 = sphi %s10584_s15, %s12441_s15  }
   0xe   : > { %12383 = sst [smem:[#allocation33_spill]] %s10475_s17  ;;  %s393_s19 = sshll.u32 %s10481_s13, 4  ;;  %s394_s19 = int_to_ptr.vmem [resolvable:$true] %s393_s19 }
   0xf   : > { %s10605_s20 = sadd.s32 4294967295, %s10479_s18   ;;  %p8522_p0 = scmp.ge.s32.totalorder %s10479_s18, 1 }
  0x10   : > { %p12351_p1 = scmp.eq.s32.totalorder %s10605_s20, 0  ;;  %p381_p2 = scmp.lt.s32.totalorder %s10479_s18, 5 }
  0x11   : > { %s10624_s23 = sadd.s32 1, %s10479_s18   ;;  %s10058_s25 = scalar_lea.vmem %s394_s19, 8192 }
  0x12   : > { %p10611_p4 = pnand %p8522_p0, %p381_p2  ;;  %12387 = sst [smem:[#allocation35_spill]] %s10624_s23 }
  0x13   : > { %p10059_p8 = scmp.ne.s32.totalorder %s394_s19, %s10058_s25  ;;  %p10066_p11 = scmp.lt.s32.totalorder %s394_s19, %s394_s19 }
  0x14   : > { %s12384_s21 = scalar_select %p10611_p4, 1, 0 }
  0x15   : > { %p9281_p5 = pneg %p10611_p4  ;;  %p10067_p12 = scmp.lt.s32.totalorder %s10058_s25, %s10058_s25 }
  0x16   : > { %12385 = sst [smem:[#allocation34_spill]] %s12384_s21 }
  0x17   : > { %p10619_p6 = pnand %p9281_p5, %p12351_p1  ;;  %p10068_p13 = por %p10067_p12, %p10066_p11 }
  0x19   : > { %s12386_s22 = scalar_select %p10619_p6, 1, 0 }
  0x1a   : > { %p10628_p7 = pneg %p10619_p6 }
  0x1c   : > { %s12388_s24 = scalar_select %p10628_p7, 1, 0 }
  0x1d   : > { %p10061_p9 = pnand %p10059_p8, %p10628_p7 }
  0x1f   : > { %p10062_p10 = pneg %p10061_p9 }
  0x21   : > { %p10069_p0 = pnand %p10068_p13, %p10062_p10 }
  0x23   : > { %10072 = shalt.err (!%p10069_p0)
}
  0x24   : > { %s12344_s26 = smov 1024   ;;  %s12345_s27 = smov 64  }
  0x25   : > { %s12389_s0 = sld [smem:[#allocation42_spill]]  ;;  %s77_s30 = ssub.s32 %s10479_s18, %s10624_s23 }
  0x26   : > { %s80_s13 = sadd.s32 1, %s10475_s17  ;;  %p78_p2 = scmp.eq.s32.totalorder %s77_s30, 0 }
  0x27   : > { %p87_p5 = scmp.ne.s32.totalorder %s10475_s17, %s10471_s16  ;;  %p88_p8 = scmp.eq.s32.totalorder %s10479_s18, 0 }
  0x28   : > { %p93_p9 = scmp.ne.s32.totalorder %s10471_s16, %s10467_s15  ;;  %p9329_p12 = scmp.lt.s32.totalorder %s10479_s18, 4 }
  0x29   : > { %s10651_s25 = scalar_select %p78_p2, %s10475_s17, %s80_s13  }
  0x2a   : > { %p89_p10 = por %p88_p8, %p87_p5  ;;  %p10655_p11 = por %p12351_p1, %p93_p9 }
  0x2b   : > { %9284 = dma.hbm_to_vmem [thread:$0]  (!%p10619_p6), %s12389_s0, 8192, %s394_s19, [#allocation7], %s12344_s26, %s12344_s26, %s12345_s27  }
  0x2c   : > { %12390 = sst [smem:[#allocation36_spill]] %s10651_s25  ;;  %s476_s21 = sand.u32 1, %s10479_s18  }
  0x2d   : > { %s12391_s14 = scalar_select %p10655_p11, 1, 0 }
  0x2e   : > { %s10662_s12 = sand.u32 1, %s10475_s17   ;;  %s9226_s28 = sshll.u32 %s10479_s18, 7 }
  0x2f   : > { %12392 = sst [smem:[#allocation37_spill]] %s12391_s14  ;;  %s8531_s19 = sshll.u32 %s10662_s12, 3 }
  0x30   : > { %s12393_s2 = sld [smem:[#allocation44_spill]]  ;;  %s480_s13 = scalar_lea.vmem [#allocation11], %s8531_s19 }
  0x31   : > { %s488_s26 = sshll.u32 %s480_s13, 4  ;;  %p10671_p13 = pnand %p9329_p12, %p89_p10  ;;  %s10675_s26 = int_to_ptr.vmem [resolvable:$true] %s488_s26 }
  0x32   : > { %s10680_s17 = scalar_lea.hbm %s12333_s5, %s9226_s28  ;;  %s10683_s30 = scalar_lea.sflag [#allocation7], %s476_s21 }
  0x33   : > { %s12394_s27 = scalar_select %p10671_p13, 1, 0 }
  0x34   : > { %p10689_p2 = pneg %p10671_p13 }
  0x36   : > { %s10669_s15 = scalar_lea.hbm %s12393_s2, %s9226_s28  ;;  %s10078_s0 = scalar_lea.hbm %s12393_s2, 512 }
  0x37   : > { %s10073_s23 = scalar_lea.hbm %s10669_s15, 128  ;;  %p10079_p9 = scmp.lt.s32.totalorder %s10669_s15, %s12393_s2 }
  0x38   : > { %p10074_p0 = scmp.ne.s32.totalorder %s10669_s15, %s10073_s23  ;;  %p10080_p10 = scmp.lt.s32.totalorder %s10078_s0, %s10073_s23 }
  0x39   : > { %s12395_s19 = scalar_select %p10689_p2, 1, 0 }
  0x3a   : > { %p10076_p5 = pnand %p10689_p2, %p10074_p0  ;;  %p10081_p12 = por %p10080_p10, %p10079_p9 }
  0x3c   : > { %p10077_p8 = pneg %p10076_p5 }
  0x3e   : > { %p10082_p3 = pnand %p10081_p12, %p10077_p8 }
  0x40   : > { %10085 = shalt.err (!%p10082_p3)
}
  0x41   : > { %s10086_s21 = scalar_lea.vmem %s10675_s26, 128  ;;  %s10484_s29 = smov [#allocation11]  }
  0x42   : > { %p10087_p1 = scmp.ne.s32.totalorder %s10675_s26, %s10086_s21  ;;  %s10091_s14 = sshll.u32 %s10484_s29, 4  ;;  %s10092_s14 = int_to_ptr.vmem [resolvable:$false] %s10091_s14 }
  0x43   : > { %s10093_s13 = scalar_lea.vmem %s10092_s14, 256  ;;  %p10094_p11 = scmp.lt.s32.totalorder %s10675_s26, %s10092_s14 }
  0x44   : > { %p10089_p0 = pnand %p10087_p1, %p10689_p2  ;;  %p10095_p4 = scmp.lt.s32.totalorder %s10093_s13, %s10086_s21 }
  0x46   : > { %p10090_p5 = pneg %p10089_p0  ;;  %p10096_p6 = por %p10095_p4, %p10094_p11 }
  0x48   : > { %p10097_p7 = pnand %p10096_p6, %p10090_p5 }
  0x4a   : > { %10100 = shalt.err (!%p10097_p7)
}
  0x4b   : > { %9306 = dma.hbm_to_vmem [thread:$0]  (!%p10671_p13), %s10669_s15, 128, %s10675_s26, %s10683_s30  }
  0x4c   : > { %s12358_s23 = sshll.u32 %s10479_s18, 15  ;;  %s12396_s3 = sld [smem:[#allocation45_spill]] }
  0x4d   : > { %s12397_s28 = sshll.u32 %s10662_s12, 11  ;;  %s8537_s13 = sshll.u32 %s10662_s12, 2 }
  0x4e   : > { %s499_s21 = scalar_lea.vmem [#allocation12], %s12397_s28 }
  0x4f   : > { %s506_s14 = sshll.u32 %s499_s21, 4  ;;  %s10722_s14 = int_to_ptr.vmem [resolvable:$true] %s506_s14 }
  0x52   : > { %s10718_s25 = scalar_lea.hbm %s12396_s3, %s12358_s23  ;;  %s10106_s29 = scalar_lea.hbm %s12396_s3, 131072 }
  0x53   : > { %s10101_s2 = scalar_lea.hbm %s10718_s25, 32768  ;;  %p10107_p6 = scmp.lt.s32.totalorder %s10718_s25, %s12396_s3 }
  0x54   : > { %p10102_p1 = scmp.ne.s32.totalorder %s10718_s25, %s10101_s2  ;;  %p10108_p7 = scmp.lt.s32.totalorder %s10106_s29, %s10101_s2 }
  0x56   : > { %p10104_p3 = pnand %p10102_p1, %p10689_p2  ;;  %p10109_p11 = por %p10108_p7, %p10107_p6 }
  0x58   : > { %p10105_p4 = pneg %p10104_p3 }
  0x5a   : > { %p10110_p8 = pnand %p10109_p11, %p10105_p4 }
  0x5c   : > { %10113 = shalt.err (!%p10110_p8)
}
  0x5d   : > { %s10114_s28 = scalar_lea.vmem %s10722_s14, 32768  ;;  %s10485_s21 = smov [#allocation12]  }
  0x5e   : > { %p10115_p9 = scmp.ne.s32.totalorder %s10722_s14, %s10114_s28  ;;  %s10119_s26 = sshll.u32 %s10485_s21, 4  ;;  %s10120_s26 = int_to_ptr.vmem [resolvable:$false] %s10119_s26 }
  0x5f   : > { %s10121_s15 = scalar_lea.vmem %s10120_s26, 65536  ;;  %p10122_p0 = scmp.lt.s32.totalorder %s10722_s14, %s10120_s26 }
  0x60   : > { %p10117_p10 = pnand %p10115_p9, %p10689_p2  ;;  %p10123_p5 = scmp.lt.s32.totalorder %s10121_s15, %s10114_s28 }
  0x62   : > { %p10118_p12 = pneg %p10117_p10  ;;  %p10124_p1 = por %p10123_p5, %p10122_p0 }
  0x64   : > { %p10125_p3 = pnand %p10124_p1, %p10118_p12 }
  0x66   : > { %10128 = shalt.err (!%p10125_p3)
}
  0x67   : > { %s10486_s2 = smov 256   ;;  %s10487_s23 = smov 16  }
  0x68   : > { %9309 = dma.hbm_to_vmem [thread:$0]  (!%p10671_p13), %s10718_s25, 32768, %s10722_s14, %s10683_s30, %s10486_s2, %s10486_s2, %s10487_s23  }
  0x69   : > { %s9228_s29 = sshll.u32 %s10479_s18, 6  ;;  %s520_s26 = scalar_lea.vmem [#allocation13], %s8537_s13 }
  0x6a   : > { %s10750_s28 = scalar_lea.hbm %s12332_s4, %s9228_s29  ;;  %s528_s15 = sshll.u32 %s520_s26, 4  ;;  %s529_s15 = int_to_ptr.vmem [resolvable:$true] %s528_s15 }
  0x6b   : > { %s8540_s3 = sshll.u32 %s10662_s12, 10  ;;  %s10129_s16 = scalar_lea.hbm %s10750_s28, 64 }
  0x6c   : > { %p10130_p4 = scmp.ne.s32.totalorder %s10750_s28, %s10129_s16  ;;  %s10134_s2 = scalar_lea.hbm %s12332_s4, 256 }
  0x6d   : > { %p10135_p11 = scmp.lt.s32.totalorder %s10750_s28, %s12332_s4  ;;  %p10136_p8 = scmp.lt.s32.totalorder %s10134_s2, %s10129_s16 }
  0x6e   : > { %p10132_p6 = pnand %p10130_p4, %p10689_p2 }
  0x6f   : > { %p10137_p9 = por %p10136_p8, %p10135_p11 }
  0x70   : > { %p10133_p7 = pneg %p10132_p6 }
  0x72   : > { %p10138_p10 = pnand %p10137_p9, %p10133_p7 }
  0x74   : > { %10141 = shalt.err (!%p10138_p10)
}
  0x75   : > { %s10142_s13 = scalar_lea.vmem %s529_s15, 64  ;;  %s10488_s0 = smov [#allocation13]  }
  0x76   : > { %p10143_p12 = scmp.ne.s32.totalorder %s529_s15, %s10142_s13  ;;  %s10147_s21 = sshll.u32 %s10488_s0, 4  ;;  %s10148_s21 = int_to_ptr.vmem [resolvable:$false] %s10147_s21 }
  0x77   : > { %s10149_s26 = scalar_lea.vmem %s10148_s21, 128  ;;  %p10150_p1 = scmp.lt.s32.totalorder %s529_s15, %s10148_s21 }
  0x78   : > { %p10145_p0 = pnand %p10143_p12, %p10689_p2  ;;  %p10151_p3 = scmp.lt.s32.totalorder %s10149_s26, %s10142_s13 }
  0x7a   : > { %p10146_p5 = pneg %p10145_p0  ;;  %p10152_p4 = por %p10151_p3, %p10150_p1 }
  0x7c   : > { %p10153_p6 = pnand %p10152_p4, %p10146_p5 }
  0x7e   : > { %10156 = shalt.err (!%p10153_p6)
}
  0x7f   : > { %9312 = dma.hbm_to_vmem [thread:$0]  (!%p10671_p13), %s10750_s28, 64, %s529_s15, %s10683_s30  }
  0x80   : > { %s539_s16 = scalar_lea.vmem [#allocation14], %s8540_s3  ;;  %s10157_s14 = scalar_lea.hbm %s10680_s17, 16384 }
  0x81   : > { %s546_s25 = sshll.u32 %s539_s16, 4  ;;  %p10158_p7 = scmp.ne.s32.totalorder %s10680_s17, %s10157_s14  ;;  %s10772_s25 = int_to_ptr.vmem [resolvable:$true] %s546_s25 }
  0x82   : > { %s10162_s29 = scalar_lea.hbm %s12333_s5, 65536  ;;  %p10163_p9 = scmp.lt.s32.totalorder %s10680_s17, %s12333_s5 }
  0x83   : > { %p10160_p11 = pnand %p10158_p7, %p10689_p2  ;;  %p10164_p10 = scmp.lt.s32.totalorder %s10162_s29, %s10157_s14 }
  0x85   : > { %p10161_p8 = pneg %p10160_p11  ;;  %p10165_p12 = por %p10164_p10, %p10163_p9 }
  0x87   : > { %p10166_p0 = pnand %p10165_p12, %p10161_p8 }
  0x89   : > { %10169 = shalt.err (!%p10166_p0)
}
  0x8a   : > { %s10170_s3 = scalar_lea.vmem %s10772_s25, 16384  ;;  %s10489_s28 = smov [#allocation14]  }
  0x8b   : > { %p10171_p5 = scmp.ne.s32.totalorder %s10772_s25, %s10170_s3  ;;  %s10175_s15 = sshll.u32 %s10489_s28, 4  ;;  %s10176_s15 = int_to_ptr.vmem [resolvable:$false] %s10175_s15 }
  0x8c   : > { %s10177_s21 = scalar_lea.vmem %s10176_s15, 32768  ;;  %p10178_p4 = scmp.lt.s32.totalorder %s10772_s25, %s10176_s15 }
  0x8d   : > { %p10173_p1 = pnand %p10171_p5, %p10689_p2  ;;  %p10179_p6 = scmp.lt.s32.totalorder %s10177_s21, %s10170_s3 }
  0x8f   : > { %p10174_p3 = pneg %p10173_p1  ;;  %p10180_p7 = por %p10179_p6, %p10178_p4 }
  0x91   : > { %p10181_p11 = pnand %p10180_p7, %p10174_p3 }
  0x93   : > { %10184 = shalt.err (!%p10181_p11)
}
  0x94   : > { %s10490_s26 = smov 512   ;;  %s10491_s16 = smov 128  }
  0x95   : > { %s10492_s14 = smov 8   ;;  %s10493_s2 = smov [#allocation9]  }
  0x96   : > { %9315 = dma.hbm_to_vmem [thread:$0]  (!%p10671_p13), %s10680_s17, 16384, %s10772_s25, %s10683_s30, %s10490_s26, %s10491_s16, %s10492_s14  }
  0x97   : > { %s407_s23 = sshll.u32 %s10493_s2, 4  ;;  %s10494_s29 = smov [#allocation18]   ;;  %s408_s23 = int_to_ptr.vmem [resolvable:$true] %s407_s23 }
  0x98   : > { %s429_s13 = sshll.u32 %s10494_s29, 4  ;;  %s10196_s0 = scalar_lea.vmem %s408_s23, 512  ;;  %s430_s13 = int_to_ptr.vmem [resolvable:$true] %s429_s13 }
  0x99   : > { %p10197_p8 = scmp.ne.s32.totalorder %s408_s23, %s10196_s0  ;;  %p12398_p9 = scmp.ne.s32.totalorder %s12388_s24, 0 }
  0x9a   : > { %p10204_p0 = scmp.lt.s32.totalorder %s408_s23, %s408_s23  ;;  %p10205_p5 = scmp.lt.s32.totalorder %s10196_s0, %s10196_s0 }
  0x9b   : > { %p10199_p10 = pnand %p10197_p8, %p12398_p9 }
  0x9c   : > { %p10206_p1 = por %p10205_p5, %p10204_p0 }
  0x9d   : > { %p10200_p12 = pneg %p10199_p10 }
  0x9f   : > { %p10207_p3 = pnand %p10206_p1, %p10200_p12 }
  0xa1   : > { %10210 = shalt.err (!%p10207_p3)
}
  0xa2   : > { %p12399_p4 = scmp.ne.s32.totalorder %s12386_s22, 0  ;;  %s12400_s1 = sld [smem:[#allocation43_spill]] }
  0xa3   : > { %s10222_s25 = scalar_lea.vmem %s430_s13, 128  ;;  %p10230_p13 = scmp.lt.s32.totalorder %s430_s13, %s430_s13 }
  0xa4   : > { %p10223_p6 = scmp.ne.s32.totalorder %s430_s13, %s10222_s25  ;;  %p10231_p8 = scmp.lt.s32.totalorder %s10222_s25, %s10222_s25 }
  0xa6   : > { %p10225_p7 = pnand %p10223_p6, %p12398_p9  ;;  %p10232_p10 = por %p10231_p8, %p10230_p13 }
  0xa8   : > { %9287 = dma.hbm_to_vmem [thread:$0]  (!%p12399_p4), %s12400_s1, 512, %s408_s23, [#allocation10]  }
  0xa9   : > { %p10226_p11 = pneg %p10225_p7 }
  0xab   : > { %p10233_p2 = pnand %p10232_p10, %p10226_p11 }
  0xad   : > { %10236 = shalt.err (!%p10233_p2)
}
  0xae   : > { %9293 = dma.hbm_to_vmem [thread:$0]  (!%p12399_p4), %s12337_s9, 128, %s430_s13, [#allocation19]  }
  0xaf   : > { %s8543_s21 = sshll.u32 %s10662_s12, 1  ;;  %s10495_s26 = smov [#allocation21]  }
  0xb0   : > { %s451_s16 = sshll.u32 %s10495_s26, 4  ;;  %s9230_s14 = sshll.u32 %s10479_s18, 5  ;;  %s452_s16 = int_to_ptr.vmem [resolvable:$true] %s451_s16 }
  0xb1   : > { %s10248_s2 = scalar_lea.vmem %s452_s16, 512  ;;  %p10256_p2 = scmp.lt.s32.totalorder %s452_s16, %s452_s16 }
  0xb2   : > { %p10249_p12 = scmp.ne.s32.totalorder %s452_s16, %s10248_s2  ;;  %p10257_p5 = scmp.lt.s32.totalorder %s10248_s2, %s10248_s2 }
  0xb4   : > { %p10251_p13 = pnand %p10249_p12, %p12398_p9  ;;  %p10258_p1 = por %p10257_p5, %p10256_p2 }
  0xb6   : > { %p10252_p0 = pneg %p10251_p13 }
  0xb8   : > { %p10259_p3 = pnand %p10258_p1, %p10252_p0 }
  0xba   : > { %10262 = shalt.err (!%p10259_p3)
}
  0xbb   : > { %9299 = dma.hbm_to_vmem [thread:$0]  (!%p12399_p4), %s12339_s11, 512, %s452_s16, [#allocation22]  }
  0xbc   : > { %s566_s3 = scalar_lea.hbm %s12334_s6, %s9230_s14  ;;  %s560_s17 = scalar_lea.vmem [#allocation15], %s8543_s21 }
  0xbd   : > { %s568_s25 = sshll.u32 %s560_s17, 4  ;;  %s10263_s28 = scalar_lea.hbm %s566_s3, 32  ;;  %s569_s25 = int_to_ptr.vmem [resolvable:$true] %s568_s25 }
  0xbe   : > { %p10264_p6 = scmp.ne.s32.totalorder %s566_s3, %s10263_s28  ;;  %p12401_p7 = scmp.ne.s32.totalorder %s12395_s19, 0 }
  0xbf   : > { %s10268_s2 = scalar_lea.hbm %s12334_s6, 128  ;;  %p10269_p10 = scmp.lt.s32.totalorder %s566_s3, %s12334_s6 }
  0xc0   : > { %p10266_p11 = pnand %p10264_p6, %p12401_p7  ;;  %p10270_p12 = scmp.lt.s32.totalorder %s10268_s2, %s10263_s28 }
  0xc2   : > { %p10267_p8 = pneg %p10266_p11  ;;  %p10271_p13 = por %p10270_p12, %p10269_p10 }
  0xc4   : > { %p10272_p0 = pnand %p10271_p13, %p10267_p8 }
  0xc6   : > { %10275 = shalt.err (!%p10272_p0)
}
  0xc7   : > { %s10276_s21 = scalar_lea.vmem %s569_s25, 32  ;;  %s10496_s16 = smov [#allocation15]  }
  0xc8   : > { %p10277_p2 = scmp.ne.s32.totalorder %s569_s25, %s10276_s21  ;;  %s10281_s14 = sshll.u32 %s10496_s16, 4  ;;  %s10282_s14 = int_to_ptr.vmem [resolvable:$false] %s10281_s14 }
  0xc9   : > { %s10283_s29 = scalar_lea.vmem %s10282_s14, 64  ;;  %p10284_p3 = scmp.lt.s32.totalorder %s569_s25, %s10282_s14 }
  0xca   : > { %p10279_p5 = pnand %p10277_p2, %p12401_p7  ;;  %p10285_p6 = scmp.lt.s32.totalorder %s10283_s29, %s10276_s21 }
  0xcc   : > { %p10280_p1 = pneg %p10279_p5  ;;  %p10286_p11 = por %p10285_p6, %p10284_p3 }
  0xce   : > { %p10287_p4 = pnand %p10286_p11, %p10280_p1 }
  0xd0   : > { %10290 = shalt.err (!%p10287_p4)
}
  0xd1   : > { %p12402_p9 = scmp.ne.s32.totalorder %s12394_s27, 0  ;;  %s10497_s1 = smov [#allocation17]  }
  0xd2   : > { %s418_s13 = sshll.u32 %s10497_s1, 4  ;;  %s10498_s0 = smov [#allocation20]   ;;  %s419_s13 = int_to_ptr.vmem [resolvable:$true] %s418_s13 }
  0xd3   : > { %9318 = dma.hbm_to_vmem [thread:$0]  (!%p12402_p9), %s566_s3, 32, %s569_s25, %s10683_s30  }
  0xd4   : > { %s440_s17 = sshll.u32 %s10498_s0, 4  ;;  %s10302_s28 = scalar_lea.vmem %s419_s13, 128  ;;  %s441_s17 = int_to_ptr.vmem [resolvable:$true] %s440_s17 }
  0xd5   : > { %p10303_p8 = scmp.ne.s32.totalorder %s419_s13, %s10302_s28  ;;  %p12403_p10 = scmp.ne.s32.totalorder %s12388_s24, 0 }
  0xd6   : > { %p10310_p0 = scmp.lt.s32.totalorder %s419_s13, %s419_s13  ;;  %p10311_p2 = scmp.lt.s32.totalorder %s10302_s28, %s10302_s28 }
  0xd7   : > { %p10305_p12 = pnand %p10303_p8, %p12403_p10 }
  0xd8   : > { %p10312_p5 = por %p10311_p2, %p10310_p0 }
  0xd9   : > { %p10306_p13 = pneg %p10305_p12 }
  0xdb   : > { %p10313_p1 = pnand %p10312_p5, %p10306_p13 }
  0xdd   : > { %10316 = shalt.err (!%p10313_p1)
}
  0xde   : > { %p12404_p4 = scmp.ne.s32.totalorder %s12386_s22, 0  ;;  %s10328_s3 = scalar_lea.vmem %s441_s17, 512 }
  0xdf   : > { %p10329_p3 = scmp.ne.s32.totalorder %s441_s17, %s10328_s3  ;;  %p10336_p8 = scmp.lt.s32.totalorder %s441_s17, %s441_s17 }
  0xe0   : > { %9290 = dma.hbm_to_vmem [thread:$0]  (!%p12404_p4), %s12336_s8, 128, %s419_s13, [#allocation10]  }
  0xe1   : > { %p10331_p6 = pnand %p10329_p3, %p12403_p10  ;;  %p10337_p12 = scmp.lt.s32.totalorder %s10328_s3, %s10328_s3 }
  0xe3   : > { %p10332_p11 = pneg %p10331_p6  ;;  %p10338_p9 = por %p10337_p12, %p10336_p8 }
  0xe5   : > { %p10339_p7 = pnand %p10338_p9, %p10332_p11 }
  0xe7   : > { %10342 = shalt.err (!%p10339_p7)
}
  0xe8   : > { %9296 = dma.hbm_to_vmem [thread:$0]  (!%p12404_p4), %s12338_s10, 512, %s441_s17, [#allocation19]  }
  0xe9   : > { %s10499_s23 = smov [#allocation23]   ;;  %s12405_s16 = sshll.u32 %s10479_s18, 15 }
  0xea   : > { %s462_s21 = sshll.u32 %s10499_s23, 4  ;;  %s10853_s1 = scalar_lea.hbm %s12335_s7, %s12405_s16  ;;  %s463_s21 = int_to_ptr.vmem [resolvable:$true] %s462_s21 }
  0xeb   : > { %s10354_s13 = scalar_lea.vmem %s463_s21, 128  ;;  %p10362_p0 = scmp.lt.s32.totalorder %s463_s21, %s463_s21 }
  0xec   : > { %p10355_p9 = scmp.ne.s32.totalorder %s463_s21, %s10354_s13  ;;  %p10363_p2 = scmp.lt.s32.totalorder %s10354_s13, %s10354_s13 }
  0xee   : > { %p10357_p7 = pnand %p10355_p9, %p12403_p10  ;;  %p10364_p5 = por %p10363_p2, %p10362_p0 }
  0xf0   : > { %p10358_p13 = pneg %p10357_p7 }
  0xf2   : > { %p10365_p1 = pnand %p10364_p5, %p10358_p13 }
  0xf4   : > { %10368 = shalt.err (!%p10365_p1)
}
  0xf5   : > { %s12406_s18 = sld [smem:[#allocation46_spill]]  ;;  %s12407_s28 = sshll.u32 %s10662_s12, 11 }
  0xf6   : > { %s579_s24 = scalar_lea.vmem [#allocation16], %s12407_s28  ;;  %s10369_s26 = scalar_lea.hbm %s10853_s1, 32768 }
  0xf7   : > { %s587_s15 = sshll.u32 %s579_s24, 4  ;;  %p10370_p10 = scmp.ne.s32.totalorder %s10853_s1, %s10369_s26  ;;  %s588_s15 = int_to_ptr.vmem [resolvable:$true] %s587_s15 }
  0xf8   : > { %p12408_p3 = scmp.ne.s32.totalorder %s12395_s19, 0  ;;  %s10374_s25 = scalar_lea.hbm %s12335_s7, 131072 }
  0xf9   : > { %p10375_p8 = scmp.lt.s32.totalorder %s10853_s1, %s12335_s7  ;;  %p10376_p12 = scmp.lt.s32.totalorder %s10374_s25, %s10369_s26 }
  0xfa   : > { %p10372_p6 = pnand %p10370_p10, %p12408_p3 }
  0xfb   : > { %9302 = dma.hbm_to_vmem [thread:$0]  (!%p12404_p4), %s12406_s18, 128, %s463_s21, [#allocation22]  }
  0xfc   : > { %p10373_p11 = pneg %p10372_p6  ;;  %p10377_p9 = por %p10376_p12, %p10375_p8 }
  0xfe   : > { %p10378_p4 = pnand %p10377_p9, %p10373_p11 }
 0x100   : > { %10381 = shalt.err (!%p10378_p4)
}
 0x101   : > { %s10382_s12 = scalar_lea.vmem %s588_s15, 32768  ;;  %s10500_s21 = smov [#allocation16]  }
 0x102   : > { %p10383_p7 = scmp.ne.s32.totalorder %s588_s15, %s10382_s12  ;;  %s10387_s16 = sshll.u32 %s10500_s21, 4  ;;  %s10388_s16 = int_to_ptr.vmem [resolvable:$false] %s10387_s16 }
 0x103   : > { %s10389_s14 = scalar_lea.vmem %s10388_s16, 65536  ;;  %p10390_p2 = scmp.lt.s32.totalorder %s588_s15, %s10388_s16 }
 0x104   : > { %p10385_p13 = pnand %p10383_p7, %p12408_p3  ;;  %p10391_p5 = scmp.lt.s32.totalorder %s10389_s14, %s10382_s12 }
 0x106   : > { %p10386_p0 = pneg %p10385_p13  ;;  %p10392_p1 = por %p10391_p5, %p10390_p2 }
 0x108   : > { %p10393_p10 = pnand %p10392_p1, %p10386_p0 }
 0x10a   : > { %10396 = shalt.err (!%p10393_p10)
}
 0x10b   : > { %p12409_p6 = scmp.ne.s32.totalorder %s12394_s27, 0  ;;  %s12410_s29 = smov 64  }
 0x10c   : > { %s12411_s13 = smov 1024   ;;  %s12412_s19 = sld [smem:[#allocation34_spill]] }
 0x10d   : > { %9321 = dma.hbm_to_vmem [thread:$0]  (!%p12409_p6), %s10853_s1, 32768, %s588_s15, %s10683_s30, %s12411_s13, %s12411_s13, %s12410_s29  }
 0x112   : > { %p12413_p3 = scmp.ne.s32.totalorder %s12412_s19, 0 }
 0x114   : > { %599 = sbr.rel (%p12413_p3) target bundleno = 2662 (0xa66), region = 76 }
 0x119   : > { %p12414_p11 = scmp.eq.s32.totalorder %s10605_s20, 0 }
 0x11b   : > { %10438 = dma.done.wait (%p12414_p11), [#allocation7], 8192   ;;  %p12415_p8 = pmov %p12414_p11 }
 0x11d   : > { %10440 = vsyncadd (%p12415_p8), [#allocation7], 4294959104  ;;  %p12416_p12 = pmov %p12415_p8 }
 0x11e   : > { %p12417_p9 = pmov %p12415_p8 }
 0x11f   : > { %10442 = dma.done.wait (%p12416_p12), [#allocation10], 512  }
 0x120   : > { %10444 = vsyncadd (%p12417_p9), [#allocation10], 4294966784  ;;  %s12418_s27 = sld [smem:[#allocation32_spill]]  ;;  %s609_s17 = sand.u32 1, %s10605_s20  }
 0x121   : > { %s12419_s0 = sld [smem:[#allocation37_spill]]  ;;  %s610_s18 = scalar_lea.sflag [#allocation7], %s609_s17 }
 0x126   : > { %s611_s30 = sand.u32 1, %s12418_s27  }
 0x127   : > { %s8553_s1 = sshll.u32 %s611_s30, 3  ;;  %p12420_p4 = scmp.ne.s32.totalorder %s12419_s0, 0 }
 0x128   : > { %s10896_s28 = scalar_lea.vmem [#allocation11], %s8553_s1 }
 0x129   : > { %10446 = dma.done.wait (%p12420_p4), %s610_s18, 82144  }
 0x12a   : > { %10448 = vsyncadd (%p12420_p4), %s610_s18, 4294885152  ;;  %s8554_s24 = sshll.u32 %s611_s30, 11  ;;  %s8555_s15 = sshll.u32 %s611_s30, 2 }
 0x12b   : > { %s8556_s26 = sshll.u32 %s611_s30, 10  ;;  %s8557_s3 = sshll.u32 %s611_s30, 1 }
 0x12c   : > { %s10902_s22 = scalar_lea.vmem [#allocation12], %s8554_s24  ;;  %s10904_s25 = scalar_lea.vmem [#allocation13], %s8555_s15 }
 0x12d   : > { %s10906_s2 = scalar_lea.vmem [#allocation14], %s8556_s26  ;;  %s10908_s23 = scalar_lea.vmem [#allocation15], %s8557_s3 }
 0x12e   : > { %s10910_s12 = scalar_lea.vmem [#allocation16], %s8554_s24  ;;  %p12421_p7 = pmov %p12415_p8 }
 0x130   : > { %10450 = dma.done.wait (%p12421_p7), [#allocation10], 128   ;;  %p12422_p13 = pmov %p12421_p7 }
 0x131   : > { %p12423_p0 = pmov %p12421_p7 }
 0x132   : > { %10452 = vsyncadd (%p12422_p13), [#allocation10], 4294967168 }
 0x133   : > { %10454 = dma.done.wait (%p12423_p0), [#allocation19], 640   ;;  %p12424_p2 = pmov %p12423_p0 }
 0x134   : > { %p12425_p5 = pmov %p12423_p0 }
 0x135   : > { %10456 = vsyncadd (%p12424_p2), [#allocation19], 4294966656 }
 0x136   : > { %10458 = dma.done.wait (%p12425_p5), [#allocation22], 640   ;;  %p12426_p1 = pmov %p12423_p0 }
 0x137   : > { %p12427_p10 = scmp.ne.s32.totalorder %s10605_s20, 0 }
 0x138   : > { %10460 = vsyncadd (%p12426_p1), [#allocation22], 4294966656 }
 0x139   : > { %750 = sbr.rel (%p12427_p10) target bundleno = 354 (0x162), region = 132 }
 0x13e   : > { %vm751_vm0 = vcmask 125952   ;;  %v10501_v1 = vmov 0.0  }
 0x13f   : > { %752 = vst.msk [vmem:[#allocation2] sm:$0xf] %vm751_vm0, %v10501_v1  ;;  %753 = vst [vmem:[#allocation3 + $0x10] sm:$0xff] %v10501_v1 }
 0x140   : > { %754 = vst [vmem:[#allocation3] sm:$0xff] %v10501_v1  ;;  %755 = vst [vmem:[#allocation3 + $0x18] sm:$0xff] %v10501_v1 }
 0x141   : > { %756 = vst [vmem:[#allocation3 + $0x8] sm:$0xff] %v10501_v1  ;;  %757 = vst [vmem:[#allocation4] sm:$0xff] %v10501_v1 }
 0x142   : > { %758 = vst [vmem:[#allocation4 + $0x38] sm:$0xff] %v10501_v1  ;;  %759 = vst [vmem:[#allocation4 + $0x1f8] sm:$0xff] %v10501_v1 }
 0x143   : > { %760 = vst [vmem:[#allocation4 + $0x158] sm:$0xff] %v10501_v1  ;;  %761 = vst [vmem:[#allocation4 + $0x120] sm:$0xff] %v10501_v1 }
 0x144   : > { %762 = vst [vmem:[#allocation4 + $0x8] sm:$0xff] %v10501_v1  ;;  %763 = vst [vmem:[#allocation4 + $0x170] sm:$0xff] %v10501_v1 }
 0x145   : > { %764 = vst [vmem:[#allocation4 + $0x100] sm:$0xff] %v10501_v1  ;;  %765 = vst [vmem:[#allocation4 + $0x108] sm:$0xff] %v10501_v1 }
 0x146   : > { %766 = vst [vmem:[#allocation4 + $0x88] sm:$0xff] %v10501_v1  ;;  %767 = vst [vmem:[#allocation4 + $0x110] sm:$0xff] %v10501_v1 }
 0x147   : > { %768 = vst [vmem:[#allocation4 + $0x140] sm:$0xff] %v10501_v1  ;;  %769 = vst [vmem:[#allocation4 + $0xf8] sm:$0xff] %v10501_v1 }
 0x148   : > { %770 = vst [vmem:[#allocation4 + $0x50] sm:$0xff] %v10501_v1  ;;  %771 = vst [vmem:[#allocation4 + $0xd0] sm:$0xff] %v10501_v1 }
 0x149   : > { %772 = vst [vmem:[#allocation4 + $0x178] sm:$0xff] %v10501_v1  ;;  %773 = vst [vmem:[#allocation4 + $0x128] sm:$0xff] %v10501_v1 }
 0x14a   : > { %774 = vst [vmem:[#allocation4 + $0x130] sm:$0xff] %v10501_v1  ;;  %775 = vst [vmem:[#allocation4 + $0x70] sm:$0xff] %v10501_v1 }
 0x14b   : > { %776 = vst [vmem:[#allocation4 + $0x198] sm:$0xff] %v10501_v1  ;;  %777 = vst [vmem:[#allocation4 + $0x1a8] sm:$0xff] %v10501_v1 }
 0x14c   : > { %778 = vst [vmem:[#allocation4 + $0x18] sm:$0xff] %v10501_v1  ;;  %779 = vst [vmem:[#allocation4 + $0x1d8] sm:$0xff] %v10501_v1 }
 0x14d   : > { %780 = vst [vmem:[#allocation4 + $0xe8] sm:$0xff] %v10501_v1  ;;  %781 = vst [vmem:[#allocation4 + $0x150] sm:$0xff] %v10501_v1 }
 0x14e   : > { %782 = vst [vmem:[#allocation4 + $0x20] sm:$0xff] %v10501_v1  ;;  %783 = vst [vmem:[#allocation4 + $0x1d0] sm:$0xff] %v10501_v1 }
 0x14f   : > { %784 = vst [vmem:[#allocation4 + $0xa0] sm:$0xff] %v10501_v1  ;;  %785 = vst [vmem:[#allocation4 + $0xe0] sm:$0xff] %v10501_v1 }
 0x150   : > { %786 = vst [vmem:[#allocation4 + $0x1a0] sm:$0xff] %v10501_v1  ;;  %787 = vst [vmem:[#allocation4 + $0x138] sm:$0xff] %v10501_v1 }
 0x151   : > { %788 = vst [vmem:[#allocation4 + $0x1c0] sm:$0xff] %v10501_v1  ;;  %789 = vst [vmem:[#allocation4 + $0xf0] sm:$0xff] %v10501_v1 }
 0x152   : > { %790 = vst [vmem:[#allocation4 + $0xb8] sm:$0xff] %v10501_v1  ;;  %791 = vst [vmem:[#allocation4 + $0x30] sm:$0xff] %v10501_v1 }
 0x153   : > { %792 = vst [vmem:[#allocation4 + $0x1e8] sm:$0xff] %v10501_v1  ;;  %793 = vst [vmem:[#allocation4 + $0x10] sm:$0xff] %v10501_v1 }
 0x154   : > { %794 = vst [vmem:[#allocation4 + $0xd8] sm:$0xff] %v10501_v1  ;;  %795 = vst [vmem:[#allocation4 + $0x1f0] sm:$0xff] %v10501_v1 }
 0x155   : > { %796 = vst [vmem:[#allocation4 + $0x98] sm:$0xff] %v10501_v1  ;;  %797 = vst [vmem:[#allocation4 + $0x118] sm:$0xff] %v10501_v1 }
 0x156   : > { %798 = vst [vmem:[#allocation4 + $0x1b0] sm:$0xff] %v10501_v1  ;;  %799 = vst [vmem:[#allocation4 + $0x78] sm:$0xff] %v10501_v1 }
 0x157   : > { %800 = vst [vmem:[#allocation4 + $0x1c8] sm:$0xff] %v10501_v1  ;;  %801 = vst [vmem:[#allocation4 + $0x48] sm:$0xff] %v10501_v1 }
 0x158   : > { %802 = vst [vmem:[#allocation4 + $0x90] sm:$0xff] %v10501_v1  ;;  %803 = vst [vmem:[#allocation4 + $0xa8] sm:$0xff] %v10501_v1 }
 0x159   : > { %804 = vst [vmem:[#allocation4 + $0x160] sm:$0xff] %v10501_v1  ;;  %805 = vst [vmem:[#allocation4 + $0x180] sm:$0xff] %v10501_v1 }
 0x15a   : > { %806 = vst [vmem:[#allocation4 + $0xc8] sm:$0xff] %v10501_v1  ;;  %807 = vst [vmem:[#allocation4 + $0x80] sm:$0xff] %v10501_v1 }
 0x15b   : > { %808 = vst [vmem:[#allocation4 + $0x68] sm:$0xff] %v10501_v1  ;;  %809 = vst [vmem:[#allocation4 + $0xb0] sm:$0xff] %v10501_v1 }
 0x15c   : > { %810 = vst [vmem:[#allocation4 + $0x168] sm:$0xff] %v10501_v1  ;;  %811 = vst [vmem:[#allocation4 + $0x1b8] sm:$0xff] %v10501_v1 }
 0x15d   : > { %812 = vst [vmem:[#allocation4 + $0x190] sm:$0xff] %v10501_v1  ;;  %813 = vst [vmem:[#allocation4 + $0x28] sm:$0xff] %v10501_v1 }
 0x15e   : > { %814 = vst [vmem:[#allocation4 + $0xc0] sm:$0xff] %v10501_v1  ;;  %815 = vst [vmem:[#allocation4 + $0x58] sm:$0xff] %v10501_v1 }
 0x15f   : > { %816 = vst [vmem:[#allocation4 + $0x60] sm:$0xff] %v10501_v1  ;;  %817 = vst [vmem:[#allocation4 + $0x188] sm:$0xff] %v10501_v1 }
 0x160   : > { %818 = vst [vmem:[#allocation4 + $0x148] sm:$0xff] %v10501_v1  ;;  %819 = vst [vmem:[#allocation4 + $0x40] sm:$0xff] %v10501_v1 }
 0x161   : > { %820 = vst [vmem:[#allocation4 + $0x1e0] sm:$0xff] %v10501_v1 }
 0x162 PF: > { %v9390_v2 = vld [vmem:[%s10902_s22 + $0xe4] ss:$16 sps:$4 sm:$0xff]   ;;  %v9394_v4 = vld [vmem:[%s10902_s22 + $0xe0] ss:$16 sps:$4 sm:$0xff]   ;;  %v822_v48 = vld [vmem:[#allocation6 + $0x8] sm:$0xff]  ;;  %vm4420_vm1 = vcmask 1041409  }
 0x163   : > { %v9392_v3 = vld [vmem:[%s10902_s22 + $0x2e4] ss:$16 sps:$4 sm:$0xff]   ;;  %2505 = vmatprep.subr.bf16.mxu0 %v9390_v2  ;;  %v9395_v5 = vld [vmem:[%s10902_s22 + $0x2e0] ss:$16 sps:$4 sm:$0xff]   ;;  %v830_v49 = vld [vmem:[#allocation6 + $0x48] sm:$0xff]  ;;  %vm4423_vm2 = vcmask 1042434  }
 0x164   : > { %2578 = vmatprep.subr.bf16.mxu1 %v9392_v3  ;;  %v9396_v6 = vld [vmem:[%s10902_s22 + $0xc4] ss:$16 sps:$4 sm:$0xff]   ;;  %2506 = vmatpush1.bf16.msra.mxu0 %v9394_v4  ;;  %v9400_v8 = vld [vmem:[%s10902_s22 + $0xc0] ss:$16 sps:$4 sm:$0xff]   ;;  %v824_v50 = vld [vmem:[#allocation6 + $0x18] sm:$0xff]  ;;  %v11044_v55 = vpack.c.bf16 %v830_v49, %v822_v48  ;;  %vm4426_vm3 = vcmask 1043459  }
 0x165   : > { %2579 = vmatpush1.bf16.msra.mxu1 %v9395_v5  ;;  %v9398_v7 = vld [vmem:[%s10902_s22 + $0x2c4] ss:$16 sps:$4 sm:$0xff]   ;;  %2507 = vmatprep.subr.bf16.mxu0 %v9396_v6  ;;  %v9401_v9 = vld [vmem:[%s10902_s22 + $0x2c0] ss:$16 sps:$4 sm:$0xff]   ;;  %v832_v51 = vld [vmem:[#allocation6 + $0x58] sm:$0xff]  ;;  %vm4430_vm4 = vcmask 125952  }
 0x166   : > { %2580 = vmatprep.subr.bf16.mxu1 %v9398_v7  ;;  %v9402_v10 = vld [vmem:[%s10902_s22 + $0xa4] ss:$16 sps:$4 sm:$0xff]   ;;  %v9406_v12 = vld [vmem:[%s10902_s22 + $0xa0] ss:$16 sps:$4 sm:$0xff]   ;;  %v11046_v56 = vpack.c.bf16 %v832_v51, %v824_v50  ;;  %2537 = vmatprep.mubr.bf16.mxu0 %v11044_v55  ;;  %v856_v49 = vld [vmem:[#allocation6 + $0x118] sm:$0xff]  ;;  %p9205_p6 = scmp.ne.s32.totalorder %s10605_s20, 3 }
 0x167   : > { %v9404_v11 = vld [vmem:[%s10902_s22 + $0x2a4] ss:$16 sps:$4 sm:$0xff]   ;;  %v9407_v13 = vld [vmem:[%s10902_s22 + $0x2a0] ss:$16 sps:$4 sm:$0xff]   ;;  %v864_v51 = vld [vmem:[#allocation6 + $0x158] sm:$0xff] }
 0x168   : > { %2508 = vmatpush1.bf16.msra.mxu0 %v9400_v8  ;;  %v9408_v14 = vld [vmem:[%s10902_s22 + $0x84] ss:$16 sps:$4 sm:$0xff]   ;;  %v9412_v16 = vld [vmem:[%s10902_s22 + $0x80] ss:$16 sps:$4 sm:$0xff]   ;;  %2610 = vmatprep.mubr.bf16.mxu1 %v11046_v56 }
 0x169   : > { %2581 = vmatpush1.bf16.msra.mxu1 %v9401_v9  ;;  %2509 = vmatprep.subr.bf16.mxu0 %v9402_v10  ;;  %v9410_v15 = vld [vmem:[%s10902_s22 + $0x284] ss:$16 sps:$4 sm:$0xff]   ;;  %v9413_v17 = vld [vmem:[%s10902_s22 + $0x280] ss:$16 sps:$4 sm:$0xff]  }
 0x16a   : > { %2582 = vmatprep.subr.bf16.mxu1 %v9404_v11  ;;  %v9414_v18 = vld [vmem:[%s10902_s22 + $0x64] ss:$16 sps:$4 sm:$0xff]   ;;  %v9418_v20 = vld [vmem:[%s10902_s22 + $0x60] ss:$16 sps:$4 sm:$0xff]  }
 0x16b   : > { %v9416_v19 = vld [vmem:[%s10902_s22 + $0x264] ss:$16 sps:$4 sm:$0xff]   ;;  %v9419_v21 = vld [vmem:[%s10902_s22 + $0x260] ss:$16 sps:$4 sm:$0xff]  }
 0x16c   : > { %2510 = vmatpush1.bf16.msra.mxu0 %v9406_v12  ;;  %v9420_v22 = vld [vmem:[%s10902_s22 + $0x44] ss:$16 sps:$4 sm:$0xff]   ;;  %v9424_v24 = vld [vmem:[%s10902_s22 + $0x40] ss:$16 sps:$4 sm:$0xff]  }
 0x16d   : > { %2583 = vmatpush1.bf16.msra.mxu1 %v9407_v13  ;;  %2511 = vmatprep.subr.bf16.mxu0 %v9408_v14  ;;  %v9422_v23 = vld [vmem:[%s10902_s22 + $0x244] ss:$16 sps:$4 sm:$0xff]   ;;  %v9425_v25 = vld [vmem:[%s10902_s22 + $0x240] ss:$16 sps:$4 sm:$0xff]  }
 0x16e   : > { %2584 = vmatprep.subr.bf16.mxu1 %v9410_v15  ;;  %v9426_v26 = vld [vmem:[%s10902_s22 + $0x24] ss:$16 sps:$4 sm:$0xff]   ;;  %v9430_v28 = vld [vmem:[%s10902_s22 + $0x20] ss:$16 sps:$4 sm:$0xff]  }
 0x16f   : > { %v9428_v27 = vld [vmem:[%s10902_s22 + $0x224] ss:$16 sps:$4 sm:$0xff]   ;;  %v9431_v29 = vld [vmem:[%s10902_s22 + $0x220] ss:$16 sps:$4 sm:$0xff]  }
 0x170   : > { %2512 = vmatpush1.bf16.msra.mxu0 %v9412_v16  ;;  %v9432_v30 = vld [vmem:[%s10902_s22 + $0x4] ss:$16 sps:$4 sm:$0xff]   ;;  %v9436_v32 = vld [vmem:[%s10902_s22] ss:$16 sps:$4 sm:$0xff]  }
 0x171   : > { %2585 = vmatpush1.bf16.msra.mxu1 %v9413_v17  ;;  %2513 = vmatprep.subr.bf16.mxu0 %v9414_v18  ;;  %v9434_v31 = vld [vmem:[%s10902_s22 + $0x204] ss:$16 sps:$4 sm:$0xff]   ;;  %v9437_v33 = vld [vmem:[%s10902_s22 + $0x200] ss:$16 sps:$4 sm:$0xff]  }
 0x172   : > { %2586 = vmatprep.subr.bf16.mxu1 %v9416_v19  ;;  %v9438_v34 = vld [vmem:[%s10902_s22 + $0x1e4] ss:$16 sps:$4 sm:$0xff]   ;;  %v9442_v36 = vld [vmem:[%s10902_s22 + $0x1e0] ss:$16 sps:$4 sm:$0xff]  }
 0x173   : > { %v9440_v35 = vld [vmem:[%s10902_s22 + $0x3e4] ss:$16 sps:$4 sm:$0xff]   ;;  %v9443_v37 = vld [vmem:[%s10902_s22 + $0x3e0] ss:$16 sps:$4 sm:$0xff]  }
 0x174   : > { %2514 = vmatpush1.bf16.msra.mxu0 %v9418_v20  ;;  %v9444_v38 = vld [vmem:[%s10902_s22 + $0x1c4] ss:$16 sps:$4 sm:$0xff]   ;;  %v9448_v40 = vld [vmem:[%s10902_s22 + $0x1c0] ss:$16 sps:$4 sm:$0xff]  }
 0x175   : > { %2587 = vmatpush1.bf16.msra.mxu1 %v9419_v21  ;;  %2515 = vmatprep.subr.bf16.mxu0 %v9420_v22  ;;  %v9446_v39 = vld [vmem:[%s10902_s22 + $0x3c4] ss:$16 sps:$4 sm:$0xff]   ;;  %v9449_v41 = vld [vmem:[%s10902_s22 + $0x3c0] ss:$16 sps:$4 sm:$0xff]  }
 0x176   : > { %2588 = vmatprep.subr.bf16.mxu1 %v9422_v23  ;;  %v9450_v42 = vld [vmem:[%s10902_s22 + $0x1a4] ss:$16 sps:$4 sm:$0xff]   ;;  %v9454_v44 = vld [vmem:[%s10902_s22 + $0x1a0] ss:$16 sps:$4 sm:$0xff]  }
 0x177   : > { %v9452_v43 = vld [vmem:[%s10902_s22 + $0x3a4] ss:$16 sps:$4 sm:$0xff]   ;;  %v9455_v45 = vld [vmem:[%s10902_s22 + $0x3a0] ss:$16 sps:$4 sm:$0xff]  }
 0x178   : > { %2516 = vmatpush1.bf16.msra.mxu0 %v9424_v24  ;;  %v9456_v46 = vld [vmem:[%s10902_s22 + $0x184] ss:$16 sps:$4 sm:$0xff]   ;;  %v9460_v52 = vld [vmem:[%s10902_s22 + $0x180] ss:$16 sps:$4 sm:$0xff]   ;;  %v838_v24 = vld [vmem:[#allocation6 + $0x88] sm:$0xff] }
 0x179   : > { %2589 = vmatpush1.bf16.msra.mxu1 %v9425_v25  ;;  %2517 = vmatprep.subr.bf16.mxu0 %v9426_v26  ;;  %v9458_v47 = vld [vmem:[%s10902_s22 + $0x384] ss:$16 sps:$4 sm:$0xff]   ;;  %v9461_v53 = vld [vmem:[%s10902_s22 + $0x380] ss:$16 sps:$4 sm:$0xff]   ;;  %v846_v25 = vld [vmem:[#allocation6 + $0xc8] sm:$0xff] }
 0x17a   : > { %2590 = vmatprep.subr.bf16.mxu1 %v9428_v27  ;;  %v9462_v54 = vld [vmem:[%s10902_s22 + $0x164] ss:$16 sps:$4 sm:$0xff]   ;;  %v9466_v58 = vld [vmem:[%s10902_s22 + $0x160] ss:$16 sps:$4 sm:$0xff]   ;;  %v11081_v26 = vpack.c.bf16 %v846_v25, %v838_v24 }
 0x17b   : > { %v9464_v57 = vld [vmem:[%s10902_s22 + $0x364] ss:$16 sps:$4 sm:$0xff]   ;;  %v9467_v59 = vld [vmem:[%s10902_s22 + $0x360] ss:$16 sps:$4 sm:$0xff]  }
 0x17c   : > { %2518 = vmatpush1.bf16.msra.mxu0 %v9430_v28  ;;  %v9468_v60 = vld [vmem:[%s10902_s22 + $0x144] ss:$16 sps:$4 sm:$0xff]   ;;  %v9472_v62 = vld [vmem:[%s10902_s22 + $0x140] ss:$16 sps:$4 sm:$0xff]  }
 0x17d   : > { %2591 = vmatpush1.bf16.msra.mxu1 %v9431_v29  ;;  %2519 = vmatprep.subr.bf16.mxu0 %v9432_v30  ;;  %v9470_v61 = vld [vmem:[%s10902_s22 + $0x344] ss:$16 sps:$4 sm:$0xff]   ;;  %v9473_v63 = vld [vmem:[%s10902_s22 + $0x340] ss:$16 sps:$4 sm:$0xff]   ;;  %v840_v29 = vld [vmem:[#allocation6 + $0x98] sm:$0xff] }
 0x17e   : > { %2592 = vmatprep.subr.bf16.mxu1 %v9434_v31  ;;  %v9474_v0 = vld [vmem:[%s10902_s22 + $0x124] ss:$16 sps:$4 sm:$0xff]   ;;  %v9478_v2 = vld [vmem:[%s10902_s22 + $0x120] ss:$16 sps:$4 sm:$0xff]   ;;  %v848_v31 = vld [vmem:[#allocation6 + $0xd8] sm:$0xff] }
 0x17f   : > { %v9476_v1 = vld [vmem:[%s10902_s22 + $0x324] ss:$16 sps:$4 sm:$0xff]   ;;  %v9479_v3 = vld [vmem:[%s10902_s22 + $0x320] ss:$16 sps:$4 sm:$0xff]  }
 0x180   : > { %2520 = vmatpush1.bf16.msra.mxu0 %v9436_v32  ;;  %v9480_v4 = vld [vmem:[%s10902_s22 + $0x104] ss:$16 sps:$4 sm:$0xff]   ;;  %v9484_v6 = vld [vmem:[%s10902_s22 + $0x100] ss:$16 sps:$4 sm:$0xff]  }
 0x181   : > { %2593 = vmatpush1.bf16.msra.mxu1 %v9437_v33  ;;  %2521 = vmatprep.subr.bf16.mxu0 %v9438_v34  ;;  %v9482_v5 = vld [vmem:[%s10902_s22 + $0x304] ss:$16 sps:$4 sm:$0xff]   ;;  %v9485_v7 = vld [vmem:[%s10902_s22 + $0x300] ss:$16 sps:$4 sm:$0xff]   ;;  %v11087_v34 = vpack.c.bf16 %v848_v31, %v840_v29  ;;  %v828_v29 = vld [vmem:[#allocation6 + $0x38] sm:$0xff] }
 0x182   : > { %2594 = vmatprep.subr.bf16.mxu1 %v9440_v35  ;;  %v821_v8 = vld [vmem:[#allocation6] sm:$0xff]  ;;  %v823_v10 = vld [vmem:[#allocation6 + $0x10] sm:$0xff] }
 0x183   : > { %v829_v9 = vld [vmem:[#allocation6 + $0x40] sm:$0xff]  ;;  %v831_v11 = vld [vmem:[#allocation6 + $0x50] sm:$0xff] }
 0x184   : > { %2522 = vmatpush2.bf16.msra.mxu0 %v9442_v36  ;;  %v9488_v12 = vld [vmem:[%s10902_s22 + $0x4e4] ss:$16 sps:$4 sm:$0xff]   ;;  %v11067_v14 = vpack.c.bf16 %v829_v9, %v821_v8  ;;  %v11069_v15 = vpack.c.bf16 %v831_v11, %v823_v10  ;;  %v9486_v16 = vld [vmem:[%s10902_s22 + $0x4e0] ss:$16 sps:$4 sm:$0xff]   ;;  %v880_v9 = vld [vmem:[#allocation6 + $0x1d8] sm:$0xff] }
 0x185   : > { %2595 = vmatpush2.bf16.msra.mxu1 %v9443_v37  ;;  %2523 = vmatprep.subr.bf16.mxu0 %v9444_v38  ;;  %v9491_v13 = vld [vmem:[%s10902_s22 + $0x6e4] ss:$16 sps:$4 sm:$0xff]   ;;  %v9489_v17 = vld [vmem:[%s10902_s22 + $0x6e0] ss:$16 sps:$4 sm:$0xff]  }
 0x186   : > { %2596 = vmatprep.subr.bf16.mxu1 %v9446_v39  ;;  %v9494_v18 = vld [vmem:[%s10902_s22 + $0x4c4] ss:$16 sps:$4 sm:$0xff]   ;;  %v9492_v20 = vld [vmem:[%s10902_s22 + $0x4c0] ss:$16 sps:$4 sm:$0xff]  }
 0x187   : > { %v9497_v19 = vld [vmem:[%s10902_s22 + $0x6c4] ss:$16 sps:$4 sm:$0xff]   ;;  %v9495_v21 = vld [vmem:[%s10902_s22 + $0x6c0] ss:$16 sps:$4 sm:$0xff]  }
 0x188   : > { %2524 = vmatpush2.bf16.msra.mxu0 %v9448_v40  ;;  %v9500_v22 = vld [vmem:[%s10902_s22 + $0x4a4] ss:$16 sps:$4 sm:$0xff]   ;;  %v9498_v32 = vld [vmem:[%s10902_s22 + $0x4a0] ss:$16 sps:$4 sm:$0xff]  }
 0x189   : > { %2597 = vmatpush2.bf16.msra.mxu1 %v9449_v41  ;;  %2525 = vmatprep.subr.bf16.mxu0 %v9450_v42  ;;  %v9503_v23 = vld [vmem:[%s10902_s22 + $0x6a4] ss:$16 sps:$4 sm:$0xff]   ;;  %v9501_v33 = vld [vmem:[%s10902_s22 + $0x6a0] ss:$16 sps:$4 sm:$0xff]  }
 0x18a   : > { %2598 = vmatprep.subr.bf16.mxu1 %v9452_v43  ;;  %v837_v27 = vld [vmem:[#allocation6 + $0x80] sm:$0xff]  ;;  %v839_v37 = vld [vmem:[#allocation6 + $0x90] sm:$0xff] }
 0x18b   : > { %v845_v28 = vld [vmem:[#allocation6 + $0xc0] sm:$0xff]  ;;  %v847_v38 = vld [vmem:[#allocation6 + $0xd0] sm:$0xff] }
 0x18c   : > { %2526 = vmatpush2.bf16.msra.mxu0 %v9454_v44  ;;  %v11083_v30 = vpack.c.bf16 %v845_v28, %v837_v27  ;;  %v9506_v35 = vld [vmem:[%s10902_s22 + $0x484] ss:$16 sps:$4 sm:$0xff]   ;;  %v9504_v39 = vld [vmem:[%s10902_s22 + $0x480] ss:$16 sps:$4 sm:$0xff]   ;;  %v11096_v41 = vpack.c.bf16 %v847_v38, %v839_v37  ;;  %v854_v44 = vld [vmem:[#allocation6 + $0x108] sm:$0xff] }
 0x18d   : > { %2599 = vmatpush2.bf16.msra.mxu1 %v9455_v45  ;;  %2527 = vmatprep.subr.bf16.mxu0 %v9456_v46  ;;  %v9509_v36 = vld [vmem:[%s10902_s22 + $0x684] ss:$16 sps:$4 sm:$0xff]   ;;  %v9507_v40 = vld [vmem:[%s10902_s22 + $0x680] ss:$16 sps:$4 sm:$0xff]   ;;  %v862_v45 = vld [vmem:[#allocation6 + $0x148] sm:$0xff] }
 0x18e   : > { %2600 = vmatprep.subr.bf16.mxu1 %v9458_v47  ;;  %v9512_v42 = vld [vmem:[%s10902_s22 + $0x464] ss:$16 sps:$4 sm:$0xff]   ;;  %v11101_v46 = vpack.c.bf16 %v862_v45, %v854_v44  ;;  %v9522_v10 = vld [vmem:[%s10902_s22 + $0x420] ss:$16 sps:$4 sm:$0xff]   ;;  %v826_v27 = vld [vmem:[#allocation6 + $0x28] sm:$0xff] }
 0x18f   : > { %v9515_v43 = vld [vmem:[%s10902_s22 + $0x664] ss:$16 sps:$4 sm:$0xff]   ;;  %v9525_v11 = vld [vmem:[%s10902_s22 + $0x620] ss:$16 sps:$4 sm:$0xff]   ;;  %v834_v28 = vld [vmem:[#allocation6 + $0x68] sm:$0xff] }
 0x190   : > { %2528 = vmatpush2.bf16.msra.mxu0 %v9460_v52  ;;  %v853_v47 = vld [vmem:[#allocation6 + $0x100] sm:$0xff] }
 0x191   : > { %2601 = vmatpush2.bf16.msra.mxu1 %v9461_v53  ;;  %2529 = vmatprep.subr.bf16.mxu0 %v9462_v54  ;;  %v861_v48 = vld [vmem:[#allocation6 + $0x140] sm:$0xff]  ;;  %v11107_v54 = vpack.c.bf16 %v864_v51, %v856_v49 }
 0x192   : > { %2602 = vmatprep.subr.bf16.mxu1 %v9464_v57  ;;  %v11103_v50 = vpack.c.bf16 %v861_v48, %v853_v47  ;;  %v9510_v52 = vld [vmem:[%s10902_s22 + $0x460] ss:$16 sps:$4 sm:$0xff]   ;;  %v9518_v57 = vld [vmem:[%s10902_s22 + $0x444] ss:$16 sps:$4 sm:$0xff]  }
 0x193   : > { %v9513_v53 = vld [vmem:[%s10902_s22 + $0x660] ss:$16 sps:$4 sm:$0xff]   ;;  %v9542_v31 = vld [vmem:[%s10902_s22 + $0x5c4] ss:$16 sps:$4 sm:$0xff]  }
 0x194   : > { %2530 = vmatpush2.bf16.msra.mxu0 %v9466_v58  ;;  %v9521_v58 = vld [vmem:[%s10902_s22 + $0x644] ss:$16 sps:$4 sm:$0xff]   ;;  %v9534_v24 = vld [vmem:[%s10902_s22 + $0x5e0] ss:$16 sps:$4 sm:$0xff]  }
 0x195   : > { %2603 = vmatpush2.bf16.msra.mxu1 %v9467_v59  ;;  %2531 = vmatprep.subr.bf16.mxu0 %v9468_v60  ;;  %v855_v59 = vld [vmem:[#allocation6 + $0x110] sm:$0xff] }
 0x196   : > { %2604 = vmatprep.subr.bf16.mxu1 %v9470_v61  ;;  %v863_v60 = vld [vmem:[#allocation6 + $0x150] sm:$0xff] }
 0x197   : > { %v9516_v61 = vld [vmem:[%s10902_s22 + $0x440] ss:$16 sps:$4 sm:$0xff]   ;;  %v9554_v44 = vld [vmem:[%s10902_s22 + $0x584] ss:$16 sps:$4 sm:$0xff]  }
 0x198   : > { %2532 = vmatpush2.bf16.msra.mxu0 %v9472_v62  ;;  %v9519_v62 = vld [vmem:[%s10902_s22 + $0x640] ss:$16 sps:$4 sm:$0xff]   ;;  %v9557_v45 = vld [vmem:[%s10902_s22 + $0x784] ss:$16 sps:$4 sm:$0xff]  }
 0x199   : > { %2605 = vmatpush2.bf16.msra.mxu1 %v9473_v63  ;;  %2533 = vmatprep.subr.bf16.mxu0 %v9474_v0  ;;  %v11116_v63 = vpack.c.bf16 %v863_v60, %v855_v59  ;;  %v9524_v0 = vld [vmem:[%s10902_s22 + $0x424] ss:$16 sps:$4 sm:$0xff]   ;;  %v9537_v25 = vld [vmem:[%s10902_s22 + $0x7e0] ss:$16 sps:$4 sm:$0xff]  }
 0x19a   : > { %2606 = vmatprep.subr.bf16.mxu1 %v9476_v1  ;;  %v9527_v1 = vld [vmem:[%s10902_s22 + $0x624] ss:$16 sps:$4 sm:$0xff]   ;;  %v9540_v37 = vld [vmem:[%s10902_s22 + $0x5c0] ss:$16 sps:$4 sm:$0xff]  }
 0x19b   : > { %v9543_v38 = vld [vmem:[%s10902_s22 + $0x7c0] ss:$16 sps:$4 sm:$0xff]   ;;  %v9560_v49 = vld [vmem:[%s10902_s22 + $0x564] ss:$16 sps:$4 sm:$0xff]  }
 0x19c   : > { %2534 = vmatpush2.bf16.msra.mxu0 %v9478_v2  ;;  %v870_v2 = vld [vmem:[#allocation6 + $0x188] sm:$0xff]  ;;  %v9552_v47 = vld [vmem:[%s10902_s22 + $0x580] ss:$16 sps:$4 sm:$0xff]   ;;  %v9563_v51 = vld [vmem:[%s10902_s22 + $0x764] ss:$16 sps:$4 sm:$0xff]  }
 0x19d   : > { %2607 = vmatpush2.bf16.msra.mxu1 %v9479_v3  ;;  %2535 = vmatprep.subr.bf16.mxu0 %v9480_v4  ;;  %v878_v3 = vld [vmem:[#allocation6 + $0x1c8] sm:$0xff]  ;;  %v9555_v48 = vld [vmem:[%s10902_s22 + $0x780] ss:$16 sps:$4 sm:$0xff]  }
 0x19e   : > { %2608 = vmatprep.subr.bf16.mxu1 %v9482_v5  ;;  %v11121_v4 = vpack.c.bf16 %v878_v3, %v870_v2  ;;  %v869_v5 = vld [vmem:[#allocation6 + $0x180] sm:$0xff] }
 0x19f   : > { %v9564_v59 = vld [vmem:[%s10902_s22 + $0x540] ss:$16 sps:$4 sm:$0xff]   ;;  %v9578_v2 = vld [vmem:[%s10902_s22 + $0x504] ss:$16 sps:$4 sm:$0xff]  }
 0x1a0   : > { %2536 = vmatpush2.bf16.msra.mxu0 %v9484_v6  ;;  %v877_v6 = vld [vmem:[#allocation6 + $0x1c0] sm:$0xff] }
 0x1a1   : > { %2609 = vmatpush2.bf16.msra.mxu1 %v9485_v7  ;;  %2651 = vmatprep.subr.bf16.mxu0 %v9488_v12  ;;  %v872_v7 = vld [vmem:[#allocation6 + $0x198] sm:$0xff]  ;;  %v11123_v8 = vpack.c.bf16 %v877_v6, %v869_v5  ;;  %v9567_v60 = vld [vmem:[%s10902_s22 + $0x740] ss:$16 sps:$4 sm:$0xff]   ;;  %v9581_v3 = vld [vmem:[%s10902_s22 + $0x704] ss:$16 sps:$4 sm:$0xff]  }
 0x1a2   : > { %2724 = vmatprep.subr.bf16.mxu1 %v9491_v13  ;;  %v11127_v12 = vpack.c.bf16 %v880_v9, %v872_v7  ;;  %v9530_v13 = vld [vmem:[%s10902_s22 + $0x404] ss:$16 sps:$4 sm:$0xff]   ;;  %v9576_v5 = vld [vmem:[%s10902_s22 + $0x500] ss:$16 sps:$4 sm:$0xff]  }
 0x1a3   : > { %2538 = vmatmul.mubr.bf16.vlgmr.msra.gmra.mxu0 %v11067_v14  ;;  %v9579_v6 = vld [vmem:[%s10902_s22 + $0x700] ss:$16 sps:$4 sm:$0xff]  }
 0x1a4   : > { %2611 = vmatmul.mubr.bf16.vlgmr.msra.gmra.mxu1 %v11069_v15  ;;  %2652 = vmatpush1.bf16.msra.mxu0 %v9486_v16  ;;  %v9533_v16 = vld [vmem:[%s10902_s22 + $0x604] ss:$16 sps:$4 sm:$0xff]  }
 0x1a5   : > { %2725 = vmatpush1.bf16.msra.mxu1 %v9489_v17  ;;  %2653 = vmatprep.subr.bf16.mxu0 %v9494_v18  ;;  %v871_v17 = vld [vmem:[#allocation6 + $0x190] sm:$0xff]  ;;  %v825_v7 = vld [vmem:[#allocation6 + $0x20] sm:$0xff] }
 0x1a6   : > { %2726 = vmatprep.subr.bf16.mxu1 %v9497_v19  ;;  %2547 = vmatprep.mubr.bf16.mxu0 %v11081_v26  ;;  %v879_v18 = vld [vmem:[#allocation6 + $0x1d0] sm:$0xff]  ;;  %v833_v9 = vld [vmem:[#allocation6 + $0x60] sm:$0xff] }
 0x1a7   : > { %2620 = vmatprep.mubr.bf16.mxu1 %v11087_v34  ;;  %v9528_v19 = vld [vmem:[%s10902_s22 + $0x400] ss:$16 sps:$4 sm:$0xff]  }
 0x1a8   : > { %2654 = vmatpush1.bf16.msra.mxu0 %v9492_v20  ;;  %v9531_v20 = vld [vmem:[%s10902_s22 + $0x600] ss:$16 sps:$4 sm:$0xff]  }
 0x1a9   : > { %2727 = vmatpush1.bf16.msra.mxu1 %v9495_v21  ;;  %2655 = vmatprep.subr.bf16.mxu0 %v9500_v22  ;;  %v11136_v21 = vpack.c.bf16 %v879_v18, %v871_v17  ;;  %v9536_v22 = vld [vmem:[%s10902_s22 + $0x5e4] ss:$16 sps:$4 sm:$0xff]   ;;  %v9582_v17 = vld [vmem:[%s10902_s22 + $0xe8] ss:$16 sps:$4 sm:$0xff]  }
 0x1aa   : > { %2728 = vmatprep.subr.bf16.mxu1 %v9503_v23  ;;  %v9539_v23 = vld [vmem:[%s10902_s22 + $0x7e4] ss:$16 sps:$4 sm:$0xff]   ;;  %v9585_v18 = vld [vmem:[%s10902_s22 + $0x2e8] ss:$16 sps:$4 sm:$0xff]  }
 0x1ab   : > { %2548 = vmatmul.mubr.bf16.gmra.mxu0 %v11083_v30 }
 0x1ac   : > { %2656 = vmatpush1.bf16.msra.mxu0 %v9498_v32  ;;  %2621 = vmatmul.mubr.bf16.gmra.mxu1 %v11096_v41  ;;  %v9545_v32 = vld [vmem:[%s10902_s22 + $0x7c4] ss:$16 sps:$4 sm:$0xff]  }
 0x1ad   : > { %2729 = vmatpush1.bf16.msra.mxu1 %v9501_v33  ;;  %2657 = vmatprep.subr.bf16.mxu0 %v9506_v35  ;;  %v11145_v33 = vpack.c.bf16 %v834_v28, %v826_v27  ;;  %v836_v35 = vld [vmem:[#allocation6 + $0x78] sm:$0xff] }
 0x1ae   : > { %2730 = vmatprep.subr.bf16.mxu1 %v9509_v36  ;;  %2557 = vmatprep.mubr.bf16.mxu0 %v11101_v46  ;;  %v11147_v36 = vpack.c.bf16 %v836_v35, %v828_v29  ;;  %v9590_v27 = vld [vmem:[%s10902_s22 + $0xcc] ss:$16 sps:$4 sm:$0xff]   ;;  %v9588_v29 = vld [vmem:[%s10902_s22 + $0xc8] ss:$16 sps:$4 sm:$0xff]   ;;  %v841_v35 = vld [vmem:[#allocation6 + $0xa0] sm:$0xff] }
 0x1af   : > { %2630 = vmatprep.mubr.bf16.mxu1 %v11107_v54  ;;  %v9593_v28 = vld [vmem:[%s10902_s22 + $0x2cc] ss:$16 sps:$4 sm:$0xff]  }
 0x1b0   : > { %2658 = vmatpush1.bf16.msra.mxu0 %v9504_v39  ;;  %v9548_v39 = vld [vmem:[%s10902_s22 + $0x5a4] ss:$16 sps:$4 sm:$0xff]  }
 0x1b1   : > { %2731 = vmatpush1.bf16.msra.mxu1 %v9507_v40  ;;  %2659 = vmatprep.subr.bf16.mxu0 %v9512_v42  ;;  %v9551_v40 = vld [vmem:[%s10902_s22 + $0x7a4] ss:$16 sps:$4 sm:$0xff]   ;;  %v9546_v42 = vld [vmem:[%s10902_s22 + $0x5a0] ss:$16 sps:$4 sm:$0xff]  }
 0x1b2   : > { %2732 = vmatprep.subr.bf16.mxu1 %v9515_v43  ;;  %v9549_v43 = vld [vmem:[%s10902_s22 + $0x7a0] ss:$16 sps:$4 sm:$0xff]  }
 0x1b3   : > { %2558 = vmatmul.mubr.bf16.gmra.mxu0 %v11103_v50 }
 0x1b4   : > { %2660 = vmatpush1.bf16.msra.mxu0 %v9510_v52  ;;  %2631 = vmatmul.mubr.bf16.gmra.mxu1 %v11116_v63  ;;  %v9558_v52 = vld [vmem:[%s10902_s22 + $0x560] ss:$16 sps:$4 sm:$0xff]  }
 0x1b5   : > { %2733 = vmatpush1.bf16.msra.mxu1 %v9513_v53  ;;  %2661 = vmatprep.subr.bf16.mxu0 %v9518_v57  ;;  %v9561_v53 = vld [vmem:[%s10902_s22 + $0x760] ss:$16 sps:$4 sm:$0xff]   ;;  %v9566_v57 = vld [vmem:[%s10902_s22 + $0x544] ss:$16 sps:$4 sm:$0xff]  }
 0x1b6   : > { %2734 = vmatprep.subr.bf16.mxu1 %v9521_v58  ;;  %2567 = vmatprep.mubr.bf16.mxu0 %v11121_v4  ;;  %v9569_v58 = vld [vmem:[%s10902_s22 + $0x744] ss:$16 sps:$4 sm:$0xff]  }
 0x1b7   : > { %2640 = vmatprep.mubr.bf16.mxu1 %v11127_v12 }
 0x1b8   : > { %2662 = vmatpush1.bf16.msra.mxu0 %v9516_v61  ;;  %v9572_v61 = vld [vmem:[%s10902_s22 + $0x524] ss:$16 sps:$4 sm:$0xff]  }
 0x1b9   : > { %2735 = vmatpush1.bf16.msra.mxu1 %v9519_v62  ;;  %2663 = vmatprep.subr.bf16.mxu0 %v9524_v0  ;;  %v9575_v62 = vld [vmem:[%s10902_s22 + $0x724] ss:$16 sps:$4 sm:$0xff]   ;;  %v9570_v0 = vld [vmem:[%s10902_s22 + $0x520] ss:$16 sps:$4 sm:$0xff]  }
 0x1ba   : > { %2736 = vmatprep.subr.bf16.mxu1 %v9527_v1  ;;  %v9573_v1 = vld [vmem:[%s10902_s22 + $0x720] ss:$16 sps:$4 sm:$0xff]  }
 0x1bb   : > { %2568 = vmatmul.mubr.bf16.gmra.mxu0 %v11123_v8 }
 0x1bc   : > { %2664 = vmatpush1.bf16.msra.mxu0 %v9522_v10  ;;  %2641 = vmatmul.mubr.bf16.gmra.mxu1 %v11136_v21  ;;  %v827_v10 = vld [vmem:[#allocation6 + $0x30] sm:$0xff] }
 0x1bd   : > { %2737 = vmatpush1.bf16.msra.mxu1 %v9525_v11  ;;  %2665 = vmatprep.subr.bf16.mxu0 %v9530_v13  ;;  %v835_v11 = vld [vmem:[#allocation6 + $0x70] sm:$0xff]  ;;  %v9584_v13 = vld [vmem:[%s10902_s22 + $0xec] ss:$16 sps:$4 sm:$0xff]  }
 0x1be   : > { %2738 = vmatprep.subr.bf16.mxu1 %v9533_v16  ;;  %2683 = vmatprep.mubr.bf16.mxu0 %v11145_v33  ;;  %v9587_v16 = vld [vmem:[%s10902_s22 + $0x2ec] ss:$16 sps:$4 sm:$0xff]  }
 0x1bf   : > { %2756 = vmatprep.mubr.bf16.mxu1 %v11147_v36 }
 0x1c0   : > { %2666 = vmatpush1.bf16.msra.mxu0 %v9528_v19  ;;  %v842_v19 = vld [vmem:[#allocation6 + $0xa8] sm:$0xff] }
 0x1c1   : > { %2739 = vmatpush1.bf16.msra.mxu1 %v9531_v20  ;;  %2667 = vmatprep.subr.bf16.mxu0 %v9536_v22  ;;  %v850_v20 = vld [vmem:[#allocation6 + $0xe8] sm:$0xff]  ;;  %v11181_v22 = vpack.c.bf16 %v833_v9, %v825_v7 }
 0x1c2   : > { %2740 = vmatprep.subr.bf16.mxu1 %v9539_v23  ;;  %v11183_v23 = vpack.c.bf16 %v835_v11, %v827_v10  ;;  %v9606_v7 = vld [vmem:[%s10902_s22 + $0x68] ss:$16 sps:$4 sm:$0xff]  }
 0x1c3   : > { %v9609_v9 = vld [vmem:[%s10902_s22 + $0x268] ss:$16 sps:$4 sm:$0xff]  }
 0x1c4   : > { %2668 = vmatpush2.bf16.msra.mxu0 %v9534_v24  ;;  %v844_v24 = vld [vmem:[#allocation6 + $0xb8] sm:$0xff]  ;;  %v874_v10 = vld [vmem:[#allocation6 + $0x1a8] sm:$0xff] }
 0x1c5   : > { %2741 = vmatpush2.bf16.msra.mxu1 %v9537_v25  ;;  %2669 = vmatprep.subr.bf16.mxu0 %v9542_v31  ;;  %v852_v25 = vld [vmem:[#allocation6 + $0xf8] sm:$0xff]  ;;  %v882_v11 = vld [vmem:[#allocation6 + $0x1e8] sm:$0xff] }
 0x1c6   : > { %2742 = vmatprep.subr.bf16.mxu1 %v9545_v32  ;;  %v9591_v31 = vld [vmem:[%s10902_s22 + $0x2c8] ss:$16 sps:$4 sm:$0xff]   ;;  %v11189_v32 = vpack.c.bf16 %v850_v20, %v842_v19  ;;  %v9614_v19 = vld [vmem:[%s10902_s22 + $0x4c] ss:$16 sps:$4 sm:$0xff]  }
 0x1c7   : > { %v9617_v20 = vld [vmem:[%s10902_s22 + $0x24c] ss:$16 sps:$4 sm:$0xff]  }
 0x1c8   : > { %2670 = vmatpush2.bf16.msra.mxu0 %v9540_v37  ;;  %v849_v37 = vld [vmem:[#allocation6 + $0xe0] sm:$0xff] }
 0x1c9   : > { %2743 = vmatpush2.bf16.msra.mxu1 %v9543_v38  ;;  %2671 = vmatprep.subr.bf16.mxu0 %v9548_v39  ;;  %v11191_v38 = vpack.c.bf16 %v852_v25, %v844_v24  ;;  %v9596_v39 = vld [vmem:[%s10902_s22 + $0xac] ss:$16 sps:$4 sm:$0xff]   ;;  %v9612_v24 = vld [vmem:[%s10902_s22 + $0x48] ss:$16 sps:$4 sm:$0xff]  }
 0x1ca   : > { %2744 = vmatprep.subr.bf16.mxu1 %v9551_v40  ;;  %v843_v40 = vld [vmem:[#allocation6 + $0xb0] sm:$0xff]  ;;  %v9615_v25 = vld [vmem:[%s10902_s22 + $0x248] ss:$16 sps:$4 sm:$0xff]  }
 0x1cc   : > { %2672 = vmatpush2.bf16.msra.mxu0 %v9546_v42  ;;  %v851_v42 = vld [vmem:[#allocation6 + $0xf0] sm:$0xff] }
 0x1cd   : > { %2745 = vmatpush2.bf16.msra.mxu1 %v9549_v43  ;;  %2673 = vmatprep.subr.bf16.mxu0 %v9554_v44  ;;  %v9599_v43 = vld [vmem:[%s10902_s22 + $0x2ac] ss:$16 sps:$4 sm:$0xff]   ;;  %v9594_v44 = vld [vmem:[%s10902_s22 + $0xa8] ss:$16 sps:$4 sm:$0xff]  }
 0x1ce   : > { %2746 = vmatprep.subr.bf16.mxu1 %v9557_v45  ;;  %v9597_v45 = vld [vmem:[%s10902_s22 + $0x2a8] ss:$16 sps:$4 sm:$0xff]  }
 0x1d0   : > { %2674 = vmatpush2.bf16.msra.mxu0 %v9552_v47  ;;  %v858_v47 = vld [vmem:[#allocation6 + $0x128] sm:$0xff] }
 0x1d1   : > { %2747 = vmatpush2.bf16.msra.mxu1 %v9555_v48  ;;  %2675 = vmatprep.subr.bf16.mxu0 %v9560_v49  ;;  %v866_v48 = vld [vmem:[#allocation6 + $0x168] sm:$0xff]  ;;  %v11201_v49 = vpack.c.bf16 %v849_v37, %v841_v35  ;;  %v875_v37 = vld [vmem:[#allocation6 + $0x1b0] sm:$0xff] }
 0x1d2   : > { %2748 = vmatprep.subr.bf16.mxu1 %v9563_v51  ;;  %v11203_v51 = vpack.c.bf16 %v851_v42, %v843_v40  ;;  %v9620_v35 = vld [vmem:[%s10902_s22 + $0x2c] ss:$16 sps:$4 sm:$0xff]  }
 0x1d3   : > { %v9623_v40 = vld [vmem:[%s10902_s22 + $0x22c] ss:$16 sps:$4 sm:$0xff]  }
 0x1d4   : > { %2676 = vmatpush2.bf16.msra.mxu0 %v9558_v52  ;;  %v860_v52 = vld [vmem:[#allocation6 + $0x138] sm:$0xff] }
 0x1d5   : > { %2749 = vmatpush2.bf16.msra.mxu1 %v9561_v53  ;;  %2677 = vmatprep.subr.bf16.mxu0 %v9566_v57  ;;  %v868_v53 = vld [vmem:[#allocation6 + $0x178] sm:$0xff] }
 0x1d6   : > { %2750 = vmatprep.subr.bf16.mxu1 %v9569_v58  ;;  %v9602_v57 = vld [vmem:[%s10902_s22 + $0x8c] ss:$16 sps:$4 sm:$0xff]  }
 0x1d7   : > { %v9605_v58 = vld [vmem:[%s10902_s22 + $0x28c] ss:$16 sps:$4 sm:$0xff]  }
 0x1d8   : > { %2678 = vmatpush2.bf16.msra.mxu0 %v9564_v59  ;;  %v9600_v59 = vld [vmem:[%s10902_s22 + $0x88] ss:$16 sps:$4 sm:$0xff]  }
 0x1d9   : > { %2751 = vmatpush2.bf16.msra.mxu1 %v9567_v60  ;;  %2679 = vmatprep.subr.bf16.mxu0 %v9572_v61  ;;  %v9603_v60 = vld [vmem:[%s10902_s22 + $0x288] ss:$16 sps:$4 sm:$0xff]   ;;  %v11209_v61 = vpack.c.bf16 %v866_v48, %v858_v47  ;;  %v9626_v47 = vld [vmem:[%s10902_s22 + $0xc] ss:$16 sps:$4 sm:$0xff]  }
 0x1da   : > { %2752 = vmatprep.subr.bf16.mxu1 %v9575_v62  ;;  %v857_v62 = vld [vmem:[#allocation6 + $0x120] sm:$0xff]  ;;  %v9629_v48 = vld [vmem:[%s10902_s22 + $0x20c] ss:$16 sps:$4 sm:$0xff]  }
 0x1dc   : > { %2680 = vmatpush2.bf16.msra.mxu0 %v9570_v0  ;;  %v865_v0 = vld [vmem:[#allocation6 + $0x160] sm:$0xff] }
 0x1dd   : > { %2753 = vmatpush2.bf16.msra.mxu1 %v9573_v1  ;;  %2681 = vmatprep.subr.bf16.mxu0 %v9578_v2  ;;  %v11211_v1 = vpack.c.bf16 %v868_v53, %v860_v52  ;;  %v9608_v2 = vld [vmem:[%s10902_s22 + $0x6c] ss:$16 sps:$4 sm:$0xff]   ;;  %v9624_v52 = vld [vmem:[%s10902_s22 + $0x8] ss:$16 sps:$4 sm:$0xff]  }
 0x1de   : > { %2754 = vmatprep.subr.bf16.mxu1 %v9581_v3  ;;  %v859_v3 = vld [vmem:[#allocation6 + $0x130] sm:$0xff]  ;;  %v9627_v53 = vld [vmem:[%s10902_s22 + $0x208] ss:$16 sps:$4 sm:$0xff]  }
 0x1e0   : > { %2682 = vmatpush2.bf16.msra.mxu0 %v9576_v5  ;;  %v867_v5 = vld [vmem:[#allocation6 + $0x170] sm:$0xff] }
 0x1e1   : > { %2755 = vmatpush2.bf16.msra.mxu1 %v9579_v6  ;;  %2797 = vmatprep.subr.bf16.mxu0 %v9584_v13  ;;  %v9611_v6 = vld [vmem:[%s10902_s22 + $0x26c] ss:$16 sps:$4 sm:$0xff]   ;;  %v11221_v13 = vpack.c.bf16 %v865_v0, %v857_v62 }
 0x1e2   : > { %2870 = vmatprep.subr.bf16.mxu1 %v9587_v16  ;;  %v11223_v16 = vpack.c.bf16 %v867_v5, %v859_v3  ;;  %v9638_v62 = vld [vmem:[%s10902_s22 + $0x1cc] ss:$16 sps:$4 sm:$0xff]   ;;  %v9639_v3 = vld [vmem:[%s10902_s22 + $0x3c8] ss:$16 sps:$4 sm:$0xff]  }
 0x1e3   : > { %2684 = vmatmul.mubr.bf16.vlgmr.msra.gmra.mxu0 %v11181_v22  ;;  %v9641_v0 = vld [vmem:[%s10902_s22 + $0x3cc] ss:$16 sps:$4 sm:$0xff]   ;;  %v9642_v5 = vld [vmem:[%s10902_s22 + $0x1a8] ss:$16 sps:$4 sm:$0xff]  }
 0x1e4   : > { %2757 = vmatmul.mubr.bf16.vlgmr.msra.gmra.mxu1 %v11183_v23  ;;  %2798 = vmatpush1.bf16.msra.mxu0 %v9582_v17  ;;  %v876_v17 = vld [vmem:[#allocation6 + $0x1b8] sm:$0xff] }
 0x1e5   : > { %2871 = vmatpush1.bf16.msra.mxu1 %v9585_v18  ;;  %2799 = vmatprep.subr.bf16.mxu0 %v9590_v27  ;;  %v884_v18 = vld [vmem:[#allocation6 + $0x1f8] sm:$0xff]  ;;  %v11229_v27 = vpack.c.bf16 %v882_v11, %v874_v10 }
 0x1e6   : > { %2872 = vmatprep.subr.bf16.mxu1 %v9593_v28  ;;  %2693 = vmatprep.mubr.bf16.mxu0 %v11189_v32  ;;  %v873_v28 = vld [vmem:[#allocation6 + $0x1a0] sm:$0xff]  ;;  %v9648_v10 = vld [vmem:[%s10902_s22 + $0x188] ss:$16 sps:$4 sm:$0xff]  }
 0x1e7   : > { %2766 = vmatprep.mubr.bf16.mxu1 %v11191_v38  ;;  %v9651_v11 = vld [vmem:[%s10902_s22 + $0x388] ss:$16 sps:$4 sm:$0xff]  }
 0x1e8   : > { %2800 = vmatpush1.bf16.msra.mxu0 %v9588_v29  ;;  %v881_v29 = vld [vmem:[#allocation6 + $0x1e0] sm:$0xff] }
 0x1e9   : > { %2873 = vmatpush1.bf16.msra.mxu1 %v9591_v31  ;;  %2801 = vmatprep.subr.bf16.mxu0 %v9596_v39  ;;  %v11231_v31 = vpack.c.bf16 %v884_v18, %v876_v17  ;;  %v883_v39 = vld [vmem:[#allocation6 + $0x1f0] sm:$0xff]  ;;  %v11239_v42 = vpack.c.bf16 %v881_v29, %v873_v28  ;;  %v9656_v17 = vld [vmem:[%s10902_s22 + $0x16c] ss:$16 sps:$4 sm:$0xff]   ;;  %v9660_v28 = vld [vmem:[%s10902_s22 + $0x148] ss:$16 sps:$4 sm:$0xff]  }
 0x1ea   : > { %2874 = vmatprep.subr.bf16.mxu1 %v9599_v43  ;;  %v9618_v43 = vld [vmem:[%s10902_s22 + $0x28] ss:$16 sps:$4 sm:$0xff]   ;;  %v9659_v18 = vld [vmem:[%s10902_s22 + $0x36c] ss:$16 sps:$4 sm:$0xff]  }
 0x1eb   : > { %2694 = vmatmul.mubr.bf16.gmra.mxu0 %v11201_v49  ;;  %v9663_v29 = vld [vmem:[%s10902_s22 + $0x348] ss:$16 sps:$4 sm:$0xff]  }
 0x1ec   : > { %2767 = vmatmul.mubr.bf16.gmra.mxu1 %v11203_v51  ;;  %2802 = vmatpush1.bf16.msra.mxu0 %v9594_v44  ;;  %v9621_v44 = vld [vmem:[%s10902_s22 + $0x228] ss:$16 sps:$4 sm:$0xff]  }
 0x1ed   : > { %2875 = vmatpush1.bf16.msra.mxu1 %v9597_v45  ;;  %2803 = vmatprep.subr.bf16.mxu0 %v9602_v57  ;;  %v11243_v45 = vpack.c.bf16 %v883_v39, %v875_v37  ;;  %v9632_v57 = vld [vmem:[%s10902_s22 + $0x1ec] ss:$16 sps:$4 sm:$0xff]   ;;  %v9666_v39 = vld [vmem:[%s10902_s22 + $0x128] ss:$16 sps:$4 sm:$0xff]  }
 0x1ee   : > { %2876 = vmatprep.subr.bf16.mxu1 %v9605_v58  ;;  %2703 = vmatprep.mubr.bf16.mxu0 %v11209_v61  ;;  %v9635_v58 = vld [vmem:[%s10902_s22 + $0x3ec] ss:$16 sps:$4 sm:$0xff]  }
 0x1ef   : > { %2776 = vmatprep.mubr.bf16.mxu1 %v11211_v1  ;;  %v9671_v37 = vld [vmem:[%s10902_s22 + $0x32c] ss:$16 sps:$4 sm:$0xff]  }
 0x1f0   : > { %2804 = vmatpush1.bf16.msra.mxu0 %v9600_v59  ;;  %v9630_v59 = vld [vmem:[%s10902_s22 + $0x1e8] ss:$16 sps:$4 sm:$0xff]  }
 0x1f1   : > { %2877 = vmatpush1.bf16.msra.mxu1 %v9603_v60  ;;  %2805 = vmatprep.subr.bf16.mxu0 %v9608_v2  ;;  %v9633_v60 = vld [vmem:[%s10902_s22 + $0x3e8] ss:$16 sps:$4 sm:$0xff]  }
 0x1f2   : > { %2878 = vmatprep.subr.bf16.mxu1 %v9611_v6  ;;  %v9636_v2 = vld [vmem:[%s10902_s22 + $0x1c8] ss:$16 sps:$4 sm:$0xff]  }
 0x1f3   : > { %2704 = vmatmul.mubr.bf16.gmra.mxu0 %v11221_v13  ;;  %v9645_v6 = vld [vmem:[%s10902_s22 + $0x3a8] ss:$16 sps:$4 sm:$0xff]  }
 0x1f4   : > { %2777 = vmatmul.mubr.bf16.gmra.mxu1 %v11223_v16  ;;  %2806 = vmatpush1.bf16.msra.mxu0 %v9606_v7  ;;  %v9650_v7 = vld [vmem:[%s10902_s22 + $0x18c] ss:$16 sps:$4 sm:$0xff]  }
 0x1f5   : > { %2879 = vmatpush1.bf16.msra.mxu1 %v9609_v9  ;;  %2807 = vmatprep.subr.bf16.mxu0 %v9614_v19  ;;  %v9653_v9 = vld [vmem:[%s10902_s22 + $0x38c] ss:$16 sps:$4 sm:$0xff]   ;;  %v9654_v19 = vld [vmem:[%s10902_s22 + $0x168] ss:$16 sps:$4 sm:$0xff]  }
 0x1f6   : > { %2880 = vmatprep.subr.bf16.mxu1 %v9617_v20  ;;  %2713 = vmatprep.mubr.bf16.mxu0 %v11229_v27  ;;  %v9657_v20 = vld [vmem:[%s10902_s22 + $0x368] ss:$16 sps:$4 sm:$0xff]  }
 0x1f7   : > { %2786 = vmatprep.mubr.bf16.mxu1 %v11231_v31 }
 0x1f8   : > { %2808 = vmatpush1.bf16.msra.mxu0 %v9612_v24  ;;  %v9662_v24 = vld [vmem:[%s10902_s22 + $0x14c] ss:$16 sps:$4 sm:$0xff]  }
 0x1f9   : > { %2881 = vmatpush1.bf16.msra.mxu1 %v9615_v25  ;;  %2809 = vmatprep.subr.bf16.mxu0 %v9620_v35  ;;  %v9665_v25 = vld [vmem:[%s10902_s22 + $0x34c] ss:$16 sps:$4 sm:$0xff]  }
 0x1fa   : > { %2882 = vmatprep.subr.bf16.mxu1 %v9623_v40  ;;  %v9668_v35 = vld [vmem:[%s10902_s22 + $0x12c] ss:$16 sps:$4 sm:$0xff]   ;;  %v9669_v40 = vld [vmem:[%s10902_s22 + $0x328] ss:$16 sps:$4 sm:$0xff]  }
 0x1fb   : > { %2714 = vmatmul.mubr.bf16.gmra.mxu0 %v11239_v42 }
 0x1fc   : > { %2787 = vmatmul.mubr.bf16.gmra.mxu1 %v11243_v45  ;;  %2810 = vmatpush1.bf16.msra.mxu0 %v9618_v43  ;;  %v9674_v43 = vld [vmem:[%s10902_s22 + $0x10c] ss:$16 sps:$4 sm:$0xff]  }
 0x1fd   : > { %2883 = vmatpush1.bf16.msra.mxu1 %v9621_v44  ;;  %2811 = vmatprep.subr.bf16.mxu0 %v9626_v47  ;;  %v9677_v44 = vld [vmem:[%s10902_s22 + $0x30c] ss:$16 sps:$4 sm:$0xff]   ;;  %v9672_v47 = vld [vmem:[%s10902_s22 + $0x108] ss:$16 sps:$4 sm:$0xff]  }
 0x1fe   : > { %2884 = vmatprep.subr.bf16.mxu1 %v9629_v48  ;;  %2829 = vmatprep.mubr.bf16.mxu0 %v11044_v55  ;;  %v9644_v55 = vld [vmem:[%s10902_s22 + $0x1ac] ss:$16 sps:$4 sm:$0xff]   ;;  %v9675_v48 = vld [vmem:[%s10902_s22 + $0x308] ss:$16 sps:$4 sm:$0xff]  }
 0x1ff   : > { %2902 = vmatprep.mubr.bf16.mxu1 %v11046_v56  ;;  %v9647_v56 = vld [vmem:[%s10902_s22 + $0x3ac] ss:$16 sps:$4 sm:$0xff]  }
 0x200   : > { %2812 = vmatpush1.bf16.msra.mxu0 %v9624_v52  ;;  %v9680_v52 = vld [vmem:[%s10902_s22 + $0x4ec] ss:$16 sps:$4 sm:$0xff]  }
 0x201   : > { %2885 = vmatpush1.bf16.msra.mxu1 %v9627_v53  ;;  %2813 = vmatprep.subr.bf16.mxu0 %v9632_v57  ;;  %v9683_v53 = vld [vmem:[%s10902_s22 + $0x6ec] ss:$16 sps:$4 sm:$0xff]   ;;  %v9678_v57 = vld [vmem:[%s10902_s22 + $0x4e8] ss:$16 sps:$4 sm:$0xff]  }
 0x202   : > { %2886 = vmatprep.subr.bf16.mxu1 %v9635_v58  ;;  %v9681_v58 = vld [vmem:[%s10902_s22 + $0x6e8] ss:$16 sps:$4 sm:$0xff]  }
 0x204   : > { %2814 = vmatpush2.bf16.msra.mxu0 %v9630_v59  ;;  %v9686_v59 = vld [vmem:[%s10902_s22 + $0x4cc] ss:$16 sps:$4 sm:$0xff]  }
 0x205   : > { %2887 = vmatpush2.bf16.msra.mxu1 %v9633_v60  ;;  %2815 = vmatprep.subr.bf16.mxu0 %v9638_v62  ;;  %v9689_v60 = vld [vmem:[%s10902_s22 + $0x6cc] ss:$16 sps:$4 sm:$0xff]   ;;  %v9684_v62 = vld [vmem:[%s10902_s22 + $0x4c8] ss:$16 sps:$4 sm:$0xff]  }
 0x206   : > { %2888 = vmatprep.subr.bf16.mxu1 %v9641_v0  ;;  %v9687_v0 = vld [vmem:[%s10902_s22 + $0x6c8] ss:$16 sps:$4 sm:$0xff]  }
 0x208   : > { %2816 = vmatpush2.bf16.msra.mxu0 %v9636_v2  ;;  %v9692_v2 = vld [vmem:[%s10902_s22 + $0x4ac] ss:$16 sps:$4 sm:$0xff]  }
 0x209   : > { %2889 = vmatpush2.bf16.msra.mxu1 %v9639_v3  ;;  %2817 = vmatprep.subr.bf16.mxu0 %v9644_v55  ;;  %v9695_v3 = vld [vmem:[%s10902_s22 + $0x6ac] ss:$16 sps:$4 sm:$0xff]   ;;  %v9690_v55 = vld [vmem:[%s10902_s22 + $0x4a8] ss:$16 sps:$4 sm:$0xff]  }
 0x20a   : > { %2890 = vmatprep.subr.bf16.mxu1 %v9647_v56  ;;  %v9701_v56 = vld [vmem:[%s10902_s22 + $0x68c] ss:$16 sps:$4 sm:$0xff]  }
 0x20c   : > { %2818 = vmatpush2.bf16.msra.mxu0 %v9642_v5  ;;  %v9696_v5 = vld [vmem:[%s10902_s22 + $0x488] ss:$16 sps:$4 sm:$0xff]  }
 0x20d   : > { %2891 = vmatpush2.bf16.msra.mxu1 %v9645_v6  ;;  %2819 = vmatprep.subr.bf16.mxu0 %v9650_v7  ;;  %v9707_v6 = vld [vmem:[%s10902_s22 + $0x66c] ss:$16 sps:$4 sm:$0xff]   ;;  %v9702_v7 = vld [vmem:[%s10902_s22 + $0x468] ss:$16 sps:$4 sm:$0xff]  }
 0x20e   : > { %2892 = vmatprep.subr.bf16.mxu1 %v9653_v9  ;;  %v9713_v9 = vld [vmem:[%s10902_s22 + $0x64c] ss:$16 sps:$4 sm:$0xff]  }
 0x210   : > { %2820 = vmatpush2.bf16.msra.mxu0 %v9648_v10  ;;  %v9708_v10 = vld [vmem:[%s10902_s22 + $0x448] ss:$16 sps:$4 sm:$0xff]  }
 0x211   : > { %2893 = vmatpush2.bf16.msra.mxu1 %v9651_v11  ;;  %2821 = vmatprep.subr.bf16.mxu0 %v9656_v17  ;;  %v9719_v11 = vld [vmem:[%s10902_s22 + $0x62c] ss:$16 sps:$4 sm:$0xff]   ;;  %v9714_v17 = vld [vmem:[%s10902_s22 + $0x428] ss:$16 sps:$4 sm:$0xff]  }
 0x212   : > { %2894 = vmatprep.subr.bf16.mxu1 %v9659_v18  ;;  %v9725_v18 = vld [vmem:[%s10902_s22 + $0x60c] ss:$16 sps:$4 sm:$0xff]  }
 0x214   : > { %2822 = vmatpush2.bf16.msra.mxu0 %v9654_v19  ;;  %v9720_v19 = vld [vmem:[%s10902_s22 + $0x408] ss:$16 sps:$4 sm:$0xff]  }
 0x215   : > { %2895 = vmatpush2.bf16.msra.mxu1 %v9657_v20  ;;  %2823 = vmatprep.subr.bf16.mxu0 %v9662_v24  ;;  %v9731_v20 = vld [vmem:[%s10902_s22 + $0x7ec] ss:$16 sps:$4 sm:$0xff]  }
 0x216   : > { %2896 = vmatprep.subr.bf16.mxu1 %v9665_v25  ;;  %v9734_v24 = vld [vmem:[%s10902_s22 + $0x5cc] ss:$16 sps:$4 sm:$0xff]  }
 0x217   : > { %v9737_v25 = vld [vmem:[%s10902_s22 + $0x7cc] ss:$16 sps:$4 sm:$0xff]  }
 0x218   : > { %2824 = vmatpush2.bf16.msra.mxu0 %v9660_v28  ;;  %v9732_v28 = vld [vmem:[%s10902_s22 + $0x5c8] ss:$16 sps:$4 sm:$0xff]  }
 0x219   : > { %2897 = vmatpush2.bf16.msra.mxu1 %v9663_v29  ;;  %2825 = vmatprep.subr.bf16.mxu0 %v9668_v35  ;;  %v9743_v29 = vld [vmem:[%s10902_s22 + $0x7ac] ss:$16 sps:$4 sm:$0xff]   ;;  %v9738_v35 = vld [vmem:[%s10902_s22 + $0x5a8] ss:$16 sps:$4 sm:$0xff]  }
 0x21a   : > { %2898 = vmatprep.subr.bf16.mxu1 %v9671_v37  ;;  %v9741_v37 = vld [vmem:[%s10902_s22 + $0x7a8] ss:$16 sps:$4 sm:$0xff]  }
 0x21c   : > { %2826 = vmatpush2.bf16.msra.mxu0 %v9666_v39  ;;  %v9746_v39 = vld [vmem:[%s10902_s22 + $0x58c] ss:$16 sps:$4 sm:$0xff]  }
 0x21d   : > { %2899 = vmatpush2.bf16.msra.mxu1 %v9669_v40  ;;  %2827 = vmatprep.subr.bf16.mxu0 %v9674_v43  ;;  %v9749_v40 = vld [vmem:[%s10902_s22 + $0x78c] ss:$16 sps:$4 sm:$0xff]   ;;  %v9744_v43 = vld [vmem:[%s10902_s22 + $0x588] ss:$16 sps:$4 sm:$0xff]  }
 0x21e   : > { %2900 = vmatprep.subr.bf16.mxu1 %v9677_v44  ;;  %v9747_v44 = vld [vmem:[%s10902_s22 + $0x788] ss:$16 sps:$4 sm:$0xff]  }
 0x220   : > { %2828 = vmatpush2.bf16.msra.mxu0 %v9672_v47  ;;  %v9752_v47 = vld [vmem:[%s10902_s22 + $0x56c] ss:$16 sps:$4 sm:$0xff]  }
 0x221   : > { %2901 = vmatpush2.bf16.msra.mxu1 %v9675_v48  ;;  %2943 = vmatprep.subr.bf16.mxu0 %v9680_v52  ;;  %v9755_v48 = vld [vmem:[%s10902_s22 + $0x76c] ss:$16 sps:$4 sm:$0xff]   ;;  %v9750_v52 = vld [vmem:[%s10902_s22 + $0x568] ss:$16 sps:$4 sm:$0xff]  }
 0x222   : > { %3016 = vmatprep.subr.bf16.mxu1 %v9683_v53  ;;  %v9753_v53 = vld [vmem:[%s10902_s22 + $0x768] ss:$16 sps:$4 sm:$0xff]  }
 0x223   : > { %2830 = vmatmul.mubr.bf16.vlgmr.msra.gmra.mxu0 %v11067_v14  ;;  %v9693_v14 = vld [vmem:[%s10902_s22 + $0x6a8] ss:$16 sps:$4 sm:$0xff]  }
 0x224   : > { %2903 = vmatmul.mubr.bf16.vlgmr.msra.gmra.mxu1 %v11069_v15  ;;  %2944 = vmatpush1.bf16.msra.mxu0 %v9678_v57  ;;  %v9698_v15 = vld [vmem:[%s10902_s22 + $0x48c] ss:$16 sps:$4 sm:$0xff]  }
 0x225   : > { %3017 = vmatpush1.bf16.msra.mxu1 %v9681_v58  ;;  %2945 = vmatprep.subr.bf16.mxu0 %v9686_v59  ;;  %v9758_v57 = vld [vmem:[%s10902_s22 + $0x54c] ss:$16 sps:$4 sm:$0xff]   ;;  %v9756_v59 = vld [vmem:[%s10902_s22 + $0x548] ss:$16 sps:$4 sm:$0xff]  }
 0x226   : > { %3018 = vmatprep.subr.bf16.mxu1 %v9689_v60  ;;  %2839 = vmatprep.mubr.bf16.mxu0 %v11081_v26  ;;  %v9699_v26 = vld [vmem:[%s10902_s22 + $0x688] ss:$16 sps:$4 sm:$0xff]   ;;  %v9761_v58 = vld [vmem:[%s10902_s22 + $0x74c] ss:$16 sps:$4 sm:$0xff]  }
 0x227   : > { %2912 = vmatprep.mubr.bf16.mxu1 %v11087_v34  ;;  %v9704_v34 = vld [vmem:[%s10902_s22 + $0x46c] ss:$16 sps:$4 sm:$0xff]   ;;  %v9759_v60 = vld [vmem:[%s10902_s22 + $0x748] ss:$16 sps:$4 sm:$0xff]  }
 0x228   : > { %2946 = vmatpush1.bf16.msra.mxu0 %v9684_v62  ;;  %v9764_v62 = vld [vmem:[%s10902_s22 + $0x52c] ss:$16 sps:$4 sm:$0xff]  }
 0x229   : > { %3019 = vmatpush1.bf16.msra.mxu1 %v9687_v0  ;;  %2947 = vmatprep.subr.bf16.mxu0 %v9692_v2  ;;  %v9767_v0 = vld [vmem:[%s10902_s22 + $0x72c] ss:$16 sps:$4 sm:$0xff]   ;;  %v9762_v2 = vld [vmem:[%s10902_s22 + $0x528] ss:$16 sps:$4 sm:$0xff]  }
 0x22a   : > { %3020 = vmatprep.subr.bf16.mxu1 %v9695_v3  ;;  %v9765_v3 = vld [vmem:[%s10902_s22 + $0x728] ss:$16 sps:$4 sm:$0xff]  }
 0x22b   : > { %2840 = vmatmul.mubr.bf16.gmra.mxu0 %v11083_v30  ;;  %v9705_v30 = vld [vmem:[%s10902_s22 + $0x668] ss:$16 sps:$4 sm:$0xff]  }
 0x22c   : > { %2913 = vmatmul.mubr.bf16.gmra.mxu1 %v11096_v41  ;;  %2948 = vmatpush1.bf16.msra.mxu0 %v9690_v55  ;;  %v9710_v41 = vld [vmem:[%s10902_s22 + $0x44c] ss:$16 sps:$4 sm:$0xff]  }
 0x22d   : > { %3021 = vmatpush1.bf16.msra.mxu1 %v9693_v14  ;;  %2949 = vmatprep.subr.bf16.mxu0 %v9698_v15  ;;  %v9770_v55 = vld [vmem:[%s10902_s22 + $0x50c] ss:$16 sps:$4 sm:$0xff]   ;;  %v9768_v15 = vld [vmem:[%s10902_s22 + $0x508] ss:$16 sps:$4 sm:$0xff]  }
 0x22e   : > { %3022 = vmatprep.subr.bf16.mxu1 %v9701_v56  ;;  %2849 = vmatprep.mubr.bf16.mxu0 %v11101_v46  ;;  %v9711_v46 = vld [vmem:[%s10902_s22 + $0x648] ss:$16 sps:$4 sm:$0xff]   ;;  %v9773_v14 = vld [vmem:[%s10902_s22 + $0x70c] ss:$16 sps:$4 sm:$0xff]  }
 0x22f   : > { %2922 = vmatprep.mubr.bf16.mxu1 %v11107_v54  ;;  %v9716_v54 = vld [vmem:[%s10902_s22 + $0x42c] ss:$16 sps:$4 sm:$0xff]   ;;  %v9771_v56 = vld [vmem:[%s10902_s22 + $0x708] ss:$16 sps:$4 sm:$0xff]  }
 0x230   : > { %2950 = vmatpush1.bf16.msra.mxu0 %v9696_v5  ;;  %v9776_v5 = vld [vmem:[%s10906_s2 + $0x74] ss:$8 sps:$4 sm:$0xff]  }
 0x231   : > { %3023 = vmatpush1.bf16.msra.mxu1 %v9699_v26  ;;  %2951 = vmatprep.subr.bf16.mxu0 %v9704_v34  ;;  %v9779_v26 = vld [vmem:[%s10906_s2 + $0x174] ss:$8 sps:$4 sm:$0xff]   ;;  %v9774_v34 = vld [vmem:[%s10906_s2 + $0x70] ss:$8 sps:$4 sm:$0xff]  }
 0x232   : > { %3024 = vmatprep.subr.bf16.mxu1 %v9707_v6  ;;  %v9777_v6 = vld [vmem:[%s10906_s2 + $0x170] ss:$8 sps:$4 sm:$0xff]  }
 0x233   : > { %2850 = vmatmul.mubr.bf16.gmra.mxu0 %v11103_v50  ;;  %v9717_v50 = vld [vmem:[%s10902_s22 + $0x628] ss:$16 sps:$4 sm:$0xff]  }
 0x234   : > { %2923 = vmatmul.mubr.bf16.gmra.mxu1 %v11116_v63  ;;  %2952 = vmatpush1.bf16.msra.mxu0 %v9702_v7  ;;  %v9722_v63 = vld [vmem:[%s10902_s22 + $0x40c] ss:$16 sps:$4 sm:$0xff]  }
 0x235   : > { %3025 = vmatpush1.bf16.msra.mxu1 %v9705_v30  ;;  %2953 = vmatprep.subr.bf16.mxu0 %v9710_v41  ;;  %v9782_v7 = vld [vmem:[%s10906_s2 + $0x64] ss:$8 sps:$4 sm:$0xff]  }
 0x236   : > { %3026 = vmatprep.subr.bf16.mxu1 %v9713_v9  ;;  %2859 = vmatprep.mubr.bf16.mxu0 %v11121_v4  ;;  %v9723_v4 = vld [vmem:[%s10902_s22 + $0x608] ss:$16 sps:$4 sm:$0xff]   ;;  %v9785_v30 = vld [vmem:[%s10906_s2 + $0x164] ss:$8 sps:$4 sm:$0xff]  }
 0x237   : > { %2932 = vmatprep.mubr.bf16.mxu1 %v11127_v12  ;;  %v9728_v12 = vld [vmem:[%s10902_s22 + $0x5ec] ss:$16 sps:$4 sm:$0xff]  }
 0x238   : > { %2954 = vmatpush1.bf16.msra.mxu0 %v9708_v10  ;;  %v9780_v10 = vld [vmem:[%s10906_s2 + $0x60] ss:$8 sps:$4 sm:$0xff]  }
 0x239   : > { %3027 = vmatpush1.bf16.msra.mxu1 %v9711_v46  ;;  %2955 = vmatprep.subr.bf16.mxu0 %v9716_v54  ;;  %v9783_v46 = vld [vmem:[%s10906_s2 + $0x160] ss:$8 sps:$4 sm:$0xff]   ;;  %v9788_v54 = vld [vmem:[%s10906_s2 + $0x54] ss:$8 sps:$4 sm:$0xff]  }
 0x23a   : > { %3028 = vmatprep.subr.bf16.mxu1 %v9719_v11 }
 0x23b   : > { %2860 = vmatmul.mubr.bf16.gmra.mxu0 %v11123_v8  ;;  %v9726_v8 = vld [vmem:[%s10902_s22 + $0x5e8] ss:$16 sps:$4 sm:$0xff]  }
 0x23c   : > { %2933 = vmatmul.mubr.bf16.gmra.mxu1 %v11136_v21  ;;  %2956 = vmatpush1.bf16.msra.mxu0 %v9714_v17  ;;  %v9729_v21 = vld [vmem:[%s10902_s22 + $0x7e8] ss:$16 sps:$4 sm:$0xff]  }
 0x23d   : > { %3029 = vmatpush1.bf16.msra.mxu1 %v9717_v50  ;;  %2957 = vmatprep.subr.bf16.mxu0 %v9722_v63  ;;  %v9791_v50 = vld [vmem:[%s10906_s2 + $0x154] ss:$8 sps:$4 sm:$0xff]   ;;  %v12367_v63 = vlaneseq }
 0x23e   : > { %3030 = vmatprep.subr.bf16.mxu1 %v9725_v18  ;;  %2975 = vmatprep.mubr.bf16.mxu0 %v11145_v33  ;;  %v9735_v33 = vld [vmem:[%s10902_s22 + $0x7c8] ss:$16 sps:$4 sm:$0xff]  }
 0x23f   : > { %3048 = vmatprep.mubr.bf16.mxu1 %v11147_v36  ;;  %v9740_v36 = vld [vmem:[%s10902_s22 + $0x5ac] ss:$16 sps:$4 sm:$0xff]  }
 0x240   : > { %2958 = vmatpush1.bf16.msra.mxu0 %v9720_v19  ;;  %v9789_v19 = vld [vmem:[%s10906_s2 + $0x150] ss:$8 sps:$4 sm:$0xff]  }
 0x241   : > { %3031 = vmatpush1.bf16.msra.mxu1 %v9723_v4  ;;  %2959 = vmatprep.subr.bf16.mxu0 %v9728_v12  ;;  %v9794_v4 = vld [vmem:[%s10906_s2 + $0x44] ss:$8 sps:$4 sm:$0xff]  }
 0x242   : > { %3032 = vmatprep.subr.bf16.mxu1 %v9731_v20  ;;  %v11398_v20 = vshrl.u32 %v12367_v63, 7  ;;  %v9910_v63 = vld [vmem:[%s10906_s2 + $0x214] ss:$8 sps:$4 sm:$0xff]  }
 0x244   : > { %2960 = vmatpush2.bf16.msra.mxu0 %v9726_v8 }
 0x245   : > { %3033 = vmatpush2.bf16.msra.mxu1 %v9729_v21  ;;  %2961 = vmatprep.subr.bf16.mxu0 %v9734_v24  ;;  %v9795_v24 = vld [vmem:[%s10906_s2 + $0x140] ss:$8 sps:$4 sm:$0xff]  }
 0x246   : > { %3034 = vmatprep.subr.bf16.mxu1 %v9737_v25  ;;  %v9800_v25 = vld [vmem:[%s10906_s2 + $0x34] ss:$8 sps:$4 sm:$0xff]  }
 0x248   : > { %2962 = vmatpush2.bf16.msra.mxu0 %v9732_v28  ;;  %v9803_v28 = vld [vmem:[%s10906_s2 + $0x134] ss:$8 sps:$4 sm:$0xff]  }
 0x249   : > { %3035 = vmatpush2.bf16.msra.mxu1 %v9735_v33  ;;  %2963 = vmatprep.subr.bf16.mxu0 %v9740_v36  ;;  %v11420_v36 = vld [vmem:[%s10904_s25] sm:$0xf] }
 0x24a   : > { %3036 = vmatprep.subr.bf16.mxu1 %v9743_v29  ;;  %12429 = vst [vmem:[#allocation39_spill] sm:$0xff] %v11420_v36  ;;  %v9798_v29 = vld [vmem:[%s10906_s2 + $0x30] ss:$8 sps:$4 sm:$0xff]  }
 0x24c   : > { %2964 = vmatpush2.bf16.msra.mxu0 %v9738_v35 }
 0x24d   : > { %3037 = vmatpush2.bf16.msra.mxu1 %v9741_v37  ;;  %2965 = vmatprep.subr.bf16.mxu0 %v9746_v39  ;;  %v11426_v37 = vsub.s32 1, %v11398_v20  ;;  %v9801_v39 = vld [vmem:[%s10906_s2 + $0x130] ss:$8 sps:$4 sm:$0xff]  }
 0x24e   : > { %3038 = vmatprep.subr.bf16.mxu1 %v9749_v40  ;;  %v9806_v40 = vld [vmem:[%s10906_s2 + $0x24] ss:$8 sps:$4 sm:$0xff]  }
 0x24f   : > { %12430 = vst [vmem:[#allocation40_spill] sm:$0xff] %v11426_v37 }
 0x250   : > { %2966 = vmatpush2.bf16.msra.mxu0 %v9744_v43 }
 0x251   : > { %3039 = vmatpush2.bf16.msra.mxu1 %v9747_v44  ;;  %2967 = vmatprep.subr.bf16.mxu0 %v9752_v47  ;;  %v9804_v47 = vld [vmem:[%s10906_s2 + $0x20] ss:$8 sps:$4 sm:$0xff]  }
 0x252   : > { %3040 = vmatprep.subr.bf16.mxu1 %v9755_v48 }
 0x254   : > { %2968 = vmatpush2.bf16.msra.mxu0 %v9750_v52 }
 0x255   : > { %3041 = vmatpush2.bf16.msra.mxu1 %v9753_v53  ;;  %2969 = vmatprep.subr.bf16.mxu0 %v9758_v57  ;;  %v11444_v53 = vld [vmem:[#allocation9] sm:$0xff]  ;;  %v11446_v57 = vld [vmem:[#allocation9 + $0x8] sm:$0xff] }
 0x256   : > { %3042 = vmatprep.subr.bf16.mxu1 %v9761_v58  ;;  %v11450_v58 = vrot.slane %v11420_v36, %v11426_v37 }
 0x258   : > { %2970 = vmatpush2.bf16.msra.mxu0 %v9756_v59  ;;  %v9807_v59 = vld [vmem:[%s10906_s2 + $0x120] ss:$8 sps:$4 sm:$0xff]  }
 0x259   : > { %3043 = vmatpush2.bf16.msra.mxu1 %v9759_v60  ;;  %2971 = vmatprep.subr.bf16.mxu0 %v9764_v62  ;;  %v9812_v60 = vld [vmem:[%s10906_s2 + $0x14] ss:$8 sps:$4 sm:$0xff]  }
 0x25a   : > { %3044 = vmatprep.subr.bf16.mxu1 %v9767_v0 }
 0x25c   : > { %2972 = vmatpush2.bf16.msra.mxu0 %v9762_v2 }
 0x25d   : > { %3045 = vmatpush2.bf16.msra.mxu1 %v9765_v3  ;;  %2973 = vmatprep.subr.bf16.mxu0 %v9770_v55  ;;  %v925_v55 = vcombine.high %v11444_v53, %v11444_v53 }
 0x25e   : > { %3046 = vmatprep.subr.bf16.mxu1 %v9773_v14  ;;  %v926_v14 = vcombine.high %v11446_v57, %v11446_v57 }
 0x260   : > { %2974 = vmatpush2.bf16.msra.mxu0 %v9768_v15 }
 0x261   : > { %3047 = vmatpush2.bf16.msra.mxu1 %v9771_v56  ;;  %3901 = vmatprep.subr.bf16.mxu0 %v9776_v5  ;;  %v9810_v5 = vld [vmem:[%s10906_s2 + $0x10] ss:$8 sps:$4 sm:$0xff]  }
 0x262   : > { %3942 = vmatprep.subr.bf16.mxu1 %v9779_v26 }
 0x263   : > { %v11371_v41 = vpop.f32.mrf.mxu0  ;;  %2976 = vmatmul.mubr.bf16.vlgmr.msra.gmra.mxu0 %v11181_v22 }
 0x264   : > { %v11373_v9 = vpop.f32.mrf.mxu1  ;;  %3049 = vmatmul.mubr.bf16.vlgmr.msra.gmra.mxu1 %v11183_v23  ;;  %3902 = vmatpush1.bf16.msra.mxu0 %v9774_v34  ;;  %v9786_v23 = vld [vmem:[%s10906_s2 + $0x50] ss:$8 sps:$4 sm:$0xff]   ;;  %v9818_v34 = vld [vmem:[%s10906_s2 + $0x4] ss:$8 sps:$4 sm:$0xff]  }
 0x265   : > { %3943 = vmatpush1.bf16.msra.mxu1 %v9777_v6  ;;  %v11380_v11 = vpop.f32.mrf.mxu0  ;;  %3903 = vmatprep.subr.bf16.mxu0 %v9782_v7  ;;  %v9821_v6 = vld [vmem:[%s10906_s2 + $0x104] ss:$8 sps:$4 sm:$0xff]  }
 0x266   : > { %v11382_v17 = vpop.f32.mrf.mxu1  ;;  %3944 = vmatprep.subr.bf16.mxu1 %v9785_v30  ;;  %2985 = vmatprep.mubr.bf16.mxu0 %v11189_v32  ;;  %v9797_v32 = vld [vmem:[%s10906_s2 + $0x144] ss:$8 sps:$4 sm:$0xff]  }
 0x267   : > { %3058 = vmatprep.mubr.bf16.mxu1 %v11191_v38  ;;  %v11387_v22 = vpop.f32.mrf.mxu0  ;;  %v9792_v38 = vld [vmem:[%s10906_s2 + $0x40] ss:$8 sps:$4 sm:$0xff]  }
 0x268   : > { %v11390_v18 = vpop.f32.mrf.mxu1  ;;  %3904 = vmatpush1.bf16.msra.mxu0 %v9780_v10 }
 0x269   : > { %3945 = vmatpush1.bf16.msra.mxu1 %v9783_v46  ;;  %v11394_v12 = vpop.f32.mrf.mxu0  ;;  %3905 = vmatprep.subr.bf16.mxu0 %v9788_v54  ;;  %v934_v46 = vpack.c.bf16 %v925_v55, %v925_v55  ;;  %v936_v54 = vpack.c.bf16 %v926_v14, %v926_v14  ;;  %v9836_v55 = vld [vmem:[%s10906_s2 + $0xd4] ss:$8 sps:$4 sm:$0xff]  }
 0x26a   : > { %3946 = vmatprep.subr.bf16.mxu1 %v9791_v50  ;;  %v11405_v21 = vpop.f32.mrf.mxu1  ;;  %v9839_v14 = vld [vmem:[%s10906_s2 + $0x1d4] ss:$8 sps:$4 sm:$0xff]  }
 0x26b   : > { %2986 = vmatmul.mubr.bf16.gmra.mxu0 %v11201_v49  ;;  %v11403_v8 = vpop.f32.mrf.mxu0  ;;  %v11413_v49 = vsub.s32 0, %v11398_v20 }
 0x26c   : > { %3059 = vmatmul.mubr.bf16.gmra.mxu1 %v11203_v51  ;;  %3906 = vmatpush1.bf16.msra.mxu0 %v9786_v23  ;;  %v11417_v51 = vpop.f32.mrf.mxu1 }
 0x26d   : > { %3947 = vmatpush1.bf16.msra.mxu1 %v9789_v19  ;;  %3907 = vmatprep.subr.bf16.mxu0 %v9794_v4  ;;  %v11410_v33 = vpop.f32.mrf.mxu0  ;;  %12428 = vst [vmem:[#allocation38_spill] sm:$0xff] %v11413_v49  ;;  %v11437_v44 = vrot.slane %v11420_v36, %v11413_v49  ;;  %v9816_v19 = vld [vmem:[%s10906_s2] ss:$8 sps:$4 sm:$0xff]  }
 0x26e   : > { %3948 = vmatprep.subr.bf16.mxu1 %v9797_v32  ;;  %2995 = vmatprep.mubr.bf16.mxu0 %v11209_v61  ;;  %v11430_v43 = vpop.f32.mrf.mxu1  ;;  %v9809_v61 = vld [vmem:[%s10906_s2 + $0x124] ss:$8 sps:$4 sm:$0xff]   ;;  %v9819_v4 = vld [vmem:[%s10906_s2 + $0x100] ss:$8 sps:$4 sm:$0xff]  }
 0x26f   : > { %3068 = vmatprep.mubr.bf16.mxu1 %v11211_v1  ;;  %v11423_v35 = vpop.f32.mrf.mxu0 }
 0x270   : > { %3908 = vmatpush1.bf16.msra.mxu0 %v9792_v38  ;;  %v11440_v48 = vpop.f32.mrf.mxu1 }
 0x271   : > { %3949 = vmatpush1.bf16.msra.mxu1 %v9795_v24  ;;  %3909 = vmatprep.subr.bf16.mxu0 %v9800_v25  ;;  %v11433_v1 = vpop.f32.mrf.mxu0  ;;  %v9824_v24 = vld [vmem:[%s10906_s2 + $0xf4] ss:$8 sps:$4 sm:$0xff]  }
 0x272   : > { %3950 = vmatprep.subr.bf16.mxu1 %v9803_v28  ;;  %v11455_v0 = vpop.f32.mrf.mxu1  ;;  %v9827_v25 = vld [vmem:[%s10906_s2 + $0x1f4] ss:$8 sps:$4 sm:$0xff]  }
 0x273   : > { %2996 = vmatmul.mubr.bf16.gmra.mxu0 %v11221_v13  ;;  %v2559_v52 = vpop.f32.mrf.mxu0  ;;  %v9815_v13 = vld [vmem:[%s10906_s2 + $0x114] ss:$8 sps:$4 sm:$0xff]  }
 0x274   : > { %3069 = vmatmul.mubr.bf16.gmra.mxu1 %v11223_v16  ;;  %3910 = vmatpush1.bf16.msra.mxu0 %v9798_v29  ;;  %v2560_v62 = vadd.f32 %v2559_v52, %v11437_v44  ;;  %v2632_v3 = vpop.f32.mrf.mxu1 }
 0x275   : > { %3951 = vmatpush1.bf16.msra.mxu1 %v9801_v39  ;;  %3911 = vmatprep.subr.bf16.mxu0 %v9806_v40  ;;  %v2561_v16 = vpop.f32.mrf.mxu0  ;;  %v9822_v40 = vld [vmem:[%s10906_s2 + $0xf0] ss:$8 sps:$4 sm:$0xff]  }
 0x276   : > { %3952 = vmatprep.subr.bf16.mxu1 %v9809_v61  ;;  %3005 = vmatprep.mubr.bf16.mxu0 %v11229_v27  ;;  %v2562_v2 = vadd.f32 %v2561_v16, %v11450_v58  ;;  %v11465_v15 = vadd.f32 %v2632_v3, %v2560_v62  ;;  %v9813_v27 = vld [vmem:[%s10906_s2 + $0x110] ss:$8 sps:$4 sm:$0xff]   ;;  %v9831_v3 = vld [vmem:[%s10906_s2 + $0x1e0] ss:$8 sps:$4 sm:$0xff]  }
 0x277   : > { %3078 = vmatprep.mubr.bf16.mxu1 %v11231_v31  ;;  %v2563_v56 = vpop.f32.mrf.mxu0  ;;  %v2634_v31 = vpop.f32.mrf.mxu1  ;;  %v9825_v61 = vld [vmem:[%s10906_s2 + $0x1f0] ss:$8 sps:$4 sm:$0xff]  }
 0x278   : > { %3912 = vmatpush1.bf16.msra.mxu0 %v9804_v47  ;;  %v2564_v26 = vadd.f32 %v2563_v56, %v11437_v44  ;;  %v11472_v7 = vadd.f32 %v2634_v31, %v2562_v2  ;;  %v9828_v2 = vld [vmem:[%s10906_s2 + $0xe0] ss:$8 sps:$4 sm:$0xff]   ;;  %v9834_v56 = vld [vmem:[%s10906_s2 + $0xd0] ss:$8 sps:$4 sm:$0xff]  }
 0x279   : > { %3953 = vmatpush1.bf16.msra.mxu1 %v9807_v59  ;;  %3913 = vmatprep.subr.bf16.mxu0 %v9812_v60  ;;  %v11474_v30 = vpop.f32.mrf.mxu0  ;;  %v2636_v10 = vpop.f32.mrf.mxu1  ;;  %v9830_v59 = vld [vmem:[%s10906_s2 + $0xe4] ss:$8 sps:$4 sm:$0xff]   ;;  %v9840_v31 = vld [vmem:[%s10906_s2 + $0xc0] ss:$8 sps:$4 sm:$0xff]  }
 0x27a   : > { %3954 = vmatprep.subr.bf16.mxu1 %v9815_v13  ;;  %v11478_v50 = vadd.f32 %v2636_v10, %v2564_v26  ;;  %v9833_v60 = vld [vmem:[%s10906_s2 + $0x1e4] ss:$8 sps:$4 sm:$0xff]   ;;  %v9851_v10 = vld [vmem:[%s10906_s2 + $0x1b4] ss:$8 sps:$4 sm:$0xff]  }
 0x27b   : > { %3006 = vmatmul.mubr.bf16.gmra.mxu0 %v11239_v42  ;;  %v2569_v23 = vpop.f32.mrf.mxu0  ;;  %v11483_v38 = vpop.f32.mrf.mxu1  ;;  %v9845_v26 = vld [vmem:[%s10906_s2 + $0x1c4] ss:$8 sps:$4 sm:$0xff]  }
 0x27c   : > { %3079 = vmatmul.mubr.bf16.gmra.mxu1 %v11243_v45  ;;  %3914 = vmatpush1.bf16.msra.mxu0 %v9810_v5  ;;  %v2570_v32 = vadd.f32 %v2569_v23, %v11437_v44  ;;  %v9837_v5 = vld [vmem:[%s10906_s2 + $0x1d0] ss:$8 sps:$4 sm:$0xff]   ;;  %v9854_v23 = vld [vmem:[%s10906_s2 + $0xa4] ss:$8 sps:$4 sm:$0xff]  }
 0x27d   : > { %3955 = vmatpush1.bf16.msra.mxu1 %v9813_v27  ;;  %3915 = vmatprep.subr.bf16.mxu0 %v9818_v34  ;;  %v2571_v42 = vpop.f32.mrf.mxu0  ;;  %v2642_v28 = vpop.f32.mrf.mxu1  ;;  %v9842_v27 = vld [vmem:[%s10906_s2 + $0xc4] ss:$8 sps:$4 sm:$0xff]   ;;  %v9843_v34 = vld [vmem:[%s10906_s2 + $0x1c0] ss:$8 sps:$4 sm:$0xff]  }
 0x27e   : > { %3956 = vmatprep.subr.bf16.mxu1 %v9821_v6  ;;  %v2572_v45 = vadd.f32 %v2571_v42, %v11450_v58  ;;  %3933 = vmatprep.mubr.bf16.mxu0 %v934_v46  ;;  %v11488_v29 = vadd.f32 %v2642_v28, %v2570_v32  ;;  %v9848_v6 = vld [vmem:[%s10906_s2 + $0xb4] ss:$8 sps:$4 sm:$0xff]   ;;  %v9846_v46 = vld [vmem:[%s10906_s2 + $0xb0] ss:$8 sps:$4 sm:$0xff]   ;;  %v9855_v32 = vld [vmem:[%s10906_s2 + $0x1a0] ss:$8 sps:$4 sm:$0xff]  }
 0x27f   : > { %3974 = vmatprep.mubr.bf16.mxu1 %v936_v54  ;;  %v2573_v39 = vpop.f32.mrf.mxu0  ;;  %v2644_v52 = vpop.f32.mrf.mxu1  ;;  %v9849_v54 = vld [vmem:[%s10906_s2 + $0x1b0] ss:$8 sps:$4 sm:$0xff]   ;;  %v9866_v28 = vld [vmem:[%s10906_s2 + $0x84] ss:$8 sps:$4 sm:$0xff]  }
 0x280   : > { %3916 = vmatpush1.bf16.msra.mxu0 %v9816_v19  ;;  %v2574_v47 = vadd.f32 %v2573_v39, %v11437_v44  ;;  %v11495_v62 = vadd.f32 %v2644_v52, %v2572_v45  ;;  %v9857_v19 = vld [vmem:[%s10906_s2 + $0x1a4] ss:$8 sps:$4 sm:$0xff]   ;;  %v9858_v42 = vld [vmem:[%s10906_s2 + $0x90] ss:$8 sps:$4 sm:$0xff]   ;;  %v9867_v52 = vld [vmem:[%s10906_s2 + $0x180] ss:$8 sps:$4 sm:$0xff]  }
 0x281   : > { %3957 = vmatpush1.bf16.msra.mxu1 %v9819_v4  ;;  %3917 = vmatprep.subr.bf16.mxu0 %v9824_v24  ;;  %v2646_v13 = vpop.f32.mrf.mxu1  ;;  %v9852_v4 = vld [vmem:[%s10906_s2 + $0xa0] ss:$8 sps:$4 sm:$0xff]   ;;  %v9860_v24 = vld [vmem:[%s10906_s2 + $0x94] ss:$8 sps:$4 sm:$0xff]   ;;  %v9861_v45 = vld [vmem:[%s10906_s2 + $0x190] ss:$8 sps:$4 sm:$0xff]  }
 0x282   : > { %3958 = vmatprep.subr.bf16.mxu1 %v9827_v25  ;;  %v11497_v16 = vadd.f32 %v2646_v13, %v2574_v47  ;;  %v9863_v25 = vld [vmem:[%s10906_s2 + $0x194] ss:$8 sps:$4 sm:$0xff]   ;;  %v9869_v39 = vld [vmem:[%s10906_s2 + $0x184] ss:$8 sps:$4 sm:$0xff]   ;;  %v9864_v47 = vld [vmem:[%s10906_s2 + $0x80] ss:$8 sps:$4 sm:$0xff]  }
 0x284   : > { %3918 = vmatpush2.bf16.msra.mxu0 %v9822_v40  ;;  %v11523_v40 = vld [vmem:[#allocation9 + $0x10] sm:$0xff] }
 0x285   : > { %3959 = vmatpush2.bf16.msra.mxu1 %v9825_v61  ;;  %3919 = vmatprep.subr.bf16.mxu0 %v9830_v59  ;;  %v11525_v61 = vld [vmem:[#allocation9 + $0x18] sm:$0xff]  ;;  %v9874_v59 = vld [vmem:[%s10906_s2 + $0x274] ss:$8 sps:$4 sm:$0xff]   ;;  %v927_v13 = vcombine.high %v11523_v40, %v11523_v40 }
 0x286   : > { %3960 = vmatprep.subr.bf16.mxu1 %v9833_v60  ;;  %v9877_v60 = vld [vmem:[%s10906_s2 + $0x374] ss:$8 sps:$4 sm:$0xff]  }
 0x288   : > { %3920 = vmatpush2.bf16.msra.mxu0 %v9828_v2  ;;  %v928_v2 = vcombine.high %v11525_v61, %v11525_v61 }
 0x289   : > { %3961 = vmatpush2.bf16.msra.mxu1 %v9831_v3  ;;  %3921 = vmatprep.subr.bf16.mxu0 %v9836_v55  ;;  %v933_v3 = vpack.c.bf16 %v11444_v53, %v11444_v53  ;;  %v935_v55 = vpack.c.bf16 %v11446_v57, %v11446_v57  ;;  %v938_v53 = vpack.c.bf16 %v927_v13, %v927_v13  ;;  %v9893_v13 = vld [vmem:[%s10906_s2 + $0x340] ss:$8 sps:$4 sm:$0xff]  }
 0x28a   : > { %3962 = vmatprep.subr.bf16.mxu1 %v9839_v14  ;;  %v9872_v14 = vld [vmem:[%s10906_s2 + $0x270] ss:$8 sps:$4 sm:$0xff]  }
 0x28c   : > { %3922 = vmatpush2.bf16.msra.mxu0 %v9834_v56  ;;  %v9875_v56 = vld [vmem:[%s10906_s2 + $0x370] ss:$8 sps:$4 sm:$0xff]  }
 0x28d   : > { %3963 = vmatpush2.bf16.msra.mxu1 %v9837_v5  ;;  %3923 = vmatprep.subr.bf16.mxu0 %v9842_v27  ;;  %v11541_v5 = vpop.f32.mrf.mxu0  ;;  %v11543_v27 = vpop.f32.mrf.mxu1 }
 0x28e   : > { %3964 = vmatprep.subr.bf16.mxu1 %v9845_v26  ;;  %v9880_v26 = vld [vmem:[%s10906_s2 + $0x264] ss:$8 sps:$4 sm:$0xff]  }
 0x290   : > { %3924 = vmatpush2.bf16.msra.mxu0 %v9840_v31  ;;  %v9883_v31 = vld [vmem:[%s10906_s2 + $0x364] ss:$8 sps:$4 sm:$0xff]  }
 0x291   : > { %3965 = vmatpush2.bf16.msra.mxu1 %v9843_v34  ;;  %3925 = vmatprep.subr.bf16.mxu0 %v9848_v6  ;;  %v940_v34 = vpack.c.bf16 %v928_v2, %v928_v2 }
 0x292   : > { %3966 = vmatprep.subr.bf16.mxu1 %v9851_v10  ;;  %v9878_v10 = vld [vmem:[%s10906_s2 + $0x260] ss:$8 sps:$4 sm:$0xff]  }
 0x294   : > { %3926 = vmatpush2.bf16.msra.mxu0 %v9846_v46  ;;  %v9881_v46 = vld [vmem:[%s10906_s2 + $0x360] ss:$8 sps:$4 sm:$0xff]  }
 0x295   : > { %3967 = vmatpush2.bf16.msra.mxu1 %v9849_v54  ;;  %3927 = vmatprep.subr.bf16.mxu0 %v9854_v23 }
 0x296   : > { %3968 = vmatprep.subr.bf16.mxu1 %v9857_v19  ;;  %v9886_v19 = vld [vmem:[%s10906_s2 + $0x254] ss:$8 sps:$4 sm:$0xff]  }
 0x298   : > { %3928 = vmatpush2.bf16.msra.mxu0 %v9852_v4  ;;  %v9889_v4 = vld [vmem:[%s10906_s2 + $0x354] ss:$8 sps:$4 sm:$0xff]  }
 0x299   : > { %3969 = vmatpush2.bf16.msra.mxu1 %v9855_v32  ;;  %3929 = vmatprep.subr.bf16.mxu0 %v9860_v24 }
 0x29a   : > { %3970 = vmatprep.subr.bf16.mxu1 %v9863_v25  ;;  %v9884_v25 = vld [vmem:[%s10906_s2 + $0x250] ss:$8 sps:$4 sm:$0xff]  }
 0x29c   : > { %3930 = vmatpush2.bf16.msra.mxu0 %v9858_v42  ;;  %v9887_v42 = vld [vmem:[%s10906_s2 + $0x350] ss:$8 sps:$4 sm:$0xff]  }
 0x29d   : > { %3971 = vmatpush2.bf16.msra.mxu1 %v9861_v45  ;;  %3931 = vmatprep.subr.bf16.mxu0 %v9866_v28 }
 0x29e   : > { %3972 = vmatprep.subr.bf16.mxu1 %v9869_v39  ;;  %v9892_v39 = vld [vmem:[%s10906_s2 + $0x244] ss:$8 sps:$4 sm:$0xff]  }
 0x2a0   : > { %3932 = vmatpush2.bf16.msra.mxu0 %v9864_v47  ;;  %v9895_v47 = vld [vmem:[%s10906_s2 + $0x344] ss:$8 sps:$4 sm:$0xff]  }
 0x2a1   : > { %3973 = vmatpush2.bf16.msra.mxu1 %v9867_v52  ;;  %3983 = vmatprep.subr.bf16.mxu0 %v9874_v59 }
 0x2a2   : > { %4024 = vmatprep.subr.bf16.mxu1 %v9877_v60  ;;  %v9890_v60 = vld [vmem:[%s10906_s2 + $0x240] ss:$8 sps:$4 sm:$0xff]  }
 0x2a3   : > { %v11547_v6 = vpop.f32.mrf.mxu0  ;;  %3934 = vmatmul.mubr.bf16.vlgmr.msra.gmra.mxu0 %v933_v3 }
 0x2a4   : > { %v11549_v57 = vpop.f32.mrf.mxu1  ;;  %3975 = vmatmul.mubr.bf16.vlgmr.msra.gmra.mxu1 %v935_v55  ;;  %3984 = vmatpush1.bf16.msra.mxu0 %v9872_v14  ;;  %v9898_v55 = vld [vmem:[%s10906_s2 + $0x234] ss:$8 sps:$4 sm:$0xff]  }
 0x2a5   : > { %4025 = vmatpush1.bf16.msra.mxu1 %v9875_v56  ;;  %v11553_v54 = vpop.f32.mrf.mxu0  ;;  %3985 = vmatprep.subr.bf16.mxu0 %v9880_v26  ;;  %v9901_v14 = vld [vmem:[%s10906_s2 + $0x334] ss:$8 sps:$4 sm:$0xff]  }
 0x2a6   : > { %v11555_v23 = vpop.f32.mrf.mxu1  ;;  %4026 = vmatprep.subr.bf16.mxu1 %v9883_v31  ;;  %4015 = vmatprep.mubr.bf16.mxu0 %v938_v53  ;;  %v9896_v31 = vld [vmem:[%s10906_s2 + $0x230] ss:$8 sps:$4 sm:$0xff]  }
 0x2a7   : > { %4056 = vmatprep.mubr.bf16.mxu1 %v940_v34  ;;  %v11559_v32 = vpop.f32.mrf.mxu0  ;;  %v9899_v53 = vld [vmem:[%s10906_s2 + $0x330] ss:$8 sps:$4 sm:$0xff]  }
 0x2a8   : > { %v11561_v24 = vpop.f32.mrf.mxu1  ;;  %3986 = vmatpush1.bf16.msra.mxu0 %v9878_v10 }
 0x2a9   : > { %4027 = vmatpush1.bf16.msra.mxu1 %v9881_v46  ;;  %v11565_v45 = vpop.f32.mrf.mxu0  ;;  %3987 = vmatprep.subr.bf16.mxu0 %v9886_v19  ;;  %v9904_v46 = vld [vmem:[%s10906_s2 + $0x224] ss:$8 sps:$4 sm:$0xff]  }
 0x2aa   : > { %v11567_v28 = vpop.f32.mrf.mxu1  ;;  %4028 = vmatprep.subr.bf16.mxu1 %v9889_v4  ;;  %v9907_v19 = vld [vmem:[%s10906_s2 + $0x324] ss:$8 sps:$4 sm:$0xff]  }
 0x2ab   : > { %v11571_v52 = vpop.f32.mrf.mxu0 }
 0x2ac   : > { %v11573_v59 = vpop.f32.mrf.mxu1  ;;  %3988 = vmatpush1.bf16.msra.mxu0 %v9884_v25 }
 0x2ad   : > { %4029 = vmatpush1.bf16.msra.mxu1 %v9887_v42  ;;  %v11577_v2 = vpop.f32.mrf.mxu0  ;;  %3989 = vmatprep.subr.bf16.mxu0 %v9892_v39  ;;  %v9902_v39 = vld [vmem:[%s10906_s2 + $0x220] ss:$8 sps:$4 sm:$0xff]  }
 0x2ae   : > { %v11579_v3 = vpop.f32.mrf.mxu1  ;;  %4030 = vmatprep.subr.bf16.mxu1 %v9895_v47  ;;  %v9905_v47 = vld [vmem:[%s10906_s2 + $0x320] ss:$8 sps:$4 sm:$0xff]  }
 0x2af   : > { %v11583_v56 = vpop.f32.mrf.mxu0 }
 0x2b0   : > { %v11585_v26 = vpop.f32.mrf.mxu1  ;;  %3990 = vmatpush1.bf16.msra.mxu0 %v9890_v60 }
 0x2b1   : > { %4031 = vmatpush1.bf16.msra.mxu1 %v9893_v13  ;;  %v11589_v34 = vpop.f32.mrf.mxu0  ;;  %3991 = vmatprep.subr.bf16.mxu0 %v9898_v55  ;;  %v9913_v55 = vld [vmem:[%s10906_s2 + $0x314] ss:$8 sps:$4 sm:$0xff]  }
 0x2b2   : > { %v11591_v10 = vpop.f32.mrf.mxu1  ;;  %4032 = vmatprep.subr.bf16.mxu1 %v9901_v14 }
 0x2b3   : > { %v2705_v4 = vpop.f32.mrf.mxu0 }
 0x2b4   : > { %v2778_v25 = vpop.f32.mrf.mxu1  ;;  %v2706_v42 = vadd.f32 %v2705_v4, %v11465_v15  ;;  %3992 = vmatpush1.bf16.msra.mxu0 %v9896_v31 }
 0x2b5   : > { %4033 = vmatpush1.bf16.msra.mxu1 %v9899_v53  ;;  %v2707_v60 = vpop.f32.mrf.mxu0  ;;  %3993 = vmatprep.subr.bf16.mxu0 %v9904_v46  ;;  %v9908_v46 = vld [vmem:[%s10906_s2 + $0x210] ss:$8 sps:$4 sm:$0xff]  }
 0x2b6   : > { %v2780_v13 = vpop.f32.mrf.mxu1  ;;  %4034 = vmatprep.subr.bf16.mxu1 %v9907_v19  ;;  %v2708_v14 = vadd.f32 %v2707_v60, %v11472_v7  ;;  %v11601_v37 = vadd.f32 %v2778_v25, %v2706_v42  ;;  %v9911_v19 = vld [vmem:[%s10906_s2 + $0x310] ss:$8 sps:$4 sm:$0xff]   ;;  %v9916_v7 = vld [vmem:[%s10906_s2 + $0x204] ss:$8 sps:$4 sm:$0xff]   ;;  %v9917_v60 = vld [vmem:[%s10906_s2 + $0x300] ss:$8 sps:$4 sm:$0xff]  }
 0x2b7   : > { %v2709_v49 = vpop.f32.mrf.mxu0  ;;  %v9919_v25 = vld [vmem:[%s10906_s2 + $0x304] ss:$8 sps:$4 sm:$0xff]  }
 0x2b8   : > { %12431 = vst [vmem:[#allocation41_spill] sm:$0xff] %v11601_v37  ;;  %v2782_v15 = vpop.f32.mrf.mxu1  ;;  %v2710_v31 = vadd.f32 %v2709_v49, %v11478_v50  ;;  %v11604_v53 = vadd.f32 %v2780_v13, %v2708_v14  ;;  %3994 = vmatpush1.bf16.msra.mxu0 %v9902_v39 }
 0x2b9   : > { %4035 = vmatpush1.bf16.msra.mxu1 %v9905_v47  ;;  %v11608_v4 = vpop.f32.mrf.mxu0  ;;  %3995 = vmatprep.subr.bf16.mxu0 %v9910_v63  ;;  %v9914_v47 = vld [vmem:[%s10906_s2 + $0x200] ss:$8 sps:$4 sm:$0xff]   ;;  %v9922_v63 = vld [vmem:[%s10906_s2 + $0x2f4] ss:$8 sps:$4 sm:$0xff]  }
 0x2ba   : > { %v11610_v36 = vpop.f32.mrf.mxu1  ;;  %4036 = vmatprep.subr.bf16.mxu1 %v9913_v55  ;;  %v11614_v42 = vadd.f32 %v2782_v15, %v2710_v31  ;;  %v9925_v55 = vld [vmem:[%s10906_s2 + $0x3f4] ss:$8 sps:$4 sm:$0xff]  }
 0x2bb   : > { %v2715_v49 = vpop.f32.mrf.mxu0 }
 0x2bc   : > { %v2788_v50 = vpop.f32.mrf.mxu1  ;;  %v2716_v39 = vadd.f32 %v2715_v49, %v11488_v29  ;;  %3996 = vmatpush1.bf16.msra.mxu0 %v9908_v46  ;;  %v9928_v49 = vld [vmem:[%s10906_s2 + $0x2e4] ss:$8 sps:$4 sm:$0xff]  }
 0x2bd   : > { %4037 = vmatpush1.bf16.msra.mxu1 %v9911_v19  ;;  %v2717_v13 = vpop.f32.mrf.mxu0  ;;  %3997 = vmatprep.subr.bf16.mxu0 %v9916_v7  ;;  %v9920_v7 = vld [vmem:[%s10906_s2 + $0x2f0] ss:$8 sps:$4 sm:$0xff]  }
 0x2be   : > { %v2790_v14 = vpop.f32.mrf.mxu1  ;;  %4038 = vmatprep.subr.bf16.mxu1 %v9919_v25  ;;  %v2718_v15 = vadd.f32 %v2717_v13, %v11495_v62  ;;  %v11622_v31 = vadd.f32 %v2788_v50, %v2716_v39  ;;  %v9923_v25 = vld [vmem:[%s10906_s2 + $0x3f0] ss:$8 sps:$4 sm:$0xff]   ;;  %v9931_v62 = vld [vmem:[%s10906_s2 + $0x3e4] ss:$8 sps:$4 sm:$0xff]   ;;  %v2546_v39 = vadd.f32 %v11394_v12, %v11450_v58  ;;  %v9937_v13 = vld [vmem:[%s10906_s2 + $0x3d4] ss:$8 sps:$4 sm:$0xff]   ;;  %v2544_v12 = vadd.f32 %v11387_v22, %v11437_v44 }
 0x2bf   : > { %v2719_v37 = vpop.f32.mrf.mxu0  ;;  %v9943_v22 = vld [vmem:[%s10906_s2 + $0x3c4] ss:$8 sps:$4 sm:$0xff]  }
 0x2c0   : > { %v2792_v29 = vpop.f32.mrf.mxu1  ;;  %v2720_v46 = vadd.f32 %v2719_v37, %v11497_v16  ;;  %v11625_v19 = vadd.f32 %v2790_v14, %v2718_v15  ;;  %3998 = vmatpush1.bf16.msra.mxu0 %v9914_v47  ;;  %v9926_v37 = vld [vmem:[%s10906_s2 + $0x2e0] ss:$8 sps:$4 sm:$0xff]   ;;  %v2556_v47 = vadd.f32 %v11433_v1, %v11450_v58  ;;  %v2542_v14 = vadd.f32 %v11380_v11, %v11450_v58  ;;  %v9932_v1 = vld [vmem:[%s10906_s2 + $0x2d0] ss:$8 sps:$4 sm:$0xff]   ;;  %v9940_v11 = vld [vmem:[%s10906_s2 + $0x2c4] ss:$8 sps:$4 sm:$0xff]  }
 0x2c1   : > { %4039 = vmatpush1.bf16.msra.mxu1 %v9917_v60  ;;  %3999 = vmatprep.subr.bf16.mxu0 %v9922_v63  ;;  %v9929_v16 = vld [vmem:[%s10906_s2 + $0x3e0] ss:$8 sps:$4 sm:$0xff]   ;;  %v9934_v60 = vld [vmem:[%s10906_s2 + $0x2d4] ss:$8 sps:$4 sm:$0xff]   ;;  %v2619_v63 = vadd.f32 %v11405_v21, %v2546_v39  ;;  %v9935_v15 = vld [vmem:[%s10906_s2 + $0x3d0] ss:$8 sps:$4 sm:$0xff]   ;;  %v2540_v21 = vadd.f32 %v11371_v41, %v11437_v44 }
 0x2c2   : > { %4040 = vmatprep.subr.bf16.mxu1 %v9925_v55  ;;  %v11631_v50 = vadd.f32 %v2792_v29, %v2720_v46  ;;  %v2554_v55 = vadd.f32 %v11423_v35, %v11437_v44  ;;  %v2552_v29 = vadd.f32 %v11410_v33, %v11450_v58  ;;  %v2629_v46 = vadd.f32 %v11455_v0, %v2556_v47  ;;  %v2721_v47 = vpop.f32.mrf.mxu0 }
 0x2c3   : > { %v2615_v35 = vadd.f32 %v11382_v17, %v2542_v14  ;;  %v2550_v33 = vadd.f32 %v11403_v8, %v11437_v44  ;;  %v9938_v17 = vld [vmem:[%s10906_s2 + $0x2c0] ss:$8 sps:$4 sm:$0xff]   ;;  %v9946_v44 = vld [vmem:[%s10906_s2 + $0x2b4] ss:$8 sps:$4 sm:$0xff]  }
 0x2c4   : > { %4000 = vmatpush2.bf16.msra.mxu0 %v9920_v7  ;;  %v2692_v7 = vadd.f32 %v11565_v45, %v2619_v63  ;;  %v2702_v0 = vadd.f32 %v11589_v34, %v2629_v46  ;;  %v9941_v45 = vld [vmem:[%s10906_s2 + $0x3c0] ss:$8 sps:$4 sm:$0xff]   ;;  %v2625_v39 = vadd.f32 %v11430_v43, %v2552_v29  ;;  %v9956_v63 = vld [vmem:[%s10906_s2 + $0x290] ss:$8 sps:$4 sm:$0xff]   ;;  %v11708_v29 = vsub.s32 2, %v11398_v20 }
 0x2c5   : > { %4041 = vmatpush2.bf16.msra.mxu1 %v9923_v25  ;;  %4001 = vmatprep.subr.bf16.mxu0 %v9928_v49  ;;  %v2617_v25 = vadd.f32 %v11390_v18, %v2544_v12  ;;  %v2627_v49 = vadd.f32 %v11440_v48, %v2554_v55  ;;  %v2688_v41 = vadd.f32 %v11553_v54, %v2615_v35  ;;  %v9949_v48 = vld [vmem:[%s10906_s2 + $0x3b4] ss:$8 sps:$4 sm:$0xff]   ;;  %v9953_v14 = vld [vmem:[%s10906_s2 + $0x3a0] ss:$8 sps:$4 sm:$0xff]   ;;  %v9959_v55 = vld [vmem:[%s10906_s2 + $0x390] ss:$8 sps:$4 sm:$0xff]  }
 0x2c6   : > { %4042 = vmatprep.subr.bf16.mxu1 %v9931_v62  ;;  %v2566_v62 = vadd.f32 %v11474_v30, %v11450_v58  ;;  %v2576_v18 = vadd.f32 %v11541_v5, %v11450_v58  ;;  %v2613_v30 = vadd.f32 %v11373_v9, %v2540_v21  ;;  %v2765_v54 = vadd.f32 %v11567_v28, %v2692_v7  ;;  %v9944_v9 = vld [vmem:[%s10906_s2 + $0x2b0] ss:$8 sps:$4 sm:$0xff]   ;;  %v12432_v7 = vld [vmem:[#allocation39_spill] sm:$0xff] }
 0x2c7   : > { %v2690_v8 = vadd.f32 %v11559_v32, %v2617_v25  ;;  %v2700_v34 = vadd.f32 %v11583_v56, %v2627_v49  ;;  %v2698_v43 = vadd.f32 %v11577_v2, %v2625_v39  ;;  %v2775_v58 = vadd.f32 %v11591_v10, %v2702_v0  ;;  %v9947_v28 = vld [vmem:[%s10906_s2 + $0x3b0] ss:$8 sps:$4 sm:$0xff]   ;;  %v9955_v10 = vld [vmem:[%s10906_s2 + $0x3a4] ss:$8 sps:$4 sm:$0xff]  }
 0x2c8   : > { %4002 = vmatpush2.bf16.msra.mxu0 %v9926_v37  ;;  %v2623_v37 = vadd.f32 %v11417_v51, %v2550_v33  ;;  %v2639_v5 = vadd.f32 %v11483_v38, %v2566_v62  ;;  %v2686_v32 = vadd.f32 %v11547_v6, %v2613_v30  ;;  %v2649_v56 = vadd.f32 %v11543_v27, %v2576_v18  ;;  %v9952_v38 = vld [vmem:[%s10906_s2 + $0x2a4] ss:$8 sps:$4 sm:$0xff]  }
 0x2c9   : > { %4043 = vmatpush2.bf16.msra.mxu1 %v9929_v16  ;;  %4003 = vmatprep.subr.bf16.mxu0 %v9934_v60  ;;  %v2761_v16 = vadd.f32 %v11555_v23, %v2688_v41  ;;  %v2763_v51 = vadd.f32 %v11561_v24, %v2690_v8  ;;  %9971 = vtanh.f32 %v2765_v54  ;;  %v2773_v6 = vadd.f32 %v11585_v26, %v2700_v34 }
 0x2ca   : > { %4044 = vmatprep.subr.bf16.mxu1 %v9937_v13  ;;  %v2696_v2 = vadd.f32 %v11571_v52, %v2623_v37  ;;  %v2712_v23 = vadd.f32 %v11608_v4, %v2639_v5  ;;  %v2771_v60 = vadd.f32 %v11579_v3, %v2698_v43  ;;  %9973 = vtanh.f32 %v2775_v58  ;;  %v2794_v52 = vpop.f32.mrf.mxu1  ;;  %v9950_v13 = vld [vmem:[%s10906_s2 + $0x2a0] ss:$8 sps:$4 sm:$0xff]   ;;  %v9958_v3 = vld [vmem:[%s10906_s2 + $0x294] ss:$8 sps:$4 sm:$0xff]  }
 0x2cb   : > { %v2722_v27 = vadd.f32 %v2721_v47, %v2649_v56  ;;  %v2759_v24 = vadd.f32 %v11549_v57, %v2686_v32  ;;  %9975 = vtanh.f32 %v2761_v16  ;;  %v9961_v4 = vld [vmem:[%s10906_s2 + $0x394] ss:$8 sps:$4 sm:$0xff]   ;;  %v11711_v46 = vsub.s32 3, %v11398_v20 }
 0x2cc   : > { %4004 = vmatpush2.bf16.msra.mxu0 %v9932_v1  ;;  %9977 = vtanh.f32 %v2763_v51  ;;  %v2769_v26 = vadd.f32 %v11573_v59, %v2696_v2  ;;  %v2785_v57 = vadd.f32 %v11610_v36, %v2712_v23  ;;  %v9964_v59 = vld [vmem:[%s10906_s2 + $0x284] ss:$8 sps:$4 sm:$0xff]   ;;  %v9965_v36 = vld [vmem:[%s10906_s2 + $0x380] ss:$8 sps:$4 sm:$0xff]   ;;  %v939_v21 = vpack.c.bf16 %v11525_v61, %v11525_v61 }
 0x2cd   : > { %4045 = vmatpush2.bf16.msra.mxu1 %v9935_v15  ;;  %4005 = vmatprep.subr.bf16.mxu0 %v9940_v11  ;;  %9979 = vtanh.f32 %v2773_v6  ;;  %v2795_v12 = vadd.f32 %v2794_v52, %v2722_v27  ;;  %v9967_v1 = vld [vmem:[%s10906_s2 + $0x384] ss:$8 sps:$4 sm:$0xff]   ;;  %v9962_v15 = vld [vmem:[%s10906_s2 + $0x280] ss:$8 sps:$4 sm:$0xff]   ;;  %v11719_v25 = vrot.slane %v12432_v7, %v11708_v29  ;;  %v11723_v49 = vrot.slane %v12432_v7, %v11711_v46 }
 0x2ce   : > { %4046 = vmatprep.subr.bf16.mxu1 %v9943_v22  ;;  %9981 = vtanh.f32 %v2771_v60  ;;  %v937_v22 = vpack.c.bf16 %v11523_v40, %v11523_v40 }
 0x2cf   : > { %9983 = vtanh.f32 %v2759_v24 }
 0x2d0   : > { %4006 = vmatpush2.bf16.msra.mxu0 %v9938_v17  ;;  %9985 = vtanh.f32 %v2769_v26 }
 0x2d1   : > { %4047 = vmatpush2.bf16.msra.mxu1 %v9941_v45  ;;  %4007 = vmatprep.subr.bf16.mxu0 %v9946_v44  ;;  %9987 = vtanh.f32 %v2785_v57 }
 0x2d2   : > { %4048 = vmatprep.subr.bf16.mxu1 %v9949_v48  ;;  %9989 = vtanh.f32 %v2795_v12 }
 0x2d4   : > { %4008 = vmatpush2.bf16.msra.mxu0 %v9944_v9 }
 0x2d5   : > { %4049 = vmatpush2.bf16.msra.mxu1 %v9947_v28  ;;  %4009 = vmatprep.subr.bf16.mxu0 %v9952_v38 }
 0x2d6   : > { %4050 = vmatprep.subr.bf16.mxu1 %v9955_v10  ;;  %v9972_v11 = vpop.eup %9971 }
 0x2d7   : > { %v9974_v35 = vpop.eup %9973 }
 0x2d8   : > { %4010 = vmatpush2.bf16.msra.mxu0 %v9950_v13  ;;  %v9976_v33 = vpop.eup %9975 }
 0x2d9   : > { %4051 = vmatpush2.bf16.msra.mxu1 %v9953_v14  ;;  %4011 = vmatprep.subr.bf16.mxu0 %v9958_v3  ;;  %v9978_v0 = vpop.eup %9977 }
 0x2da   : > { %4052 = vmatprep.subr.bf16.mxu1 %v9961_v4  ;;  %v9980_v62 = vpop.eup %9979 }
 0x2db   : > { %v9982_v61 = vpop.eup %9981 }
 0x2dc   : > { %4012 = vmatpush2.bf16.msra.mxu0 %v9956_v63  ;;  %v9984_v45 = vpop.eup %9983 }
 0x2dd   : > { %4053 = vmatpush2.bf16.msra.mxu1 %v9959_v55  ;;  %4013 = vmatprep.subr.bf16.mxu0 %v9964_v59  ;;  %v9986_v8 = vpop.eup %9985 }
 0x2de   : > { %4054 = vmatprep.subr.bf16.mxu1 %v9967_v1  ;;  %v9988_v30 = vpop.eup %9987 }
 0x2df   : > { %v9990_v37 = vpop.eup %9989 }
 0x2e0   : > { %4014 = vmatpush2.bf16.msra.mxu0 %v9962_v15 }
 0x2e1   : > { %4055 = vmatpush2.bf16.msra.mxu1 %v9965_v36  ;;  %4133 = vmatprep.subr.mxu0 %v9972_v11 }
 0x2e2   : > { %4213 = vmatprep.subr.mxu1 %v9974_v35 }
 0x2e3   : > { %v2831_v40 = vpop.f32.mrf.mxu0  ;;  %4016 = vmatmul.mubr.bf16.vlgmr.msra.gmra.mxu0 %v937_v22 }
 0x2e4   : > { %v2904_v41 = vpop.f32.mrf.mxu1  ;;  %4057 = vmatmul.mubr.bf16.vlgmr.msra.gmra.mxu1 %v939_v21  ;;  %v2832_v17 = vadd.f32 %v2831_v40, %v11719_v25  ;;  %4134 = vmatpush1.xpose.msra.mxu0 %v9978_v0 }
 0x2e5   : > { %4214 = vmatpush1.xpose.msra.mxu1 %v9980_v62  ;;  %v2833_v39 = vpop.f32.mrf.mxu0  ;;  %4135 = vmatprep.subr.mxu0 %v9976_v33 }
 0x2e6   : > { %v2906_v18 = vpop.f32.mrf.mxu1  ;;  %4215 = vmatprep.subr.mxu1 %v9982_v61  ;;  %v11726_v44 = vadd.f32 %v2904_v41, %v2832_v17  ;;  %v2834_v48 = vadd.f32 %v2833_v39, %v11723_v49 }
 0x2e7   : > { %v2835_v54 = vpop.f32.mrf.mxu0 }
 0x2e8   : > { %v2908_v34 = vpop.f32.mrf.mxu1  ;;  %v11729_v43 = vadd.f32 %v2906_v18, %v2834_v48  ;;  %v2836_v58 = vadd.f32 %v2835_v54, %v11719_v25  ;;  %4136 = vmatpush1.xpose.msra.mxu0 %v9984_v45 }
 0x2e9   : > { %4216 = vmatpush1.xpose.msra.mxu1 %v9986_v8  ;;  %v2837_v5 = vpop.f32.mrf.mxu0  ;;  %4293 = vmatprep.subr.mxu0 %v9988_v30 }
 0x2ea   : > { %v2910_v32 = vpop.f32.mrf.mxu1  ;;  %4373 = vmatprep.subr.mxu1 %v9990_v37  ;;  %v2909_v16 = vadd.f32 %v2908_v34, %v2836_v58  ;;  %v2838_v47 = vadd.f32 %v2837_v5, %v11723_v49 }
 0x2eb   : > { %v2841_v9 = vpop.f32.mrf.mxu0 }
 0x2ec   : > { %v2914_v28 = vpop.f32.mrf.mxu1  ;;  %v2911_v56 = vadd.f32 %v2910_v32, %v2838_v47  ;;  %v2842_v51 = vadd.f32 %v2841_v9, %v11719_v25 }
 0x2ed   : > { %v2843_v2 = vpop.f32.mrf.mxu0 }
 0x2ee   : > { %v2916_v38 = vpop.f32.mrf.mxu1  ;;  %v2844_v10 = vadd.f32 %v2843_v2, %v11723_v49  ;;  %v2915_v6 = vadd.f32 %v2914_v28, %v2842_v51 }
 0x2ef   : > { %v2845_v23 = vpop.f32.mrf.mxu0 }
 0x2f0   : > { %v2918_v60 = vpop.f32.mrf.mxu1  ;;  %v2846_v27 = vadd.f32 %v2845_v23, %v11719_v25  ;;  %v11736_v24 = vadd.f32 %v2916_v38, %v2844_v10 }
 0x2f1   : > { %v2847_v52 = vpop.f32.mrf.mxu0 }
 0x2f2   : > { %v2920_v13 = vpop.f32.mrf.mxu1  ;;  %v2848_v14 = vadd.f32 %v2847_v52, %v11723_v49  ;;  %v11739_v26 = vadd.f32 %v2918_v60, %v2846_v27 }
 0x2f3   : > { %v2851_v3 = vpop.f32.mrf.mxu0 }
 0x2f4   : > { %v2924_v4 = vpop.f32.mrf.mxu1  ;;  %v2852_v57 = vadd.f32 %v2851_v3, %v11719_v25  ;;  %v11742_v12 = vadd.f32 %v2920_v13, %v2848_v14 }
 0x2f5   : > { %v2853_v63 = vpop.f32.mrf.mxu0 }
 0x2f6   : > { %v2926_v55 = vpop.f32.mrf.mxu1  ;;  %v2854_v59 = vadd.f32 %v2853_v63, %v11723_v49  ;;  %v11745_v1 = vadd.f32 %v2924_v4, %v2852_v57 }
 0x2f7   : > { %v2855_v15 = vpop.f32.mrf.mxu0 }
 0x2f8   : > { %v2928_v36 = vpop.f32.mrf.mxu1  ;;  %v2856_v11 = vadd.f32 %v2855_v15, %v11719_v25  ;;  %v11748_v22 = vadd.f32 %v2926_v55, %v2854_v59 }
 0x2f9   : > { %v2857_v21 = vpop.f32.mrf.mxu0 }
 0x2fa   : > { %v2930_v35 = vpop.f32.mrf.mxu1  ;;  %v2858_v7 = vadd.f32 %v2857_v21, %v11723_v49  ;;  %v11751_v33 = vadd.f32 %v2928_v36, %v2856_v11 }
 0x2fb   : > { %v2861_v0 = vpop.f32.mrf.mxu0 }
 0x2fc   : > { %v2934_v62 = vpop.f32.mrf.mxu1  ;;  %v2862_v40 = vadd.f32 %v2861_v0, %v11719_v25  ;;  %v11754_v41 = vadd.f32 %v2930_v35, %v2858_v7 }
 0x2fd   : > { %v2863_v61 = vpop.f32.mrf.mxu0 }
 0x2fe   : > { %v2936_v17 = vpop.f32.mrf.mxu1  ;;  %v2864_v45 = vadd.f32 %v2863_v61, %v11723_v49  ;;  %v11757_v39 = vadd.f32 %v2934_v62, %v2862_v40 }
 0x2ff   : > { %v2865_v18 = vpop.f32.mrf.mxu0 }
 0x300   : > { %v2938_v8 = vpop.f32.mrf.mxu1  ;;  %v2866_v48 = vadd.f32 %v2865_v18, %v11719_v25  ;;  %v11760_v30 = vadd.f32 %v2936_v17, %v2864_v45 }
 0x301   : > { %v2867_v54 = vpop.f32.mrf.mxu0 }
 0x302   : > { %v2940_v34 = vpop.f32.mrf.mxu1  ;;  %v2868_v37 = vadd.f32 %v2867_v54, %v11723_v49  ;;  %v11763_v58 = vadd.f32 %v2938_v8, %v2866_v48 }
 0x304   : > { %v11765_v5 = vadd.f32 %v2940_v34, %v2868_v37 }
 0x323   : > { %v2977_v32 = vpop.f32.mrf.mxu0 }
 0x324   : > { %v3050_v47 = vpop.f32.mrf.mxu1  ;;  %v2978_v9 = vadd.f32 %v2977_v32, %v11726_v44 }
 0x325   : > { %v2979_v28 = vpop.f32.mrf.mxu0 }
 0x326   : > { %v3052_v51 = vpop.f32.mrf.mxu1  ;;  %v3051_v2 = vadd.f32 %v3050_v47, %v2978_v9  ;;  %v2980_v38 = vadd.f32 %v2979_v28, %v11729_v43 }
 0x327   : > { %v2981_v25 = vpop.f32.mrf.mxu0 }
 0x328   : > { %v3054_v10 = vpop.f32.mrf.mxu1  ;;  %v3053_v23 = vadd.f32 %v3052_v51, %v2980_v38  ;;  %v2982_v60 = vadd.f32 %v2981_v25, %v2909_v16  ;;  %9991 = vtanh.f32 %v3051_v2 }
 0x329   : > { %v2983_v27 = vpop.f32.mrf.mxu0 }
 0x32a   : > { %v3056_v52 = vpop.f32.mrf.mxu1  ;;  %v3055_v49 = vadd.f32 %v3054_v10, %v2982_v60  ;;  %v2984_v13 = vadd.f32 %v2983_v27, %v2911_v56 }
 0x32b   : > { %v2987_v14 = vpop.f32.mrf.mxu0 }
 0x32c   : > { %v3060_v3 = vpop.f32.mrf.mxu1  ;;  %9993 = vtanh.f32 %v3055_v49  ;;  %v3057_v4 = vadd.f32 %v3056_v52, %v2984_v13  ;;  %v2988_v57 = vadd.f32 %v2987_v14, %v2915_v6 }
 0x32d   : > { %9995 = vtanh.f32 %v3053_v23  ;;  %v2989_v44 = vpop.f32.mrf.mxu0 }
 0x32e   : > { %v3062_v63 = vpop.f32.mrf.mxu1  ;;  %9997 = vtanh.f32 %v3057_v4  ;;  %v2990_v43 = vadd.f32 %v2989_v44, %v11736_v24  ;;  %v3061_v55 = vadd.f32 %v3060_v3, %v2988_v57 }
 0x32f   : > { %v2991_v59 = vpop.f32.mrf.mxu0 }
 0x330   : > { %v3064_v15 = vpop.f32.mrf.mxu1  ;;  %v2992_v16 = vadd.f32 %v2991_v59, %v11739_v26  ;;  %v3063_v36 = vadd.f32 %v3062_v63, %v2990_v43  ;;  %9999 = vtanh.f32 %v3061_v55 }
 0x331   : > { %v2993_v11 = vpop.f32.mrf.mxu0 }
 0x332   : > { %v3066_v56 = vpop.f32.mrf.mxu1  ;;  %v2994_v21 = vadd.f32 %v2993_v11, %v11742_v12  ;;  %v3065_v35 = vadd.f32 %v3064_v15, %v2992_v16 }
 0x333   : > { %v2997_v7 = vpop.f32.mrf.mxu0 }
 0x334   : > { %v3070_v6 = vpop.f32.mrf.mxu1  ;;  %10001 = vtanh.f32 %v3065_v35  ;;  %v2998_v0 = vadd.f32 %v2997_v7, %v11745_v1  ;;  %v3067_v62 = vadd.f32 %v3066_v56, %v2994_v21 }
 0x335   : > { %10003 = vtanh.f32 %v3063_v36  ;;  %v2999_v24 = vpop.f32.mrf.mxu0  ;;  %v9992_v18 = vpop.eup %9991 }
 0x336   : > { %v3072_v40 = vpop.f32.mrf.mxu1  ;;  %10005 = vtanh.f32 %v3067_v62  ;;  %v3000_v61 = vadd.f32 %v2999_v24, %v11748_v22  ;;  %v3071_v26 = vadd.f32 %v3070_v6, %v2998_v0 }
 0x337   : > { %v3001_v17 = vpop.f32.mrf.mxu0 }
 0x338   : > { %v3074_v45 = vpop.f32.mrf.mxu1  ;;  %v3002_v12 = vadd.f32 %v3001_v17, %v11751_v33  ;;  %v3073_v8 = vadd.f32 %v3072_v40, %v3000_v61  ;;  %10007 = vtanh.f32 %v3071_v26 }
 0x339   : > { %v9994_v48 = vpop.eup %9993  ;;  %v3003_v54 = vpop.f32.mrf.mxu0 }
 0x33a   : > { %v3076_v34 = vpop.f32.mrf.mxu1  ;;  %v9996_v37 = vpop.eup %9995  ;;  %v3004_v1 = vadd.f32 %v3003_v54, %v11754_v41  ;;  %v3075_v32 = vadd.f32 %v3074_v45, %v3002_v12  ;;  %v11776_v47 = vpack.c.bf16 %v9994_v48, %v9992_v18  ;;  %v3249_v45 = vld [vmem:[%s10908_s23] sm:$0x3] }
 0x33b   : > { %v9998_v9 = vpop.eup %9997  ;;  %v3007_v28 = vpop.f32.mrf.mxu0  ;;  %v12433_v18 = vld [vmem:[#allocation38_spill] sm:$0xff] }
 0x33c   : > { %v3080_v22 = vpop.f32.mrf.mxu1  ;;  %10009 = vtanh.f32 %v3075_v32  ;;  %v3008_v51 = vadd.f32 %v3007_v28, %v11757_v39  ;;  %v3077_v2 = vadd.f32 %v3076_v34, %v3004_v1  ;;  %v11779_v38 = vpack.c.bf16 %v9998_v9, %v9996_v37 }
 0x33d   : > { %10011 = vtanh.f32 %v3073_v8  ;;  %v3009_v33 = vpop.f32.mrf.mxu0  ;;  %v10000_v27 = vpop.eup %9999  ;;  %v3254_v12 = vrot.slane %v3249_v45, %v12433_v18  ;;  %v12434_v8 = vld [vmem:[#allocation40_spill] sm:$0xff] }
 0x33e   : > { %v3082_v25 = vpop.f32.mrf.mxu1  ;;  %10013 = vtanh.f32 %v3077_v2  ;;  %v3010_v10 = vadd.f32 %v3009_v33, %v11760_v30  ;;  %v3081_v41 = vadd.f32 %v3080_v22, %v3008_v51  ;;  %v3258_v48 = vrot.slane %v3249_v45, %v12434_v8  ;;  %v4536_v45 = vld [vmem:[%s10910_s12 + $0x340] sm:$0xff] }
 0x33f   : > { %v3011_v23 = vpop.f32.mrf.mxu0 }
 0x340   : > { %v3084_v60 = vpop.f32.mrf.mxu1  ;;  %v3012_v52 = vadd.f32 %v3011_v23, %v11763_v58  ;;  %v3083_v49 = vadd.f32 %v3082_v25, %v3010_v10  ;;  %10015 = vtanh.f32 %v3081_v41 }
 0x341   : > { %v10002_v13 = vpop.eup %10001  ;;  %v3013_v14 = vpop.f32.mrf.mxu0 }
 0x342   : > { %v3086_v3 = vpop.f32.mrf.mxu1  ;;  %v10004_v39 = vpop.eup %10003  ;;  %v3014_v4 = vadd.f32 %v3013_v14, %v11765_v5  ;;  %v3085_v57 = vadd.f32 %v3084_v60, %v3012_v52  ;;  %v11784_v44 = vpack.c.bf16 %v10002_v13, %v10000_v27  ;;  %v10502_v27 = vmov 1966171168   ;;  %v12435_v14 = vld [vmem:[#allocation41_spill] sm:$0xff] }
 0x343   : > { %v10006_v63 = vpop.eup %10005  ;;  %v4072_v52 = vunpack.c.l.s4 %v10502_v27  ;;  %v4504_v27 = vld [vmem:[%s10910_s12 + $0x240] sm:$0xff] }
 0x344   : > { %10017 = vtanh.f32 %v3085_v57  ;;  %v3087_v30 = vadd.f32 %v3086_v3, %v3014_v4  ;;  %v11786_v43 = vpack.c.bf16 %v10006_v63, %v10004_v39 }
 0x345   : > { %10019 = vtanh.f32 %v3083_v49  ;;  %v10008_v55 = vpop.eup %10007  ;;  %v4073_v49 = vunpack.c.0.s8 %v4072_v52 }
 0x346   : > { %10021 = vtanh.f32 %v3087_v30 }
 0x347   : > { %v11803_v3 = vsub.s32 %v4073_v49, %v11398_v20 }
 0x349   : > { %v10010_v58 = vpop.eup %10009 }
 0x34a   : > { %v10012_v59 = vpop.eup %10011  ;;  %v11788_v15 = vpack.c.bf16 %v10010_v58, %v10008_v55 }
 0x34b   : > { %v10014_v16 = vpop.eup %10013 }
 0x34c   : > { %v11790_v36 = vpack.c.bf16 %v10014_v16, %v10012_v59  ;;  %v4544_v16 = vld [vmem:[%s10910_s12 + $0x380] sm:$0xff] }
 0x34d   : > { %v10016_v5 = vpop.eup %10015 }
 0x351   : > { %v10018_v11 = vpop.eup %10017 }
 0x352   : > { %v10020_v56 = vpop.eup %10019  ;;  %v11792_v21 = vpack.c.bf16 %v10018_v11, %v10016_v5  ;;  %v4552_v5 = vld [vmem:[%s10910_s12 + $0x3c0] sm:$0xff] }
 0x353   : > { %v10022_v35 = vpop.eup %10021  ;;  %v11819_v11 = vld [vmem:[%s10896_s28] sm:$0xff] }
 0x354   : > { %v11794_v7 = vpack.c.bf16 %v10022_v35, %v10020_v56 }
 0x363   : > { %v3935_v6 = vpop.f32.mrf.mxu0 }
 0x364   : > { %v3976_v0 = vpop.f32.mrf.mxu1  ;;  %v3936_v54 = vadd.f32 %v3935_v6, %v3254_v12 }
 0x365   : > { %v3937_v62 = vpop.f32.mrf.mxu0 }
 0x366   : > { %v3978_v24 = vpop.f32.mrf.mxu1  ;;  %v3938_v34 = vadd.f32 %v3937_v62, %v3258_v48  ;;  %v3977_v37 = vadd.f32 %v3976_v0, %v3936_v54  ;;  %v9006_v62 = vcombine.high %v4544_v16, %v4552_v5 }
 0x367   : > { %v3939_v40 = vpop.f32.mrf.mxu0 }
 0x368   : > { %v3980_v61 = vpop.f32.mrf.mxu1  ;;  %v3979_v9 = vadd.f32 %v3978_v24, %v3938_v34  ;;  %v4545_v24 = vld [vmem:[%s10910_s12 + $0x388] sm:$0xff] }
 0x369   : > { %v3940_v26 = vpop.f32.mrf.mxu0  ;;  %v4553_v40 = vld [vmem:[%s10910_s12 + $0x3c8] sm:$0xff]  ;;  %v943_v61 = vcombine.high %v11819_v11, %v11819_v11 }
 0x36a   : > { %v3981_v17 = vpop.f32.mrf.mxu1  ;;  %v9008_v48 = vcombine.high %v4545_v24, %v4553_v40 }
 0x36b   : > { %v4528_v17 = vld [vmem:[%s10910_s12 + $0x300] sm:$0xff] }
 0x36c   : > { %v8998_v34 = vcombine.high %v4528_v17, %v4536_v45 }
 0x3a3   : > { %v4017_v1 = vpop.f32.mrf.mxu0 }
 0x3a4   : > { %v4058_v32 = vpop.f32.mrf.mxu1  ;;  %v4018_v28 = vadd.f32 %v4017_v1, %v3977_v37  ;;  %v4529_v37 = vld [vmem:[%s10910_s12 + $0x308] sm:$0xff] }
 0x3a5   : > { %v4019_v22 = vpop.f32.mrf.mxu0  ;;  %v4537_v1 = vld [vmem:[%s10910_s12 + $0x348] sm:$0xff] }
 0x3a6   : > { %v4060_v51 = vpop.f32.mrf.mxu1  ;;  %v4059_v2 = vadd.f32 %v4058_v32, %v4018_v28  ;;  %v4020_v33 = vadd.f32 %v4019_v22, %v3979_v9  ;;  %v11831_v32 = vpack.c.bf16 %v943_v61, %v943_v61  ;;  %v4512_v28 = vld [vmem:[%s10910_s12 + $0x280] sm:$0xff]  ;;  %v8999_v52 = vcombine.low %v4529_v37, %v4537_v1 }
 0x3a7   : > { %v4021_v25 = vpop.f32.mrf.mxu0  ;;  %v4520_v22 = vld [vmem:[%s10910_s12 + $0x2c0] sm:$0xff] }
 0x3a8   : > { %v4062_v10 = vpop.f32.mrf.mxu1  ;;  %v4061_v41 = vadd.f32 %v4060_v51, %v4020_v33  ;;  %10023 = vtanh.f32 %v4059_v2  ;;  %v9007_v51 = vcombine.low %v4545_v24, %v4553_v40  ;;  %v8997_v33 = vcombine.low %v4528_v17, %v4536_v45  ;;  %v4457_v17 = vld [vmem:[%s10910_s12 + $0xc8] sm:$0xff]  ;;  %v4432_v45 = vld [vmem:[%s10910_s12] sm:$0xff] }
 0x3a9   : > { %v4022_v23 = vpop.f32.mrf.mxu0  ;;  %v9000_v25 = vcombine.high %v4529_v37, %v4537_v1  ;;  %v8990_v10 = vcombine.high %v4512_v28, %v4520_v22  ;;  %v4433_v37 = vld [vmem:[%s10910_s12 + $0x8] sm:$0xff] }
 0x3aa   : > { %v4063_v60 = vpop.f32.mrf.mxu1  ;;  %10025 = vtanh.f32 %v4061_v41  ;;  %v4513_v41 = vld [vmem:[%s10910_s12 + $0x288] sm:$0xff] }
 0x3ab   : > { %10027 = vtanh.f32 %v11614_v42  ;;  %v4521_v23 = vld [vmem:[%s10910_s12 + $0x2c8] sm:$0xff]  ;;  %v4496_v60 = vld [vmem:[%s10910_s12 + $0x200] sm:$0xff] }
 0x3ac   : > { %10029 = vtanh.f32 %v11604_v53  ;;  %v8992_v49 = vcombine.high %v4513_v41, %v4521_v23  ;;  %v4441_v1 = vld [vmem:[%s10910_s12 + $0x48] sm:$0xff] }
 0x3ad   : > { %10031 = vtanh.f32 %v12435_v14  ;;  %v4497_v14 = vld [vmem:[%s10910_s12 + $0x208] sm:$0xff] }
 0x3ae   : > { %10033 = vtanh.f32 %v11631_v50 }
 0x3af   : > { %10035 = vtanh.f32 %v11625_v19 }
 0x3b0   : > { %10037 = vtanh.f32 %v11622_v31 }
 0x3b5   : > { %v10024_v13 = vpop.eup %10023 }
 0x3b7   : > { %v10026_v39 = vpop.eup %10025 }
 0x3b8   : > { %v4070_v4 = vcombine.low %v10024_v13, %v10026_v39  ;;  %v10028_v56 = vpop.eup %10027  ;;  %v8982_v13 = vcombine.high %v4496_v60, %v4504_v27  ;;  %v4505_v39 = vld [vmem:[%s10910_s12 + $0x248] sm:$0xff] }
 0x3b9   : > { %v10030_v35 = vpop.eup %10029 }
 0x3ba   : > { %v4077_v57 = vrot.slane %v4070_v4, %v11803_v3  ;;  %v10032_v0 = vpop.eup %10031  ;;  %v4480_v4 = vld [vmem:[%s10910_s12 + $0x180] sm:$0xff] }
 0x3bb   : > { %v10034_v26 = vpop.eup %10033 }
 0x3bc   : > { %v4085_v53 = vrot.slane %v4077_v57, %v11803_v3  ;;  %v4078_v42 = vcombine.high %v4077_v57, %v4077_v57  ;;  %v10036_v12 = vpop.eup %10035  ;;  %v4488_v57 = vld [vmem:[%s10910_s12 + $0x1c0] sm:$0xff] }
 0x3bd   : > { %v10038_v9 = vpop.eup %10037 }
 0x3be   : > { %v4102_v63 = vrot.slane %v4085_v53, %v12434_v8  ;;  %v4098_v30 = vrot.slane %v4085_v53, %v12433_v18  ;;  %v4092_v55 = vrot.slane %v4078_v42, %v11803_v3  ;;  %v4093_v50 = vcombine.high %v4085_v53, %v4085_v53 }
 0x3bf   : > { %v8991_v53 = vcombine.low %v4513_v41, %v4521_v23  ;;  %v8981_v42 = vcombine.low %v4496_v60, %v4504_v27  ;;  %v4656_v41 = vld [vmem:[%s10910_s12 + $0x700] sm:$0xff]  ;;  %v8951_v60 = vcombine.low %v4433_v37, %v4441_v1 }
 0x3c0   : > { %4169 = vmatprep.mubr.f32.mxu0 %v4102_v63  ;;  %v4182_v19 = vrot.slane %v4092_v55, %v12434_v8  ;;  %v4262_v58 = vrot.slane %v4093_v50, %v12434_v8  ;;  %v4178_v59 = vrot.slane %v4092_v55, %v12433_v18  ;;  %v4094_v31 = vcombine.high %v4092_v55, %v4092_v55  ;;  %v4481_v55 = vld [vmem:[%s10910_s12 + $0x188] sm:$0xff]  ;;  %v4664_v23 = vld [vmem:[%s10910_s12 + $0x740] sm:$0xff] }
 0x3c1   : > { %4170 = vmatmul.mubr.f32.vlgmr.msra.gmra.mxu0 %v4098_v30  ;;  %v4258_v54 = vrot.slane %v4093_v50, %v12433_v18  ;;  %v8984_v63 = vcombine.high %v4497_v14, %v4505_v39  ;;  %v8974_v30 = vcombine.high %v4480_v4, %v4488_v57  ;;  %v4489_v50 = vld [vmem:[%s10910_s12 + $0x1c8] sm:$0xff] }
 0x3c2   : > { %4294 = vmatpush1.xpose.msra.mxu0 %v10028_v56  ;;  %4249 = vmatprep.mubr.f32.mxu1 %v4182_v19  ;;  %v4342_v6 = vrot.slane %v4094_v31, %v12434_v8  ;;  %v9005_v8 = vcombine.low %v4544_v16, %v4552_v5  ;;  %v4338_v2 = vrot.slane %v4094_v31, %v12433_v18  ;;  %v4464_v19 = vld [vmem:[%s10910_s12 + $0x100] sm:$0xff]  ;;  %v4465_v56 = vld [vmem:[%s10910_s12 + $0x108] sm:$0xff] }
 0x3c3   : > { %4295 = vmatprep.subr.mxu0 %v10030_v35  ;;  %4329 = vmatprep.mubr.f32.mxu0 %v4262_v58  ;;  %v8989_v18 = vcombine.low %v4512_v28, %v4520_v22  ;;  %v4472_v58 = vld [vmem:[%s10910_s12 + $0x140] sm:$0xff]  ;;  %v8973_v31 = vcombine.low %v4480_v4, %v4488_v57  ;;  %v8976_v16 = vcombine.high %v4481_v55, %v4489_v50  ;;  %v4473_v35 = vld [vmem:[%s10910_s12 + $0x148] sm:$0xff] }
 0x3c4   : > { %4250 = vmatmul.mubr.f32.vlgmr.msra.gmra.mxu1 %v4178_v59  ;;  %v8983_v59 = vcombine.low %v4497_v14, %v4505_v39  ;;  %v8966_v5 = vcombine.high %v4464_v19, %v4472_v58  ;;  %v8965_v24 = vcombine.low %v4464_v19, %v4472_v58  ;;  %v8968_v40 = vcombine.high %v4465_v56, %v4473_v35  ;;  %v4680_v28 = vld [vmem:[%s10910_s12 + $0x7c0] sm:$0xff] }
 0x3c5   : > { %4374 = vmatpush1.xpose.msra.mxu1 %v10034_v26  ;;  %4409 = vmatprep.mubr.f32.mxu1 %v4342_v6  ;;  %v4448_v6 = vld [vmem:[%s10910_s12 + $0x80] sm:$0xff]  ;;  %v4449_v26 = vld [vmem:[%s10910_s12 + $0x88] sm:$0xff]  ;;  %v9061_v57 = vcombine.low %v4656_v41, %v4664_v23 }
 0x3c6   : > { %4375 = vmatprep.subr.mxu1 %v10036_v12  ;;  %4296 = vmatpush1.xpose.msra.mxu0 %v10032_v0  ;;  %v4456_v0 = vld [vmem:[%s10910_s12 + $0xc0] sm:$0xff]  ;;  %v8959_v22 = vcombine.low %v4449_v26, %v4457_v17 }
 0x3c7   : > { %5332 = vmatprep.subr.bf16.mxu0 %v9006_v62  ;;  %v8975_v62 = vcombine.low %v4481_v55, %v4489_v50  ;;  %v8958_v61 = vcombine.high %v4448_v6, %v4456_v0  ;;  %v4440_v12 = vld [vmem:[%s10910_s12 + $0x40] sm:$0xff] }
 0x3c8   : > { %v4640_v14 = vld [vmem:[%s10910_s12 + $0x680] sm:$0xff] }
 0x3c9   : > { %4376 = vmatpush1.xpose.msra.mxu1 %v10038_v9  ;;  %4330 = vmatmul.mubr.f32.vlgmr.msra.gmra.mxu0 %v4258_v54  ;;  %v8960_v54 = vcombine.high %v4449_v26, %v4457_v17  ;;  %v4672_v9 = vld [vmem:[%s10910_s12 + $0x780] sm:$0xff] }
 0x3ca   : > { %5333 = vmatpush1.bf16.msra.mxu0 %v9005_v8  ;;  %5373 = vmatprep.subr.bf16.mxu1 %v9008_v48  ;;  %v8967_v8 = vcombine.low %v4465_v56, %v4473_v35  ;;  %v8957_v48 = vcombine.low %v4448_v6, %v4456_v0  ;;  %v9069_v27 = vcombine.low %v4672_v9, %v4680_v28  ;;  %v4648_v39 = vld [vmem:[%s10910_s12 + $0x6c0] sm:$0xff] }
 0x3cb   : > { %5334 = vmatprep.subr.bf16.mxu0 %v8998_v34  ;;  %5364 = vmatprep.mubr.bf16.mxu0 %v11831_v32  ;;  %v8950_v34 = vcombine.high %v4432_v45, %v4440_v12  ;;  %v4624_v55 = vld [vmem:[%s10910_s12 + $0x600] sm:$0xff]  ;;  %v9053_v58 = vcombine.low %v4640_v14, %v4648_v39 }
 0x3cc   : > { %4410 = vmatmul.mubr.f32.vlgmr.msra.gmra.mxu1 %v4338_v2  ;;  %v8952_v2 = vcombine.high %v4433_v37, %v4441_v1  ;;  %v4632_v50 = vld [vmem:[%s10910_s12 + $0x640] sm:$0xff] }
 0x3cd   : > { %5374 = vmatpush1.bf16.msra.mxu1 %v9007_v51  ;;  %5405 = vmatprep.mubr.bf16.mxu1 %v11831_v32  ;;  %v8949_v51 = vcombine.low %v4432_v45, %v4440_v12  ;;  %v4608_v56 = vld [vmem:[%s10910_s12 + $0x580] sm:$0xff]  ;;  %v9045_v0 = vcombine.low %v4624_v55, %v4632_v50 }
 0x3ce   : > { %5335 = vmatpush1.bf16.msra.mxu0 %v8997_v33  ;;  %5375 = vmatprep.subr.bf16.mxu1 %v9000_v25  ;;  %v9070_v33 = vcombine.high %v4672_v9, %v4680_v28  ;;  %v4673_v25 = vld [vmem:[%s10910_s12 + $0x788] sm:$0xff]  ;;  %v4616_v35 = vld [vmem:[%s10910_s12 + $0x5c0] sm:$0xff] }
 0x3cf   : > { %5336 = vmatprep.subr.bf16.mxu0 %v8990_v10  ;;  %v4681_v10 = vld [vmem:[%s10910_s12 + $0x7c8] sm:$0xff]  ;;  %v4592_v26 = vld [vmem:[%s10910_s12 + $0x500] sm:$0xff]  ;;  %v9037_v12 = vcombine.low %v4608_v56, %v4616_v35 }
 0x3d0   : > { %v9071_v4 = vcombine.low %v4673_v25, %v4681_v10  ;;  %v4600_v17 = vld [vmem:[%s10910_s12 + $0x540] sm:$0xff] }
 0x3d1   : > { %5376 = vmatpush1.bf16.msra.mxu1 %v8999_v52  ;;  %v9072_v52 = vcombine.high %v4673_v25, %v4681_v10  ;;  %v4576_v37 = vld [vmem:[%s10910_s12 + $0x480] sm:$0xff]  ;;  %v9029_v28 = vcombine.low %v4592_v26, %v4600_v17 }
 0x3d2   : > { %5337 = vmatpush1.bf16.msra.mxu0 %v8989_v18  ;;  %5377 = vmatprep.subr.bf16.mxu1 %v8992_v49  ;;  %v9062_v18 = vcombine.high %v4656_v41, %v4664_v23  ;;  %v4657_v49 = vld [vmem:[%s10910_s12 + $0x708] sm:$0xff]  ;;  %v4584_v1 = vld [vmem:[%s10910_s12 + $0x4c0] sm:$0xff] }
 0x3d3   : > { %5338 = vmatprep.subr.bf16.mxu0 %v8982_v13  ;;  %v4665_v13 = vld [vmem:[%s10910_s12 + $0x748] sm:$0xff]  ;;  %v4560_v25 = vld [vmem:[%s10910_s12 + $0x400] sm:$0xff]  ;;  %v9021_v23 = vcombine.low %v4576_v37, %v4584_v1 }
 0x3d4   : > { %v9063_v19 = vcombine.low %v4657_v49, %v4665_v13  ;;  %v4568_v10 = vld [vmem:[%s10910_s12 + $0x440] sm:$0xff] }
 0x3d5   : > { %5378 = vmatpush1.bf16.msra.mxu1 %v8991_v53  ;;  %v9064_v53 = vcombine.high %v4657_v49, %v4665_v13  ;;  %v4546_v49 = vld [vmem:[%s10910_s12 + $0x390] sm:$0xff] }
 0x3d6   : > { %5339 = vmatpush1.bf16.msra.mxu0 %v8981_v42  ;;  %5379 = vmatprep.subr.bf16.mxu1 %v8984_v63  ;;  %v9054_v42 = vcombine.high %v4640_v14, %v4648_v39  ;;  %v4641_v63 = vld [vmem:[%s10910_s12 + $0x688] sm:$0xff]  ;;  %v4554_v13 = vld [vmem:[%s10910_s12 + $0x3d0] sm:$0xff]  ;;  %v9013_v39 = vcombine.low %v4560_v25, %v4568_v10 }
 0x3d7   : > { %5340 = vmatprep.subr.bf16.mxu0 %v8974_v30  ;;  %v4649_v30 = vld [vmem:[%s10910_s12 + $0x6c8] sm:$0xff] }
 0x3d8   : > { %v9055_v6 = vcombine.low %v4641_v63, %v4649_v30 }
 0x3d9   : > { %5380 = vmatpush1.bf16.msra.mxu1 %v8983_v59  ;;  %v9056_v59 = vcombine.high %v4641_v63, %v4649_v30  ;;  %v4530_v63 = vld [vmem:[%s10910_s12 + $0x310] sm:$0xff] }
 0x3da   : > { %5341 = vmatpush1.bf16.msra.mxu0 %v8973_v31  ;;  %5381 = vmatprep.subr.bf16.mxu1 %v8976_v16  ;;  %v9046_v31 = vcombine.high %v4624_v55, %v4632_v50  ;;  %v4625_v16 = vld [vmem:[%s10910_s12 + $0x608] sm:$0xff]  ;;  %v4538_v30 = vld [vmem:[%s10910_s12 + $0x350] sm:$0xff]  ;;  %v11900_v50 = vpack.c.bf16 %v11819_v11, %v11819_v11 }
 0x3db   : > { %5342 = vmatprep.subr.bf16.mxu0 %v8966_v5  ;;  %v4633_v5 = vld [vmem:[%s10910_s12 + $0x648] sm:$0xff]  ;;  %v9001_v11 = vcombine.low %v4530_v63, %v4538_v30 }
 0x3dc   : > { %v9047_v45 = vcombine.low %v4625_v16, %v4633_v5 }
 0x3dd   : > { %5382 = vmatpush1.bf16.msra.mxu1 %v8975_v62  ;;  %v9048_v62 = vcombine.high %v4625_v16, %v4633_v5  ;;  %v4539_v16 = vld [vmem:[%s10910_s12 + $0x358] sm:$0xff]  ;;  %v4514_v5 = vld [vmem:[%s10910_s12 + $0x290] sm:$0xff] }
 0x3de   : > { %5343 = vmatpush1.bf16.msra.mxu0 %v8965_v24  ;;  %5383 = vmatprep.subr.bf16.mxu1 %v8968_v40  ;;  %v9038_v24 = vcombine.high %v4608_v56, %v4616_v35  ;;  %v4609_v40 = vld [vmem:[%s10910_s12 + $0x588] sm:$0xff]  ;;  %v4522_v56 = vld [vmem:[%s10910_s12 + $0x2d0] sm:$0xff] }
 0x3df   : > { %5344 = vmatprep.subr.bf16.mxu0 %v8958_v61  ;;  %v4617_v61 = vld [vmem:[%s10910_s12 + $0x5c8] sm:$0xff] }
 0x3e0   : > { %v9039_v9 = vcombine.low %v4609_v40, %v4617_v61 }
 0x3e1   : > { %5384 = vmatpush1.bf16.msra.mxu1 %v8967_v8  ;;  %v9040_v8 = vcombine.high %v4609_v40, %v4617_v61  ;;  %v4498_v40 = vld [vmem:[%s10910_s12 + $0x210] sm:$0xff] }
 0x3e2   : > { %5345 = vmatpush1.bf16.msra.mxu0 %v8957_v48  ;;  %5385 = vmatprep.subr.bf16.mxu1 %v8960_v54  ;;  %v9030_v48 = vcombine.high %v4592_v26, %v4600_v17  ;;  %v4593_v54 = vld [vmem:[%s10910_s12 + $0x508] sm:$0xff]  ;;  %v4506_v61 = vld [vmem:[%s10910_s12 + $0x250] sm:$0xff]  ;;  %v8993_v17 = vcombine.low %v4514_v5, %v4522_v56 }
 0x3e3   : > { %5346 = vmatprep.subr.bf16.mxu0 %v8950_v34  ;;  %v4601_v34 = vld [vmem:[%s10910_s12 + $0x548] sm:$0xff] }
 0x3e4   : > { %v9031_v41 = vcombine.low %v4593_v54, %v4601_v34 }
 0x3e5   : > { %5386 = vmatpush1.bf16.msra.mxu1 %v8959_v22  ;;  %v9032_v22 = vcombine.high %v4593_v54, %v4601_v34  ;;  %v4482_v54 = vld [vmem:[%s10910_s12 + $0x190] sm:$0xff] }
 0x3e6   : > { %5347 = vmatpush1.bf16.msra.mxu0 %v8949_v51  ;;  %5387 = vmatprep.subr.bf16.mxu1 %v8952_v2  ;;  %v9022_v51 = vcombine.high %v4576_v37, %v4584_v1  ;;  %v4577_v2 = vld [vmem:[%s10910_s12 + $0x488] sm:$0xff]  ;;  %v4490_v34 = vld [vmem:[%s10910_s12 + $0x1d0] sm:$0xff]  ;;  %v8985_v1 = vcombine.low %v4498_v40, %v4506_v61 }
 0x3e7   : > { %5348 = vmatprep.subr.bf16.mxu0 %v9070_v33  ;;  %v4585_v33 = vld [vmem:[%s10910_s12 + $0x4c8] sm:$0xff] }
 0x3e8   : > { %v9023_v14 = vcombine.low %v4577_v2, %v4585_v33 }
 0x3e9   : > { %5388 = vmatpush1.bf16.msra.mxu1 %v8951_v60  ;;  %v9024_v60 = vcombine.high %v4577_v2, %v4585_v33  ;;  %v4474_v2 = vld [vmem:[%s10910_s12 + $0x150] sm:$0xff] }
 0x3ea   : > { %5349 = vmatpush2.bf16.msra.mxu0 %v9069_v27  ;;  %5389 = vmatprep.subr.bf16.mxu1 %v9072_v52  ;;  %v9014_v27 = vcombine.high %v4560_v25, %v4568_v10  ;;  %v4561_v52 = vld [vmem:[%s10910_s12 + $0x408] sm:$0xff]  ;;  %v8977_v25 = vcombine.low %v4482_v54, %v4490_v34 }
 0x3eb   : > { %5350 = vmatprep.subr.bf16.mxu0 %v9062_v18  ;;  %v4569_v18 = vld [vmem:[%s10910_s12 + $0x448] sm:$0xff] }
 0x3ec   : > { %v9015_v55 = vcombine.low %v4561_v52, %v4569_v18 }
 0x3ed   : > { %5390 = vmatpush2.bf16.msra.mxu1 %v9071_v4  ;;  %v9016_v4 = vcombine.high %v4561_v52, %v4569_v18  ;;  %v4458_v52 = vld [vmem:[%s10910_s12 + $0xd0] sm:$0xff] }
 0x3ee   : > { %5351 = vmatpush2.bf16.msra.mxu0 %v9061_v57  ;;  %5391 = vmatprep.subr.bf16.mxu1 %v9064_v53  ;;  %v9010_v57 = vcombine.high %v4546_v49, %v4554_v13  ;;  %v4547_v53 = vld [vmem:[%s10910_s12 + $0x398] sm:$0xff] }
 0x3ef   : > { %5352 = vmatprep.subr.bf16.mxu0 %v9054_v42  ;;  %v4555_v42 = vld [vmem:[%s10910_s12 + $0x3d8] sm:$0xff] }
 0x3f0   : > { %v9011_v35 = vcombine.low %v4547_v53, %v4555_v42 }
 0x3f1   : > { %5392 = vmatpush2.bf16.msra.mxu1 %v9063_v19  ;;  %v9009_v19 = vcombine.low %v4546_v49, %v4554_v13 }
 0x3f2   : > { %5353 = vmatpush2.bf16.msra.mxu0 %v9053_v58  ;;  %5393 = vmatprep.subr.bf16.mxu1 %v9056_v59  ;;  %v9012_v58 = vcombine.high %v4547_v53, %v4555_v42  ;;  %v9002_v59 = vcombine.high %v4530_v63, %v4538_v30  ;;  %v4442_v53 = vld [vmem:[%s10910_s12 + $0x50] sm:$0xff] }
 0x3f3   : > { %5354 = vmatprep.subr.bf16.mxu0 %v9046_v31  ;;  %v4531_v31 = vld [vmem:[%s10910_s12 + $0x318] sm:$0xff] }
 0x3f4   : > { %v9003_v26 = vcombine.low %v4531_v31, %v4539_v16 }
 0x3f5   : > { %5394 = vmatpush2.bf16.msra.mxu1 %v9055_v6  ;;  %v9004_v6 = vcombine.high %v4531_v31, %v4539_v16  ;;  %v4682_v31 = vld [vmem:[%s10910_s12 + $0x7d0] sm:$0xff] }
 0x3f6   : > { %5355 = vmatpush2.bf16.msra.mxu0 %v9045_v0  ;;  %5395 = vmatprep.subr.bf16.mxu1 %v9048_v62  ;;  %v8994_v0 = vcombine.high %v4514_v5, %v4522_v56  ;;  %v4515_v62 = vld [vmem:[%s10910_s12 + $0x298] sm:$0xff] }
 0x3f7   : > { %5356 = vmatprep.subr.bf16.mxu0 %v9038_v24  ;;  %v4523_v24 = vld [vmem:[%s10910_s12 + $0x2d8] sm:$0xff] }
 0x3f8   : > { %v8995_v37 = vcombine.low %v4515_v62, %v4523_v24 }
 0x3f9   : > { %5396 = vmatpush2.bf16.msra.mxu1 %v9047_v45  ;;  %v8996_v45 = vcombine.high %v4515_v62, %v4523_v24  ;;  %v4666_v62 = vld [vmem:[%s10910_s12 + $0x750] sm:$0xff] }
 0x3fa   : > { %5357 = vmatpush2.bf16.msra.mxu0 %v9037_v12  ;;  %5397 = vmatprep.subr.bf16.mxu1 %v9040_v8  ;;  %v8986_v12 = vcombine.high %v4498_v40, %v4506_v61  ;;  %v4499_v8 = vld [vmem:[%s10910_s12 + $0x218] sm:$0xff] }
 0x3fb   : > { %5358 = vmatprep.subr.bf16.mxu0 %v9030_v48  ;;  %v4507_v48 = vld [vmem:[%s10910_s12 + $0x258] sm:$0xff] }
 0x3fc   : > { %v8987_v33 = vcombine.low %v4499_v8, %v4507_v48 }
 0x3fd   : > { %5398 = vmatpush2.bf16.msra.mxu1 %v9039_v9  ;;  %v8978_v9 = vcombine.high %v4482_v54, %v4490_v34 }
 0x3fe   : > { %5359 = vmatpush2.bf16.msra.mxu0 %v9029_v28  ;;  %5399 = vmatprep.subr.bf16.mxu1 %v9032_v22  ;;  %v4483_v28 = vld [vmem:[%s10910_s12 + $0x198] sm:$0xff] }
 0x3ff   : > { %5360 = vmatprep.subr.bf16.mxu0 %v9022_v51  ;;  %v4491_v22 = vld [vmem:[%s10910_s12 + $0x1d8] sm:$0xff]  ;;  %v4466_v51 = vld [vmem:[%s10910_s12 + $0x110] sm:$0xff] }
 0x400   : > { %v8980_v10 = vcombine.high %v4483_v28, %v4491_v22  ;;  %v8979_v18 = vcombine.low %v4483_v28, %v4491_v22  ;;  %v8969_v49 = vcombine.low %v4466_v51, %v4474_v2  ;;  %v4634_v28 = vld [vmem:[%s10910_s12 + $0x650] sm:$0xff] }
 0x401   : > { %5400 = vmatpush2.bf16.msra.mxu1 %v9031_v41  ;;  %v8970_v41 = vcombine.high %v4466_v51, %v4474_v2 }
 0x402   : > { %5361 = vmatpush2.bf16.msra.mxu0 %v9021_v23  ;;  %5401 = vmatprep.subr.bf16.mxu1 %v9024_v60  ;;  %v4467_v23 = vld [vmem:[%s10910_s12 + $0x118] sm:$0xff] }
 0x403   : > { %5362 = vmatprep.subr.bf16.mxu0 %v9014_v27  ;;  %v4475_v60 = vld [vmem:[%s10910_s12 + $0x158] sm:$0xff]  ;;  %v4450_v27 = vld [vmem:[%s10910_s12 + $0x90] sm:$0xff] }
 0x404   : > { %v8972_v13 = vcombine.high %v4467_v23, %v4475_v60  ;;  %v8971_v42 = vcombine.low %v4467_v23, %v4475_v60  ;;  %v8961_v63 = vcombine.low %v4450_v27, %v4458_v52  ;;  %v4618_v23 = vld [vmem:[%s10910_s12 + $0x5d0] sm:$0xff] }
 0x405   : > { %5402 = vmatpush2.bf16.msra.mxu1 %v9023_v14  ;;  %v8962_v14 = vcombine.high %v4450_v27, %v4458_v52 }
 0x406   : > { %5363 = vmatpush2.bf16.msra.mxu0 %v9013_v39  ;;  %5403 = vmatprep.subr.bf16.mxu1 %v9016_v4  ;;  %v4451_v39 = vld [vmem:[%s10910_s12 + $0x98] sm:$0xff] }
 0x407   : > { %5414 = vmatprep.subr.bf16.mxu0 %v9010_v57  ;;  %v4459_v4 = vld [vmem:[%s10910_s12 + $0xd8] sm:$0xff]  ;;  %v4434_v57 = vld [vmem:[%s10910_s12 + $0x10] sm:$0xff] }
 0x408   : > { %v8964_v30 = vcombine.high %v4451_v39, %v4459_v4  ;;  %v8963_v16 = vcombine.low %v4451_v39, %v4459_v4  ;;  %v8953_v5 = vcombine.low %v4434_v57, %v4442_v53  ;;  %v4602_v39 = vld [vmem:[%s10910_s12 + $0x550] sm:$0xff] }
 0x409   : > { %5404 = vmatpush2.bf16.msra.mxu1 %v9015_v55  ;;  %5365 = vmatmul.mubr.bf16.vlgmr.msra.gmra.mxu0 %v11900_v50  ;;  %v8954_v55 = vcombine.high %v4434_v57, %v4442_v53 }
 0x40a   : > { %5415 = vmatpush1.bf16.msra.mxu0 %v9009_v19  ;;  %5455 = vmatprep.subr.bf16.mxu1 %v9012_v58  ;;  %v4435_v19 = vld [vmem:[%s10910_s12 + $0x18] sm:$0xff] }
 0x40b   : > { %5416 = vmatprep.subr.bf16.mxu0 %v9002_v59  ;;  %5446 = vmatprep.mubr.bf16.mxu0 %v11831_v32  ;;  %v4443_v58 = vld [vmem:[%s10910_s12 + $0x58] sm:$0xff]  ;;  %v4674_v59 = vld [vmem:[%s10910_s12 + $0x790] sm:$0xff] }
 0x40c   : > { %5406 = vmatmul.mubr.bf16.vlgmr.msra.gmra.mxu1 %v11900_v50  ;;  %v8956_v56 = vcombine.high %v4435_v19, %v4443_v58  ;;  %v8955_v24 = vcombine.low %v4435_v19, %v4443_v58  ;;  %v9073_v40 = vcombine.low %v4674_v59, %v4682_v31  ;;  %v4586_v19 = vld [vmem:[%s10910_s12 + $0x4d0] sm:$0xff] }
 0x40d   : > { %5456 = vmatpush1.bf16.msra.mxu1 %v9011_v35  ;;  %5487 = vmatprep.mubr.bf16.mxu1 %v11831_v32  ;;  %v8988_v32 = vcombine.high %v4499_v8, %v4507_v48  ;;  %v9074_v35 = vcombine.high %v4674_v59, %v4682_v31  ;;  %v4650_v8 = vld [vmem:[%s10910_s12 + $0x6d0] sm:$0xff] }
 0x40e   : > { %5417 = vmatpush1.bf16.msra.mxu0 %v9001_v11  ;;  %5457 = vmatprep.subr.bf16.mxu1 %v9004_v6  ;;  %v4675_v11 = vld [vmem:[%s10910_s12 + $0x798] sm:$0xff] }
 0x40f   : > { %5418 = vmatprep.subr.bf16.mxu0 %v8994_v0  ;;  %v4683_v6 = vld [vmem:[%s10910_s12 + $0x7d8] sm:$0xff]  ;;  %v4658_v0 = vld [vmem:[%s10910_s12 + $0x710] sm:$0xff] }
 0x410   : > { %v9076_v61 = vcombine.high %v4675_v11, %v4683_v6  ;;  %v9075_v48 = vcombine.low %v4675_v11, %v4683_v6  ;;  %v9065_v54 = vcombine.low %v4658_v0, %v4666_v62  ;;  %v4570_v11 = vld [vmem:[%s10910_s12 + $0x450] sm:$0xff] }
 0x411   : > { %5458 = vmatpush1.bf16.msra.mxu1 %v9003_v26  ;;  %v9066_v26 = vcombine.high %v4658_v0, %v4666_v62 }
 0x412   : > { %5419 = vmatpush1.bf16.msra.mxu0 %v8993_v17  ;;  %5459 = vmatprep.subr.bf16.mxu1 %v8996_v45  ;;  %v4659_v17 = vld [vmem:[%s10910_s12 + $0x718] sm:$0xff] }
 0x413   : > { %5420 = vmatprep.subr.bf16.mxu0 %v8986_v12  ;;  %v4667_v45 = vld [vmem:[%s10910_s12 + $0x758] sm:$0xff]  ;;  %v4642_v12 = vld [vmem:[%s10910_s12 + $0x690] sm:$0xff] }
 0x414   : > { %v9068_v34 = vcombine.high %v4659_v17, %v4667_v45  ;;  %v9067_v22 = vcombine.low %v4659_v17, %v4667_v45  ;;  %v9057_v51 = vcombine.low %v4642_v12, %v4650_v8  ;;  %v4556_v17 = vld [vmem:[%s10910_s12 + $0x3e0] sm:$0xff] }
 0x415   : > { %5460 = vmatpush1.bf16.msra.mxu1 %v8995_v37  ;;  %v9058_v37 = vcombine.high %v4642_v12, %v4650_v8 }
 0x416   : > { %5421 = vmatpush1.bf16.msra.mxu0 %v8985_v1  ;;  %5461 = vmatprep.subr.bf16.mxu1 %v8988_v32  ;;  %v4643_v1 = vld [vmem:[%s10910_s12 + $0x698] sm:$0xff] }
 0x417   : > { %5422 = vmatprep.subr.bf16.mxu0 %v8978_v9  ;;  %v4651_v32 = vld [vmem:[%s10910_s12 + $0x6d8] sm:$0xff]  ;;  %v4626_v9 = vld [vmem:[%s10910_s12 + $0x610] sm:$0xff] }
 0x418   : > { %v9060_v2 = vcombine.high %v4643_v1, %v4651_v32  ;;  %v9059_v60 = vcombine.low %v4643_v1, %v4651_v32  ;;  %v9049_v27 = vcombine.low %v4626_v9, %v4634_v28  ;;  %v4540_v1 = vld [vmem:[%s10910_s12 + $0x360] sm:$0xff] }
 0x419   : > { %5462 = vmatpush1.bf16.msra.mxu1 %v8987_v33  ;;  %v9050_v33 = vcombine.high %v4626_v9, %v4634_v28 }
 0x41a   : > { %5423 = vmatpush1.bf16.msra.mxu0 %v8977_v25  ;;  %5463 = vmatprep.subr.bf16.mxu1 %v8980_v10  ;;  %v4627_v25 = vld [vmem:[%s10910_s12 + $0x618] sm:$0xff] }
 0x41b   : > { %5424 = vmatprep.subr.bf16.mxu0 %v8970_v41  ;;  %v4635_v10 = vld [vmem:[%s10910_s12 + $0x658] sm:$0xff]  ;;  %v4610_v41 = vld [vmem:[%s10910_s12 + $0x590] sm:$0xff] }
 0x41c   : > { %v9052_v52 = vcombine.high %v4627_v25, %v4635_v10  ;;  %v9051_v4 = vcombine.low %v4627_v25, %v4635_v10  ;;  %v9041_v57 = vcombine.low %v4610_v41, %v4618_v23  ;;  %v4524_v25 = vld [vmem:[%s10910_s12 + $0x2e0] sm:$0xff] }
 0x41d   : > { %5464 = vmatpush1.bf16.msra.mxu1 %v8979_v18  ;;  %v9042_v18 = vcombine.high %v4610_v41, %v4618_v23 }
 0x41e   : > { %5425 = vmatpush1.bf16.msra.mxu0 %v8969_v49  ;;  %5465 = vmatprep.subr.bf16.mxu1 %v8972_v13  ;;  %v4611_v49 = vld [vmem:[%s10910_s12 + $0x598] sm:$0xff] }
 0x41f   : > { %5426 = vmatprep.subr.bf16.mxu0 %v8962_v14  ;;  %v4619_v13 = vld [vmem:[%s10910_s12 + $0x5d8] sm:$0xff]  ;;  %v4594_v14 = vld [vmem:[%s10910_s12 + $0x510] sm:$0xff] }
 0x420   : > { %v9044_v53 = vcombine.high %v4611_v49, %v4619_v13  ;;  %v9043_v58 = vcombine.low %v4611_v49, %v4619_v13  ;;  %v9033_v59 = vcombine.low %v4594_v14, %v4602_v39  ;;  %v4508_v49 = vld [vmem:[%s10910_s12 + $0x260] sm:$0xff] }
 0x421   : > { %5466 = vmatpush1.bf16.msra.mxu1 %v8971_v42  ;;  %v9034_v42 = vcombine.high %v4594_v14, %v4602_v39 }
 0x422   : > { %5427 = vmatpush1.bf16.msra.mxu0 %v8961_v63  ;;  %5467 = vmatprep.subr.bf16.mxu1 %v8964_v30  ;;  %v4595_v63 = vld [vmem:[%s10910_s12 + $0x518] sm:$0xff] }
 0x423   : > { %5428 = vmatprep.subr.bf16.mxu0 %v8954_v55  ;;  %v4603_v30 = vld [vmem:[%s10910_s12 + $0x558] sm:$0xff]  ;;  %v4578_v55 = vld [vmem:[%s10910_s12 + $0x490] sm:$0xff] }
 0x424   : > { %v9036_v31 = vcombine.high %v4595_v63, %v4603_v30  ;;  %v9035_v6 = vcombine.low %v4595_v63, %v4603_v30  ;;  %v9025_v0 = vcombine.low %v4578_v55, %v4586_v19 }
 0x425   : > { %5468 = vmatpush1.bf16.msra.mxu1 %v8963_v16  ;;  %v9026_v16 = vcombine.high %v4578_v55, %v4586_v19 }
 0x426   : > { %5429 = vmatpush1.bf16.msra.mxu0 %v8953_v5  ;;  %5469 = vmatprep.subr.bf16.mxu1 %v8956_v56  ;;  %v4579_v5 = vld [vmem:[%s10910_s12 + $0x498] sm:$0xff] }
 0x427   : > { %5430 = vmatprep.subr.bf16.mxu0 %v9074_v35  ;;  %v4587_v56 = vld [vmem:[%s10910_s12 + $0x4d8] sm:$0xff]  ;;  %v4562_v35 = vld [vmem:[%s10910_s12 + $0x410] sm:$0xff] }
 0x428   : > { %v9028_v62 = vcombine.high %v4579_v5, %v4587_v56  ;;  %v9027_v45 = vcombine.low %v4579_v5, %v4587_v56  ;;  %v9017_v12 = vcombine.low %v4562_v35, %v4570_v11 }
 0x429   : > { %5470 = vmatpush1.bf16.msra.mxu1 %v8955_v24  ;;  %v9018_v24 = vcombine.high %v4562_v35, %v4570_v11 }
 0x42a   : > { %5431 = vmatpush2.bf16.msra.mxu0 %v9073_v40  ;;  %5471 = vmatprep.subr.bf16.mxu1 %v9076_v61  ;;  %v4563_v40 = vld [vmem:[%s10910_s12 + $0x418] sm:$0xff] }
 0x42b   : > { %5432 = vmatprep.subr.bf16.mxu0 %v9066_v26  ;;  %v4571_v61 = vld [vmem:[%s10910_s12 + $0x458] sm:$0xff]  ;;  %v4548_v26 = vld [vmem:[%s10910_s12 + $0x3a0] sm:$0xff] }
 0x42c   : > { %v9020_v8 = vcombine.high %v4563_v40, %v4571_v61  ;;  %v9019_v32 = vcombine.low %v4563_v40, %v4571_v61  ;;  %v9133_v9 = vcombine.low %v4548_v26, %v4556_v17 }
 0x42d   : > { %5472 = vmatpush2.bf16.msra.mxu1 %v9075_v48  ;;  %v9134_v48 = vcombine.high %v4548_v26, %v4556_v17 }
 0x42e   : > { %5433 = vmatpush2.bf16.msra.mxu0 %v9065_v54  ;;  %5473 = vmatprep.subr.bf16.mxu1 %v9068_v34  ;;  %v4549_v54 = vld [vmem:[%s10910_s12 + $0x3a8] sm:$0xff] }
 0x42f   : > { %5434 = vmatprep.subr.bf16.mxu0 %v9058_v37  ;;  %v4557_v34 = vld [vmem:[%s10910_s12 + $0x3e8] sm:$0xff]  ;;  %v4532_v37 = vld [vmem:[%s10910_s12 + $0x320] sm:$0xff] }
 0x430   : > { %v9136_v28 = vcombine.high %v4549_v54, %v4557_v34  ;;  %v9135_v10 = vcombine.low %v4549_v54, %v4557_v34  ;;  %v9125_v41 = vcombine.low %v4532_v37, %v4540_v1 }
 0x431   : > { %5474 = vmatpush2.bf16.msra.mxu1 %v9067_v22  ;;  %v9126_v22 = vcombine.high %v4532_v37, %v4540_v1 }
 0x432   : > { %5435 = vmatpush2.bf16.msra.mxu0 %v9057_v51  ;;  %5475 = vmatprep.subr.bf16.mxu1 %v9060_v2  ;;  %v4533_v51 = vld [vmem:[%s10910_s12 + $0x328] sm:$0xff] }
 0x433   : > { %5436 = vmatprep.subr.bf16.mxu0 %v9050_v33  ;;  %v4541_v2 = vld [vmem:[%s10910_s12 + $0x368] sm:$0xff]  ;;  %v4516_v33 = vld [vmem:[%s10910_s12 + $0x2a0] sm:$0xff] }
 0x434   : > { %v9128_v23 = vcombine.high %v4533_v51, %v4541_v2  ;;  %v9127_v13 = vcombine.low %v4533_v51, %v4541_v2  ;;  %v9117_v14 = vcombine.low %v4516_v33, %v4524_v25 }
 0x435   : > { %5476 = vmatpush2.bf16.msra.mxu1 %v9059_v60  ;;  %v9118_v60 = vcombine.high %v4516_v33, %v4524_v25 }
 0x436   : > { %5437 = vmatpush2.bf16.msra.mxu0 %v9049_v27  ;;  %5477 = vmatprep.subr.bf16.mxu1 %v9052_v52  ;;  %v4517_v27 = vld [vmem:[%s10910_s12 + $0x2a8] sm:$0xff] }
 0x437   : > { %5438 = vmatprep.subr.bf16.mxu0 %v9042_v18  ;;  %v4525_v52 = vld [vmem:[%s10910_s12 + $0x2e8] sm:$0xff]  ;;  %v4500_v18 = vld [vmem:[%s10910_s12 + $0x220] sm:$0xff] }
 0x438   : > { %v9120_v39 = vcombine.high %v4517_v27, %v4525_v52  ;;  %v9119_v63 = vcombine.low %v4517_v27, %v4525_v52  ;;  %v9109_v30 = vcombine.low %v4500_v18, %v4508_v49 }
 0x439   : > { %5478 = vmatpush2.bf16.msra.mxu1 %v9051_v4  ;;  %v9110_v4 = vcombine.high %v4500_v18, %v4508_v49 }
 0x43a   : > { %5439 = vmatpush2.bf16.msra.mxu0 %v9041_v57  ;;  %5479 = vmatprep.subr.bf16.mxu1 %v9044_v53  ;;  %v4501_v57 = vld [vmem:[%s10910_s12 + $0x228] sm:$0xff] }
 0x43b   : > { %5440 = vmatprep.subr.bf16.mxu0 %v9034_v42  ;;  %v4509_v53 = vld [vmem:[%s10910_s12 + $0x268] sm:$0xff]  ;;  %v4484_v42 = vld [vmem:[%s10910_s12 + $0x1a0] sm:$0xff] }
 0x43c   : > { %v9112_v55 = vcombine.high %v4501_v57, %v4509_v53  ;;  %v9111_v5 = vcombine.low %v4501_v57, %v4509_v53 }
 0x43d   : > { %5480 = vmatpush2.bf16.msra.mxu1 %v9043_v58  ;;  %v4485_v58 = vld [vmem:[%s10910_s12 + $0x1a8] sm:$0xff] }
 0x43e   : > { %5441 = vmatpush2.bf16.msra.mxu0 %v9033_v59  ;;  %5481 = vmatprep.subr.bf16.mxu1 %v9036_v31  ;;  %v4493_v59 = vld [vmem:[%s10910_s12 + $0x1e8] sm:$0xff]  ;;  %v4468_v31 = vld [vmem:[%s10910_s12 + $0x120] sm:$0xff] }
 0x43f   : > { %5442 = vmatprep.subr.bf16.mxu0 %v9026_v16  ;;  %v4476_v16 = vld [vmem:[%s10910_s12 + $0x160] sm:$0xff]  ;;  %v9104_v35 = vcombine.high %v4485_v58, %v4493_v59  ;;  %v9103_v40 = vcombine.low %v4485_v58, %v4493_v59 }
 0x440   : > { %v9094_v11 = vcombine.high %v4468_v31, %v4476_v16  ;;  %v9093_v61 = vcombine.low %v4468_v31, %v4476_v16 }
 0x441   : > { %5482 = vmatpush2.bf16.msra.mxu1 %v9035_v6  ;;  %v4469_v6 = vld [vmem:[%s10910_s12 + $0x128] sm:$0xff] }
 0x442   : > { %5443 = vmatpush2.bf16.msra.mxu0 %v9025_v0  ;;  %5483 = vmatprep.subr.bf16.mxu1 %v9028_v62  ;;  %v4477_v0 = vld [vmem:[%s10910_s12 + $0x168] sm:$0xff]  ;;  %v4452_v62 = vld [vmem:[%s10910_s12 + $0xa0] sm:$0xff] }
 0x443   : > { %5444 = vmatprep.subr.bf16.mxu0 %v9018_v24  ;;  %v4460_v24 = vld [vmem:[%s10910_s12 + $0xe0] sm:$0xff]  ;;  %v9096_v26 = vcombine.high %v4469_v6, %v4477_v0  ;;  %v9095_v54 = vcombine.low %v4469_v6, %v4477_v0 }
 0x444   : > { %v9086_v17 = vcombine.high %v4452_v62, %v4460_v24  ;;  %v9085_v34 = vcombine.low %v4452_v62, %v4460_v24 }
 0x445   : > { %5484 = vmatpush2.bf16.msra.mxu1 %v9027_v45  ;;  %v4453_v45 = vld [vmem:[%s10910_s12 + $0xa8] sm:$0xff] }
 0x446   : > { %5445 = vmatpush2.bf16.msra.mxu0 %v9017_v12  ;;  %5485 = vmatprep.subr.bf16.mxu1 %v9020_v8  ;;  %v4461_v12 = vld [vmem:[%s10910_s12 + $0xe8] sm:$0xff]  ;;  %v4436_v8 = vld [vmem:[%s10910_s12 + $0x20] sm:$0xff] }
 0x447   : > { %6232 = vmatprep.subr.bf16.mxu0 %v9134_v48  ;;  %v4444_v48 = vld [vmem:[%s10910_s12 + $0x60] sm:$0xff]  ;;  %v9088_v37 = vcombine.high %v4453_v45, %v4461_v12  ;;  %v9087_v51 = vcombine.low %v4453_v45, %v4461_v12 }
 0x448   : > { %v9078_v1 = vcombine.high %v4436_v8, %v4444_v48  ;;  %v9077_v2 = vcombine.low %v4436_v8, %v4444_v48 }
 0x449   : > { %5486 = vmatpush2.bf16.msra.mxu1 %v9019_v32  ;;  %5447 = vmatmul.mubr.bf16.vlgmr.msra.gmra.mxu0 %v11900_v50  ;;  %v4437_v32 = vld [vmem:[%s10910_s12 + $0x28] sm:$0xff] }
 0x44a   : > { %6233 = vmatpush1.bf16.msra.mxu0 %v9133_v9  ;;  %6264 = vmatprep.mubr.bf16.mxu0 %v11779_v38  ;;  %v4445_v9 = vld [vmem:[%s10910_s12 + $0x68] sm:$0xff] }
 0x44b   : > { %6305 = vmatprep.subr.bf16.mxu1 %v9136_v28  ;;  %6234 = vmatprep.subr.bf16.mxu0 %v9126_v22  ;;  %v4676_v28 = vld [vmem:[%s10910_s12 + $0x7a0] sm:$0xff]  ;;  %v9080_v33 = vcombine.high %v4437_v32, %v4445_v9  ;;  %v9079_v27 = vcombine.low %v4437_v32, %v4445_v9 }
 0x44c   : > { %5488 = vmatmul.mubr.bf16.vlgmr.msra.gmra.mxu1 %v11900_v50  ;;  %v4492_v50 = vld [vmem:[%s10910_s12 + $0x1e0] sm:$0xff] }
 0x44d   : > { %6306 = vmatpush1.bf16.msra.mxu1 %v9135_v10  ;;  %6337 = vmatprep.mubr.bf16.mxu1 %v11779_v38  ;;  %v9102_v19 = vcombine.high %v4484_v42, %v4492_v50  ;;  %v9101_v56 = vcombine.low %v4484_v42, %v4492_v50  ;;  %v4684_v22 = vld [vmem:[%s10910_s12 + $0x7e0] sm:$0xff]  ;;  %v4677_v10 = vld [vmem:[%s10910_s12 + $0x7a8] sm:$0xff] }
 0x44e   : > { %6235 = vmatpush1.bf16.msra.mxu0 %v9125_v41  ;;  %6307 = vmatprep.subr.bf16.mxu1 %v9128_v23  ;;  %v9198_v25 = vcombine.high %v4676_v28, %v4684_v22  ;;  %v4685_v41 = vld [vmem:[%s10910_s12 + $0x7e8] sm:$0xff]  ;;  %v4660_v23 = vld [vmem:[%s10910_s12 + $0x720] sm:$0xff]  ;;  %v9197_v52 = vcombine.low %v4676_v28, %v4684_v22 }
 0x44f   : > { %6236 = vmatprep.subr.bf16.mxu0 %v9118_v60  ;;  %v4668_v60 = vld [vmem:[%s10910_s12 + $0x760] sm:$0xff]  ;;  %v9200_v18 = vcombine.high %v4677_v10, %v4685_v41  ;;  %v9199_v57 = vcombine.low %v4677_v10, %v4685_v41 }
 0x450   : > { %v9190_v49 = vcombine.high %v4660_v23, %v4668_v60  ;;  %v9189_v53 = vcombine.low %v4660_v23, %v4668_v60 }
 0x451   : > { %6308 = vmatpush1.bf16.msra.mxu1 %v9127_v13  ;;  %v4661_v13 = vld [vmem:[%s10910_s12 + $0x728] sm:$0xff] }
 0x452   : > { %6237 = vmatpush1.bf16.msra.mxu0 %v9117_v14  ;;  %6309 = vmatprep.subr.bf16.mxu1 %v9120_v39  ;;  %v4669_v14 = vld [vmem:[%s10910_s12 + $0x768] sm:$0xff]  ;;  %v4644_v39 = vld [vmem:[%s10910_s12 + $0x6a0] sm:$0xff] }
 0x453   : > { %6238 = vmatprep.subr.bf16.mxu0 %v9110_v4  ;;  %v4652_v4 = vld [vmem:[%s10910_s12 + $0x6e0] sm:$0xff]  ;;  %v9192_v42 = vcombine.high %v4661_v13, %v4669_v14  ;;  %v9191_v58 = vcombine.low %v4661_v13, %v4669_v14 }
 0x454   : > { %v9182_v50 = vcombine.high %v4644_v39, %v4652_v4  ;;  %v9181_v59 = vcombine.low %v4644_v39, %v4652_v4 }
 0x455   : > { %6310 = vmatpush1.bf16.msra.mxu1 %v9119_v63  ;;  %v4645_v63 = vld [vmem:[%s10910_s12 + $0x6a8] sm:$0xff] }
 0x456   : > { %6239 = vmatpush1.bf16.msra.mxu0 %v9109_v30  ;;  %6311 = vmatprep.subr.bf16.mxu1 %v9112_v55  ;;  %v4653_v30 = vld [vmem:[%s10910_s12 + $0x6e8] sm:$0xff]  ;;  %v4628_v55 = vld [vmem:[%s10910_s12 + $0x620] sm:$0xff] }
 0x457   : > { %6240 = vmatprep.subr.bf16.mxu0 %v9102_v19  ;;  %v4636_v19 = vld [vmem:[%s10910_s12 + $0x660] sm:$0xff]  ;;  %v9184_v31 = vcombine.high %v4645_v63, %v4653_v30  ;;  %v9183_v6 = vcombine.low %v4645_v63, %v4653_v30  ;;  %v4559_v63 = vld [vmem:[%s10910_s12 + $0x3f8] sm:$0xff]  ;;  %v4534_v30 = vld [vmem:[%s10910_s12 + $0x330] sm:$0xff] }
 0x458   : > { %v9174_v16 = vcombine.high %v4628_v55, %v4636_v19  ;;  %v9173_v0 = vcombine.low %v4628_v55, %v4636_v19  ;;  %v4542_v55 = vld [vmem:[%s10910_s12 + $0x370] sm:$0xff] }
 0x459   : > { %6312 = vmatpush1.bf16.msra.mxu1 %v9111_v5  ;;  %v4629_v5 = vld [vmem:[%s10910_s12 + $0x628] sm:$0xff] }
 0x45a   : > { %6241 = vmatpush1.bf16.msra.mxu0 %v9101_v56  ;;  %6313 = vmatprep.subr.bf16.mxu1 %v9104_v35  ;;  %v4637_v56 = vld [vmem:[%s10910_s12 + $0x668] sm:$0xff]  ;;  %v4612_v35 = vld [vmem:[%s10910_s12 + $0x5a0] sm:$0xff] }
 0x45b   : > { %6242 = vmatprep.subr.bf16.mxu0 %v9094_v11  ;;  %v4620_v11 = vld [vmem:[%s10910_s12 + $0x5e0] sm:$0xff]  ;;  %v9176_v62 = vcombine.high %v4629_v5, %v4637_v56  ;;  %v9175_v45 = vcombine.low %v4629_v5, %v4637_v56  ;;  %v9130_v5 = vcombine.high %v4534_v30, %v4542_v55  ;;  %v4535_v56 = vld [vmem:[%s10910_s12 + $0x338] sm:$0xff] }
 0x45c   : > { %v9166_v24 = vcombine.high %v4612_v35, %v4620_v11  ;;  %v9165_v12 = vcombine.low %v4612_v35, %v4620_v11  ;;  %v4543_v35 = vld [vmem:[%s10910_s12 + $0x378] sm:$0xff]  ;;  %v4518_v11 = vld [vmem:[%s10910_s12 + $0x2b0] sm:$0xff] }
 0x45d   : > { %6314 = vmatpush1.bf16.msra.mxu1 %v9103_v40  ;;  %v4613_v40 = vld [vmem:[%s10910_s12 + $0x5a8] sm:$0xff] }
 0x45e   : > { %6243 = vmatpush1.bf16.msra.mxu0 %v9093_v61  ;;  %6315 = vmatprep.subr.bf16.mxu1 %v9096_v26  ;;  %v4621_v61 = vld [vmem:[%s10910_s12 + $0x5e8] sm:$0xff]  ;;  %v4596_v26 = vld [vmem:[%s10910_s12 + $0x520] sm:$0xff] }
 0x45f   : > { %6244 = vmatprep.subr.bf16.mxu0 %v9086_v17  ;;  %v4604_v17 = vld [vmem:[%s10910_s12 + $0x560] sm:$0xff]  ;;  %v9168_v8 = vcombine.high %v4613_v40, %v4621_v61  ;;  %v9167_v32 = vcombine.low %v4613_v40, %v4621_v61  ;;  %v9129_v40 = vcombine.low %v4534_v30, %v4542_v55  ;;  %v9132_v61 = vcombine.high %v4535_v56, %v4543_v35  ;;  %v4479_v30 = vld [vmem:[%s10910_s12 + $0x178] sm:$0xff]  ;;  %v4454_v55 = vld [vmem:[%s10910_s12 + $0xb0] sm:$0xff] }
 0x460   : > { %v9158_v48 = vcombine.high %v4596_v26, %v4604_v17  ;;  %v9157_v9 = vcombine.low %v4596_v26, %v4604_v17 }
 0x461   : > { %6316 = vmatpush1.bf16.msra.mxu1 %v9095_v54  ;;  %v4597_v54 = vld [vmem:[%s10910_s12 + $0x528] sm:$0xff] }
 0x462   : > { %6245 = vmatpush1.bf16.msra.mxu0 %v9085_v34  ;;  %6317 = vmatprep.subr.bf16.mxu1 %v9088_v37  ;;  %v4605_v34 = vld [vmem:[%s10910_s12 + $0x568] sm:$0xff]  ;;  %v4580_v37 = vld [vmem:[%s10910_s12 + $0x4a0] sm:$0xff] }
 0x463   : > { %6246 = vmatprep.subr.bf16.mxu0 %v9078_v1  ;;  %v4588_v1 = vld [vmem:[%s10910_s12 + $0x4e0] sm:$0xff]  ;;  %v9160_v28 = vcombine.high %v4597_v54, %v4605_v34  ;;  %v9159_v10 = vcombine.low %v4597_v54, %v4605_v34  ;;  %v4527_v54 = vld [vmem:[%s10910_s12 + $0x2f8] sm:$0xff]  ;;  %v4502_v34 = vld [vmem:[%s10910_s12 + $0x230] sm:$0xff] }
 0x464   : > { %v9150_v22 = vcombine.high %v4580_v37, %v4588_v1  ;;  %v9149_v41 = vcombine.low %v4580_v37, %v4588_v1  ;;  %v4510_v37 = vld [vmem:[%s10910_s12 + $0x270] sm:$0xff]  ;;  %v4067_v1 = vld [vmem:[#allocation2] sm:$0xf] }
 0x465   : > { %6318 = vmatpush1.bf16.msra.mxu1 %v9087_v51  ;;  %v4581_v51 = vld [vmem:[%s10910_s12 + $0x4a8] sm:$0xff] }
 0x466   : > { %6247 = vmatpush1.bf16.msra.mxu0 %v9077_v2  ;;  %6319 = vmatprep.subr.bf16.mxu1 %v9080_v33  ;;  %v4589_v2 = vld [vmem:[%s10910_s12 + $0x4e8] sm:$0xff]  ;;  %v4564_v33 = vld [vmem:[%s10910_s12 + $0x420] sm:$0xff] }
 0x467   : > { %6248 = vmatprep.subr.bf16.mxu0 %v9198_v25  ;;  %v4572_v25 = vld [vmem:[%s10910_s12 + $0x460] sm:$0xff]  ;;  %v9152_v23 = vcombine.high %v4581_v51, %v4589_v2  ;;  %v9151_v14 = vcombine.low %v4581_v51, %v4589_v2 }
 0x468   : > { %v9142_v60 = vcombine.high %v4564_v33, %v4572_v25  ;;  %v9141_v39 = vcombine.low %v4564_v33, %v4572_v25  ;;  %v9114_v33 = vcombine.high %v4502_v34, %v4510_v37  ;;  %v4503_v25 = vld [vmem:[%s10910_s12 + $0x238] sm:$0xff] }
 0x469   : > { %6320 = vmatpush1.bf16.msra.mxu1 %v9079_v27  ;;  %v4565_v27 = vld [vmem:[%s10910_s12 + $0x428] sm:$0xff] }
 0x46a   : > { %6249 = vmatpush2.bf16.msra.mxu0 %v9197_v52  ;;  %6321 = vmatprep.subr.bf16.mxu1 %v9200_v18  ;;  %v4573_v52 = vld [vmem:[%s10910_s12 + $0x468] sm:$0xff]  ;;  %v4550_v18 = vld [vmem:[%s10910_s12 + $0x3b0] sm:$0xff] }
 0x46b   : > { %6250 = vmatprep.subr.bf16.mxu0 %v9190_v49  ;;  %v4558_v49 = vld [vmem:[%s10910_s12 + $0x3f0] sm:$0xff]  ;;  %v9144_v4 = vcombine.high %v4565_v27, %v4573_v52  ;;  %v9143_v19 = vcombine.low %v4565_v27, %v4573_v52  ;;  %v9113_v52 = vcombine.low %v4502_v34, %v4510_v37  ;;  %v4687_v34 = vld [vmem:[%s10910_s12 + $0x7f8] sm:$0xff] }
 0x46c   : > { %v4662_v37 = vld [vmem:[%s10910_s12 + $0x730] sm:$0xff] }
 0x46d   : > { %6322 = vmatpush2.bf16.msra.mxu1 %v9199_v57 }
 0x46e   : > { %6251 = vmatpush2.bf16.msra.mxu0 %v9189_v53  ;;  %6323 = vmatprep.subr.bf16.mxu1 %v9192_v42  ;;  %v9138_v53 = vcombine.high %v4550_v18, %v4558_v49  ;;  %v4551_v42 = vld [vmem:[%s10910_s12 + $0x3b8] sm:$0xff] }
 0x46f   : > { %6252 = vmatprep.subr.bf16.mxu0 %v9182_v50 }
 0x471   : > { %6324 = vmatpush2.bf16.msra.mxu1 %v9191_v58 }
 0x472   : > { %6253 = vmatpush2.bf16.msra.mxu0 %v9181_v59  ;;  %6325 = vmatprep.subr.bf16.mxu1 %v9184_v31  ;;  %v9137_v59 = vcombine.low %v4550_v18, %v4558_v49 }
 0x473   : > { %6254 = vmatprep.subr.bf16.mxu0 %v9174_v16  ;;  %v9140_v16 = vcombine.high %v4551_v42, %v4559_v63 }
 0x475   : > { %6326 = vmatpush2.bf16.msra.mxu1 %v9183_v6  ;;  %v4526_v6 = vld [vmem:[%s10910_s12 + $0x2f0] sm:$0xff] }
 0x476   : > { %6255 = vmatpush2.bf16.msra.mxu0 %v9173_v0  ;;  %6327 = vmatprep.subr.bf16.mxu1 %v9176_v62  ;;  %v9139_v62 = vcombine.low %v4551_v42, %v4559_v63  ;;  %v4471_v63 = vld [vmem:[%s10910_s12 + $0x138] sm:$0xff] }
 0x477   : > { %6256 = vmatprep.subr.bf16.mxu0 %v9166_v24 }
 0x479   : > { %6328 = vmatpush2.bf16.msra.mxu1 %v9175_v45  ;;  %v9122_v45 = vcombine.high %v4518_v11, %v4526_v6 }
 0x47a   : > { %6257 = vmatpush2.bf16.msra.mxu0 %v9165_v12  ;;  %6329 = vmatprep.subr.bf16.mxu1 %v9168_v8  ;;  %v4519_v12 = vld [vmem:[%s10910_s12 + $0x2b8] sm:$0xff] }
 0x47b   : > { %6258 = vmatprep.subr.bf16.mxu0 %v9158_v48  ;;  %v9124_v2 = vcombine.high %v4519_v12, %v4527_v54  ;;  %v9123_v27 = vcombine.low %v4519_v12, %v4527_v54  ;;  %v4679_v54 = vld [vmem:[%s10910_s12 + $0x7b8] sm:$0xff] }
 0x47d   : > { %6330 = vmatpush2.bf16.msra.mxu1 %v9167_v32 }
 0x47e   : > { %6259 = vmatpush2.bf16.msra.mxu0 %v9157_v9  ;;  %6331 = vmatprep.subr.bf16.mxu1 %v9160_v28  ;;  %v9131_v9 = vcombine.low %v4535_v56, %v4543_v35  ;;  %v4463_v56 = vld [vmem:[%s10910_s12 + $0xf8] sm:$0xff]  ;;  %v4438_v35 = vld [vmem:[%s10910_s12 + $0x30] sm:$0xff] }
 0x47f   : > { %6260 = vmatprep.subr.bf16.mxu0 %v9150_v22  ;;  %v9121_v22 = vcombine.low %v4518_v11, %v4526_v6  ;;  %v4446_v11 = vld [vmem:[%s10910_s12 + $0x70] sm:$0xff]  ;;  %v9099_v6 = vcombine.low %v4471_v63, %v4479_v30 }
 0x480   : > { %v9081_v12 = vcombine.low %v4438_v35, %v4446_v11 }
 0x481   : > { %6332 = vmatpush2.bf16.msra.mxu1 %v9159_v10  ;;  %v4171_v13 = vpop.f32.mrf.mxu0  ;;  %v4511_v10 = vld [vmem:[%s10910_s12 + $0x278] sm:$0xff] }
 0x482   : > { %6261 = vmatpush2.bf16.msra.mxu0 %v9149_v41  ;;  %6333 = vmatprep.subr.bf16.mxu1 %v9152_v23  ;;  %v4486_v23 = vld [vmem:[%s10910_s12 + $0x1b0] sm:$0xff]  ;;  %v9116_v18 = vcombine.high %v4503_v25, %v4511_v10 }
 0x483   : > { %v4173_v57 = vpop.f32.mrf.mxu0  ;;  %6262 = vmatprep.subr.bf16.mxu0 %v9142_v60  ;;  %v4494_v60 = vld [vmem:[%s10910_s12 + $0x1f0] sm:$0xff] }
 0x484   : > { %v4251_v50 = vpop.f32.mrf.mxu1  ;;  %v9106_v49 = vcombine.high %v4486_v23, %v4494_v60  ;;  %v9115_v57 = vcombine.low %v4503_v25, %v4511_v10  ;;  %v4654_v25 = vld [vmem:[%s10910_s12 + $0x6f0] sm:$0xff]  ;;  %v9203_v10 = vcombine.low %v4679_v54, %v4687_v34 }
 0x485   : > { %6334 = vmatpush2.bf16.msra.mxu1 %v9151_v14  ;;  %v4419_v31 = vrot.slane %v4251_v50, 7  ;;  %v4495_v14 = vld [vmem:[%s10910_s12 + $0x1f8] sm:$0xff] }
 0x486   : > { %v4253_v58 = vpop.f32.mrf.mxu1  ;;  %6263 = vmatpush2.bf16.msra.mxu0 %v9141_v39  ;;  %6335 = vmatprep.subr.bf16.mxu1 %v9144_v4  ;;  %v4470_v39 = vld [vmem:[%s10910_s12 + $0x130] sm:$0xff] }
 0x487   : > { %6378 = vmatprep.subr.bf16.mxu0 %v9138_v53  ;;  %v4421_v26 = vsel %vm4420_vm1, %v4419_v31, %v4171_v13  ;;  %v4487_v13 = vld [vmem:[%s10910_s12 + $0x1b8] sm:$0xff]  ;;  %v4478_v4 = vld [vmem:[%s10910_s12 + $0x170] sm:$0xff]  ;;  %v9105_v53 = vcombine.low %v4486_v23, %v4494_v60  ;;  %v9100_v31 = vcombine.high %v4471_v63, %v4479_v30 }
 0x488   : > { %v9108_v42 = vcombine.high %v4487_v13, %v4495_v14  ;;  %v9098_v50 = vcombine.high %v4470_v39, %v4478_v4  ;;  %v9107_v58 = vcombine.low %v4487_v13, %v4495_v14  ;;  %v4647_v60 = vld [vmem:[%s10910_s12 + $0x6b8] sm:$0xff] }
 0x489   : > { %6336 = vmatpush2.bf16.msra.mxu1 %v9143_v19  ;;  %v4331_v0 = vpop.f32.mrf.mxu0  ;;  %6265 = vmatmul.mubr.bf16.vlgmr.msra.gmra.mxu0 %v11776_v47  ;;  %v4462_v19 = vld [vmem:[%s10910_s12 + $0xf0] sm:$0xff] }
 0x48a   : > { %v4422_v24 = vrot.slane %v4331_v0, 6  ;;  %6274 = vmatprep.mubr.bf16.mxu0 %v11786_v43  ;;  %6379 = vmatpush1.bf16.msra.mxu0 %v9137_v59  ;;  %v9097_v59 = vcombine.low %v4470_v39, %v4478_v4  ;;  %v9089_v0 = vcombine.low %v4454_v55, %v4462_v19  ;;  %v4631_v4 = vld [vmem:[%s10910_s12 + $0x638] sm:$0xff] }
 0x48b   : > { %v4333_v17 = vpop.f32.mrf.mxu0  ;;  %6451 = vmatprep.subr.bf16.mxu1 %v9140_v16  ;;  %6380 = vmatprep.subr.bf16.mxu0 %v9130_v5  ;;  %v9090_v16 = vcombine.high %v4454_v55, %v4462_v19  ;;  %v4455_v5 = vld [vmem:[%s10910_s12 + $0xb8] sm:$0xff] }
 0x48c   : > { %v4424_v8 = vsel %vm4423_vm2, %v4422_v24, %v4421_v26  ;;  %v4411_v48 = vpop.f32.mrf.mxu1  ;;  %6338 = vmatmul.mubr.bf16.vlgmr.msra.gmra.mxu1 %v11776_v47  ;;  %v9082_v24 = vcombine.high %v4438_v35, %v4446_v11  ;;  %v4678_v26 = vld [vmem:[%s10910_s12 + $0x7b0] sm:$0xff]  ;;  %v4615_v19 = vld [vmem:[%s10910_s12 + $0x5b8] sm:$0xff] }
 0x48d   : > { %v4425_v32 = vrot.slane %v4411_v48, 5  ;;  %6347 = vmatprep.mubr.bf16.mxu1 %v11786_v43  ;;  %6452 = vmatpush1.bf16.msra.mxu1 %v9139_v62  ;;  %v9092_v62 = vcombine.high %v4455_v5, %v4463_v56  ;;  %v4686_v17 = vld [vmem:[%s10910_s12 + $0x7f0] sm:$0xff]  ;;  %v4599_v11 = vld [vmem:[%s10910_s12 + $0x538] sm:$0xff] }
 0x48e   : > { %v4413_v28 = vpop.f32.mrf.mxu1  ;;  %6381 = vmatpush1.bf16.msra.mxu0 %v9129_v40  ;;  %6453 = vmatprep.subr.bf16.mxu1 %v9132_v61  ;;  %v4439_v40 = vld [vmem:[%s10910_s12 + $0x38] sm:$0xff]  ;;  %v9202_v48 = vcombine.high %v4678_v26, %v4686_v17 }
 0x48f   : > { %v4427_v51 = vsel %vm4426_vm3, %v4425_v32, %v4424_v8  ;;  %6382 = vmatprep.subr.bf16.mxu0 %v9122_v45  ;;  %v4447_v61 = vld [vmem:[%s10910_s12 + $0x78] sm:$0xff]  ;;  %v9091_v45 = vcombine.low %v4455_v5, %v4463_v56  ;;  %v9204_v28 = vcombine.high %v4679_v54, %v4687_v34 }
 0x490   : > { %v4429_v41 = vadd.f32 %v4427_v51, %v4067_v1  ;;  %v9084_v8 = vcombine.high %v4439_v40, %v4447_v61  ;;  %v4670_v1 = vld [vmem:[%s10910_s12 + $0x770] sm:$0xff]  ;;  %v9083_v32 = vcombine.low %v4439_v40, %v4447_v61  ;;  %v4663_v51 = vld [vmem:[%s10910_s12 + $0x738] sm:$0xff] }
 0x491   : > { %6454 = vmatpush1.bf16.msra.mxu1 %v9131_v9  ;;  %6275 = vmatmul.mubr.bf16.gmra.mxu0 %v11784_v44  ;;  %v9201_v9 = vcombine.low %v4678_v26, %v4686_v17  ;;  %v4583_v17 = vld [vmem:[%s10910_s12 + $0x4b8] sm:$0xff] }
 0x492   : > { %4431 = vst.msk [vmem:[#allocation2] sm:$0xf] %vm4430_vm4, %v4429_v41  ;;  %6284 = vmatprep.mubr.bf16.mxu0 %v11790_v36  ;;  %6383 = vmatpush1.bf16.msra.mxu0 %v9121_v22  ;;  %v9194_v22 = vcombine.high %v4662_v37, %v4670_v1 }
 0x493   : > { %6455 = vmatprep.subr.bf16.mxu1 %v9124_v2  ;;  %6384 = vmatprep.subr.bf16.mxu0 %v9114_v33  ;;  %v4671_v2 = vld [vmem:[%s10910_s12 + $0x778] sm:$0xff]  ;;  %v4646_v33 = vld [vmem:[%s10910_s12 + $0x6b0] sm:$0xff] }
 0x494   : > { %6348 = vmatmul.mubr.bf16.gmra.mxu1 %v11784_v44  ;;  %v9196_v41 = vcombine.high %v4663_v51, %v4671_v2  ;;  %v9186_v23 = vcombine.high %v4646_v33, %v4654_v25  ;;  %v9185_v13 = vcombine.low %v4646_v33, %v4654_v25  ;;  %v4688_v33 = vld [vmem:[#allocation3 + $0x10] sm:$0xff] }
 0x495   : > { %6357 = vmatprep.mubr.bf16.mxu1 %v11790_v36  ;;  %6456 = vmatpush1.bf16.msra.mxu1 %v9123_v27  ;;  %v4655_v27 = vld [vmem:[%s10910_s12 + $0x6f8] sm:$0xff] }
 0x496   : > { %6385 = vmatpush1.bf16.msra.mxu0 %v9113_v52  ;;  %6457 = vmatprep.subr.bf16.mxu1 %v9116_v18  ;;  %v4630_v52 = vld [vmem:[%s10910_s12 + $0x630] sm:$0xff]  ;;  %v9188_v14 = vcombine.high %v4647_v60, %v4655_v27 }
 0x497   : > { %6386 = vmatprep.subr.bf16.mxu0 %v9106_v49  ;;  %v4638_v18 = vld [vmem:[%s10910_s12 + $0x670] sm:$0xff]  ;;  %v9195_v49 = vcombine.low %v4663_v51, %v4671_v2 }
 0x498   : > { %v9178_v39 = vcombine.high %v4630_v52, %v4638_v18  ;;  %v9177_v63 = vcombine.low %v4630_v52, %v4638_v18 }
 0x499   : > { %6458 = vmatpush1.bf16.msra.mxu1 %v9115_v57  ;;  %6285 = vmatmul.mubr.bf16.gmra.mxu0 %v11788_v15  ;;  %v4639_v57 = vld [vmem:[%s10910_s12 + $0x678] sm:$0xff] }
 0x49a   : > { %6294 = vmatprep.mubr.bf16.mxu0 %v11794_v7  ;;  %6387 = vmatpush1.bf16.msra.mxu0 %v9105_v53  ;;  %v4614_v53 = vld [vmem:[%s10910_s12 + $0x5b0] sm:$0xff]  ;;  %v9180_v30 = vcombine.high %v4631_v4, %v4639_v57 }
 0x49b   : > { %6459 = vmatprep.subr.bf16.mxu1 %v9108_v42  ;;  %6388 = vmatprep.subr.bf16.mxu0 %v9098_v50  ;;  %v4622_v42 = vld [vmem:[%s10910_s12 + $0x5f0] sm:$0xff]  ;;  %v9187_v50 = vcombine.low %v4647_v60, %v4655_v27  ;;  %v4689_v60 = vld [vmem:[#allocation3] sm:$0xff] }
 0x49c   : > { %6358 = vmatmul.mubr.bf16.gmra.mxu1 %v11788_v15  ;;  %v9170_v55 = vcombine.high %v4614_v53, %v4622_v42  ;;  %v9169_v5 = vcombine.low %v4614_v53, %v4622_v42 }
 0x49d   : > { %6367 = vmatprep.mubr.bf16.mxu1 %v11794_v7  ;;  %6460 = vmatpush1.bf16.msra.mxu1 %v9107_v58  ;;  %v4623_v58 = vld [vmem:[%s10910_s12 + $0x5f8] sm:$0xff] }
 0x49e   : > { %6389 = vmatpush1.bf16.msra.mxu0 %v9097_v59  ;;  %6461 = vmatprep.subr.bf16.mxu1 %v9100_v31  ;;  %v4598_v59 = vld [vmem:[%s10910_s12 + $0x530] sm:$0xff]  ;;  %v9172_v56 = vcombine.high %v4615_v19, %v4623_v58 }
 0x49f   : > { %6390 = vmatprep.subr.bf16.mxu0 %v9090_v16  ;;  %v4606_v31 = vld [vmem:[%s10910_s12 + $0x570] sm:$0xff]  ;;  %v9179_v16 = vcombine.low %v4631_v4, %v4639_v57 }
 0x4a0   : > { %v9162_v35 = vcombine.high %v4598_v59, %v4606_v31  ;;  %v9161_v40 = vcombine.low %v4598_v59, %v4606_v31  ;;  %v5522_v59 = vld [vmem:[#allocation4 + $0x1f8] sm:$0xff] }
 0x4a1   : > { %6462 = vmatpush1.bf16.msra.mxu1 %v9099_v6  ;;  %6295 = vmatmul.mubr.bf16.gmra.mxu0 %v11792_v21  ;;  %v4607_v6 = vld [vmem:[%s10910_s12 + $0x578] sm:$0xff] }
 0x4a2   : > { %6391 = vmatpush1.bf16.msra.mxu0 %v9089_v0  ;;  %6410 = vmatprep.mubr.bf16.mxu0 %v11779_v38  ;;  %v4582_v0 = vld [vmem:[%s10910_s12 + $0x4b0] sm:$0xff]  ;;  %v9164_v61 = vcombine.high %v4599_v11, %v4607_v6 }
 0x4a3   : > { %6463 = vmatprep.subr.bf16.mxu1 %v9092_v62  ;;  %6392 = vmatprep.subr.bf16.mxu0 %v9082_v24  ;;  %v4590_v62 = vld [vmem:[%s10910_s12 + $0x4f0] sm:$0xff]  ;;  %v9171_v24 = vcombine.low %v4615_v19, %v4623_v58  ;;  %v5521_v58 = vld [vmem:[#allocation4 + $0x38] sm:$0xff] }
 0x4a4   : > { %6368 = vmatmul.mubr.bf16.gmra.mxu1 %v11792_v21  ;;  %v9154_v26 = vcombine.high %v4582_v0, %v4590_v62  ;;  %v9153_v54 = vcombine.low %v4582_v0, %v4590_v62  ;;  %v5529_v0 = vld [vmem:[#allocation4 + $0x88] sm:$0xff] }
 0x4a5   : > { %6464 = vmatpush1.bf16.msra.mxu1 %v9091_v45  ;;  %6483 = vmatprep.mubr.bf16.mxu1 %v11779_v38  ;;  %v9193_v38 = vcombine.low %v4662_v37, %v4670_v1  ;;  %v4591_v45 = vld [vmem:[%s10910_s12 + $0x4f8] sm:$0xff] }
 0x4a6   : > { %6393 = vmatpush1.bf16.msra.mxu0 %v9081_v12  ;;  %6465 = vmatprep.subr.bf16.mxu1 %v9084_v8  ;;  %v4566_v12 = vld [vmem:[%s10910_s12 + $0x430] sm:$0xff]  ;;  %v9156_v34 = vcombine.high %v4583_v17, %v4591_v45  ;;  %v4567_v1 = vld [vmem:[%s10910_s12 + $0x438] sm:$0xff] }
 0x4a7   : > { %6394 = vmatprep.subr.bf16.mxu0 %v9202_v48  ;;  %v4574_v8 = vld [vmem:[%s10910_s12 + $0x470] sm:$0xff]  ;;  %v9163_v48 = vcombine.low %v4599_v11, %v4607_v6 }
 0x4a8   : > { %v9146_v37 = vcombine.high %v4566_v12, %v4574_v8 }
 0x4a9   : > { %6466 = vmatpush1.bf16.msra.mxu1 %v9083_v32  ;;  %v4575_v32 = vld [vmem:[%s10910_s12 + $0x478] sm:$0xff] }
 0x4aa   : > { %6395 = vmatpush2.bf16.msra.mxu0 %v9201_v9  ;;  %6467 = vmatprep.subr.bf16.mxu1 %v9204_v28  ;;  %v9155_v9 = vcombine.low %v4583_v17, %v4591_v45  ;;  %v9145_v28 = vcombine.low %v4566_v12, %v4574_v8  ;;  %v9147_v51 = vcombine.low %v4567_v1, %v4575_v32  ;;  %v5536_v17 = vld [vmem:[#allocation4 + $0x128] sm:$0xff]  ;;  %v5531_v8 = vld [vmem:[#allocation4 + $0x140] sm:$0xff] }
 0x4ab   : > { %6396 = vmatprep.subr.bf16.mxu0 %v9194_v22  ;;  %v9148_v22 = vcombine.high %v4567_v1, %v4575_v32  ;;  %v5538_v32 = vld [vmem:[#allocation4 + $0x70] sm:$0xff] }
 0x4ad   : > { %6468 = vmatpush2.bf16.msra.mxu1 %v9203_v10 }
 0x4ae   : > { %6397 = vmatpush2.bf16.msra.mxu0 %v9193_v38  ;;  %6469 = vmatprep.subr.bf16.mxu1 %v9196_v41 }
 0x4af   : > { %6398 = vmatprep.subr.bf16.mxu0 %v9186_v23 }
 0x4b1   : > { %6470 = vmatpush2.bf16.msra.mxu1 %v9195_v49 }
 0x4b2   : > { %6399 = vmatpush2.bf16.msra.mxu0 %v9185_v13  ;;  %6471 = vmatprep.subr.bf16.mxu1 %v9188_v14 }
 0x4b3   : > { %6400 = vmatprep.subr.bf16.mxu0 %v9178_v39 }
 0x4b5   : > { %6472 = vmatpush2.bf16.msra.mxu1 %v9187_v50 }
 0x4b6   : > { %6401 = vmatpush2.bf16.msra.mxu0 %v9177_v63  ;;  %6473 = vmatprep.subr.bf16.mxu1 %v9180_v30 }
 0x4b7   : > { %6402 = vmatprep.subr.bf16.mxu0 %v9170_v55 }
 0x4b9   : > { %6474 = vmatpush2.bf16.msra.mxu1 %v9179_v16  ;;  %v5528_v16 = vld [vmem:[#allocation4 + $0x108] sm:$0xff] }
 0x4ba   : > { %6403 = vmatpush2.bf16.msra.mxu0 %v9169_v5  ;;  %6475 = vmatprep.subr.bf16.mxu1 %v9172_v56 }
 0x4bb   : > { %6404 = vmatprep.subr.bf16.mxu0 %v9162_v35  ;;  %v5523_v35 = vld [vmem:[#allocation4 + $0x158] sm:$0xff] }
 0x4bd   : > { %6476 = vmatpush2.bf16.msra.mxu1 %v9171_v24 }
 0x4be   : > { %6405 = vmatpush2.bf16.msra.mxu0 %v9161_v40  ;;  %6477 = vmatprep.subr.bf16.mxu1 %v9164_v61  ;;  %v5530_v40 = vld [vmem:[#allocation4 + $0x110] sm:$0xff] }
 0x4bf   : > { %6406 = vmatprep.subr.bf16.mxu0 %v9154_v26 }
 0x4c1   : > { %6478 = vmatpush2.bf16.msra.mxu1 %v9163_v48 }
 0x4c2   : > { %6407 = vmatpush2.bf16.msra.mxu0 %v9153_v54  ;;  %6479 = vmatprep.subr.bf16.mxu1 %v9156_v34  ;;  %v5537_v34 = vld [vmem:[#allocation4 + $0x130] sm:$0xff] }
 0x4c3   : > { %6408 = vmatprep.subr.bf16.mxu0 %v9146_v37 }
 0x4c5   : > { %6480 = vmatpush2.bf16.msra.mxu1 %v9155_v9 }
 0x4c6   : > { %6409 = vmatpush2.bf16.msra.mxu0 %v9145_v28  ;;  %6481 = vmatprep.subr.bf16.mxu1 %v9148_v22  ;;  %v5544_v22 = vld [vmem:[#allocation4 + $0x150] sm:$0xff] }
 0x4c9   : > { %6482 = vmatpush2.bf16.msra.mxu1 %v9147_v51  ;;  %v5366_v2 = vpop.f32.mrf.mxu0  ;;  %6411 = vmatmul.mubr.bf16.vlgmr.msra.gmra.mxu0 %v11776_v47 }
 0x4ca   : > { %6420 = vmatprep.mubr.bf16.mxu0 %v11786_v43 }
 0x4cb   : > { %v5368_v25 = vpop.f32.mrf.mxu0 }
 0x4cc   : > { %v5504_v10 = vcombine.low %v5366_v2, %v5368_v25  ;;  %v5407_v38 = vpop.f32.mrf.mxu1  ;;  %6484 = vmatmul.mubr.bf16.vlgmr.msra.gmra.mxu1 %v11776_v47 }
 0x4cd   : > { %6493 = vmatprep.mubr.bf16.mxu1 %v11786_v43  ;;  %v5370_v41 = vpop.f32.mrf.mxu0  ;;  %v4690_v43 = vld [vmem:[#allocation3 + $0x18] sm:$0xff] }
 0x4ce   : > { %v5512_v23 = vadd.f32 %v5504_v10, %v4688_v33  ;;  %v5409_v27 = vpop.f32.mrf.mxu1  ;;  %v5539_v33 = vld [vmem:[#allocation4 + $0x198] sm:$0xff] }
 0x4cf   : > { %v5505_v52 = vcombine.low %v5407_v38, %v5409_v27  ;;  %v5371_v18 = vpop.f32.mrf.mxu0  ;;  %v5545_v38 = vld [vmem:[#allocation4 + $0x20] sm:$0xff] }
 0x4d0   : > { %5516 = vst [vmem:[#allocation3 + $0x10] sm:$0xff] %v5512_v23  ;;  %v5411_v49 = vpop.f32.mrf.mxu1  ;;  %v5552_v18 = vld [vmem:[#allocation4 + $0xf0] sm:$0xff] }
 0x4d1   : > { %v5513_v13 = vadd.f32 %v5505_v52, %v4689_v60  ;;  %6421 = vmatmul.mubr.bf16.gmra.mxu0 %v11784_v44  ;;  %v5546_v60 = vld [vmem:[#allocation4 + $0x1d0] sm:$0xff] }
 0x4d2   : > { %v5412_v14 = vpop.f32.mrf.mxu1  ;;  %6430 = vmatprep.mubr.bf16.mxu0 %v11790_v36 }
 0x4d3   : > { %5517 = vst [vmem:[#allocation3] sm:$0xff] %v5513_v13  ;;  %v5547_v14 = vld [vmem:[#allocation4 + $0xa0] sm:$0xff] }
 0x4d4   : > { %6494 = vmatmul.mubr.bf16.gmra.mxu1 %v11784_v44 }
 0x4d5   : > { %6503 = vmatprep.mubr.bf16.mxu1 %v11790_v36  ;;  %v4691_v36 = vld [vmem:[#allocation3 + $0x8] sm:$0xff] }
 0x4d9   : > { %6431 = vmatmul.mubr.bf16.gmra.mxu0 %v11788_v15 }
 0x4da   : > { %6440 = vmatprep.mubr.bf16.mxu0 %v11794_v7 }
 0x4dc   : > { %6504 = vmatmul.mubr.bf16.gmra.mxu1 %v11788_v15 }
 0x4dd   : > { %6513 = vmatprep.mubr.bf16.mxu1 %v11794_v7  ;;  %v5520_v7 = vld [vmem:[#allocation4] sm:$0xff] }
 0x4e1   : > { %6441 = vmatmul.mubr.bf16.gmra.mxu0 %v11792_v21 }
 0x4e4   : > { %6514 = vmatmul.mubr.bf16.gmra.mxu1 %v11792_v21 }
 0x509   : > { %v5448_v47 = vpop.f32.mrf.mxu0 }
 0x50b   : > { %v5450_v39 = vpop.f32.mrf.mxu0 }
 0x50c   : > { %v5506_v4 = vcombine.low %v5448_v47, %v5450_v39  ;;  %v5489_v57 = vpop.f32.mrf.mxu1  ;;  %v5553_v39 = vld [vmem:[#allocation4 + $0xb8] sm:$0xff] }
 0x50d   : > { %v5452_v44 = vpop.f32.mrf.mxu0 }
 0x50e   : > { %v5514_v53 = vadd.f32 %v5506_v4, %v4690_v43  ;;  %v5491_v42 = vpop.f32.mrf.mxu1  ;;  %v5554_v44 = vld [vmem:[#allocation4 + $0x30] sm:$0xff] }
 0x50f   : > { %v5507_v50 = vcombine.low %v5489_v57, %v5491_v42  ;;  %v5453_v63 = vpop.f32.mrf.mxu0  ;;  %v5560_v42 = vld [vmem:[#allocation4 + $0x118] sm:$0xff] }
 0x510   : > { %5518 = vst [vmem:[#allocation3 + $0x18] sm:$0xff] %v5514_v53  ;;  %v5493_v30 = vpop.f32.mrf.mxu1 }
 0x511   : > { %v5515_v15 = vadd.f32 %v5507_v50, %v4691_v36  ;;  %v5555_v30 = vld [vmem:[#allocation4 + $0x1e8] sm:$0xff] }
 0x512   : > { %v5494_v55 = vpop.f32.mrf.mxu1 }
 0x513   : > { %5519 = vst [vmem:[#allocation3 + $0x8] sm:$0xff] %v5515_v15 }
 0x549   : > { %v6266_v19 = vpop.f32.mrf.mxu0 }
 0x54a   : > { %v6524_v21 = vadd.f32 %v6266_v19, %v5520_v7  ;;  %v5561_v7 = vld [vmem:[#allocation4 + $0x1b0] sm:$0xff] }
 0x54b   : > { %v6268_v31 = vpop.f32.mrf.mxu0 }
 0x54c   : > { %6588 = vst [vmem:[#allocation4] sm:$0xff] %v6524_v21  ;;  %v6525_v5 = vadd.f32 %v6268_v31, %v5521_v58  ;;  %v6339_v56 = vpop.f32.mrf.mxu1  ;;  %v5562_v21 = vld [vmem:[#allocation4 + $0x78] sm:$0xff] }
 0x54d   : > { %v6526_v11 = vadd.f32 %v6339_v56, %v5522_v59  ;;  %v6270_v6 = vpop.f32.mrf.mxu0 }
 0x54e   : > { %6589 = vst [vmem:[#allocation4 + $0x38] sm:$0xff] %v6525_v5  ;;  %v6532_v62 = vadd.f32 %v6270_v6, %v5528_v16  ;;  %v6341_v24 = vpop.f32.mrf.mxu1  ;;  %v5568_v16 = vld [vmem:[#allocation4 + $0x180] sm:$0xff] }
 0x54f   : > { %6590 = vst [vmem:[#allocation4 + $0x1f8] sm:$0xff] %v6526_v11  ;;  %v6527_v61 = vadd.f32 %v6341_v24, %v5523_v35  ;;  %v6272_v26 = vpop.f32.mrf.mxu0  ;;  %v5563_v35 = vld [vmem:[#allocation4 + $0x1c8] sm:$0xff] }
 0x550   : > { %6596 = vst [vmem:[#allocation4 + $0x108] sm:$0xff] %v6532_v62  ;;  %v6533_v45 = vadd.f32 %v6272_v26, %v5529_v0  ;;  %v6343_v12 = vpop.f32.mrf.mxu1  ;;  %v5569_v0 = vld [vmem:[#allocation4 + $0xc8] sm:$0xff] }
 0x551   : > { %6591 = vst [vmem:[#allocation4 + $0x158] sm:$0xff] %v6527_v61  ;;  %v6534_v48 = vadd.f32 %v6343_v12, %v5530_v40  ;;  %v6276_v54 = vpop.f32.mrf.mxu0  ;;  %v5570_v40 = vld [vmem:[#allocation4 + $0x80] sm:$0xff] }
 0x552   : > { %6597 = vst [vmem:[#allocation4 + $0x88] sm:$0xff] %v6533_v45  ;;  %v6540_v37 = vadd.f32 %v6276_v54, %v5536_v17  ;;  %v6345_v1 = vpop.f32.mrf.mxu1  ;;  %v5576_v17 = vld [vmem:[#allocation4 + $0x28] sm:$0xff] }
 0x553   : > { %6598 = vst [vmem:[#allocation4 + $0x110] sm:$0xff] %v6534_v48  ;;  %v6535_v9 = vadd.f32 %v6345_v1, %v5531_v8  ;;  %v6278_v28 = vpop.f32.mrf.mxu0  ;;  %v5571_v8 = vld [vmem:[#allocation4 + $0x68] sm:$0xff] }
 0x554   : > { %6604 = vst [vmem:[#allocation4 + $0x128] sm:$0xff] %v6540_v37  ;;  %v6541_v51 = vadd.f32 %v6278_v28, %v5537_v34  ;;  %v6349_v2 = vpop.f32.mrf.mxu1  ;;  %v5577_v34 = vld [vmem:[#allocation4 + $0xc0] sm:$0xff] }
 0x555   : > { %6599 = vst [vmem:[#allocation4 + $0x140] sm:$0xff] %v6535_v9  ;;  %v6542_v25 = vadd.f32 %v6349_v2, %v5538_v32  ;;  %v6280_v10 = vpop.f32.mrf.mxu0  ;;  %v5578_v32 = vld [vmem:[#allocation4 + $0x58] sm:$0xff]  ;;  %v5579_v2 = vld [vmem:[#allocation4 + $0x60] sm:$0xff] }
 0x556   : > { %6605 = vst [vmem:[#allocation4 + $0x130] sm:$0xff] %v6541_v51  ;;  %v6548_v41 = vadd.f32 %v6280_v10, %v5544_v22  ;;  %v6351_v23 = vpop.f32.mrf.mxu1 }
 0x557   : > { %6606 = vst [vmem:[#allocation4 + $0x70] sm:$0xff] %v6542_v25  ;;  %v6543_v27 = vadd.f32 %v6351_v23, %v5539_v33  ;;  %v6282_v52 = vpop.f32.mrf.mxu0  ;;  %v5525_v23 = vld [vmem:[#allocation4 + $0x8] sm:$0xff] }
 0x558   : > { %6612 = vst [vmem:[#allocation4 + $0x150] sm:$0xff] %v6548_v41  ;;  %v6549_v49 = vadd.f32 %v6282_v52, %v5545_v38  ;;  %v6353_v13 = vpop.f32.mrf.mxu1  ;;  %v5524_v38 = vld [vmem:[#allocation4 + $0x120] sm:$0xff] }
 0x559   : > { %6607 = vst [vmem:[#allocation4 + $0x198] sm:$0xff] %v6543_v27  ;;  %v6550_v47 = vadd.f32 %v6353_v13, %v5546_v60  ;;  %v6286_v43 = vpop.f32.mrf.mxu0  ;;  %v5526_v27 = vld [vmem:[#allocation4 + $0x170] sm:$0xff] }
 0x55a   : > { %6613 = vst [vmem:[#allocation4 + $0x20] sm:$0xff] %v6549_v49  ;;  %v6556_v4 = vadd.f32 %v6286_v43, %v5552_v18  ;;  %v6355_v57 = vpop.f32.mrf.mxu1  ;;  %v5532_v18 = vld [vmem:[#allocation4 + $0xf8] sm:$0xff] }
 0x55b   : > { %6614 = vst [vmem:[#allocation4 + $0x1d0] sm:$0xff] %v6550_v47  ;;  %v6551_v53 = vadd.f32 %v6355_v57, %v5547_v14  ;;  %v6288_v36 = vpop.f32.mrf.mxu0  ;;  %v5527_v14 = vld [vmem:[#allocation4 + $0x100] sm:$0xff] }
 0x55c   : > { %6620 = vst [vmem:[#allocation4 + $0xf0] sm:$0xff] %v6556_v4  ;;  %v6557_v50 = vadd.f32 %v6288_v36, %v5553_v39  ;;  %v6359_v63 = vpop.f32.mrf.mxu1  ;;  %v5533_v39 = vld [vmem:[#allocation4 + $0x50] sm:$0xff] }
 0x55d   : > { %6615 = vst [vmem:[#allocation4 + $0xa0] sm:$0xff] %v6551_v53  ;;  %v6558_v15 = vadd.f32 %v6359_v63, %v5554_v44  ;;  %v6290_v55 = vpop.f32.mrf.mxu0  ;;  %v5534_v44 = vld [vmem:[#allocation4 + $0xd0] sm:$0xff] }
 0x55e   : > { %6621 = vst [vmem:[#allocation4 + $0xb8] sm:$0xff] %v6557_v50  ;;  %v6564_v19 = vadd.f32 %v6290_v55, %v5560_v42  ;;  %v6361_v58 = vpop.f32.mrf.mxu1  ;;  %v5540_v42 = vld [vmem:[#allocation4 + $0x1a8] sm:$0xff] }
 0x55f   : > { %6622 = vst [vmem:[#allocation4 + $0x30] sm:$0xff] %v6558_v15  ;;  %v6559_v59 = vadd.f32 %v6361_v58, %v5555_v30  ;;  %v6292_v31 = vpop.f32.mrf.mxu0  ;;  %v5535_v30 = vld [vmem:[#allocation4 + $0x178] sm:$0xff] }
 0x560   : > { %6628 = vst [vmem:[#allocation4 + $0x118] sm:$0xff] %v6564_v19  ;;  %v6565_v5 = vadd.f32 %v6292_v31, %v5561_v7  ;;  %v6363_v56 = vpop.f32.mrf.mxu1  ;;  %v5541_v7 = vld [vmem:[#allocation4 + $0x18] sm:$0xff] }
 0x561   : > { %6623 = vst [vmem:[#allocation4 + $0x1e8] sm:$0xff] %v6559_v59  ;;  %v6566_v11 = vadd.f32 %v6363_v56, %v5562_v21  ;;  %v6296_v6 = vpop.f32.mrf.mxu0  ;;  %v5542_v21 = vld [vmem:[#allocation4 + $0x1d8] sm:$0xff] }
 0x562   : > { %6629 = vst [vmem:[#allocation4 + $0x1b0] sm:$0xff] %v6565_v5  ;;  %v6572_v62 = vadd.f32 %v6296_v6, %v5568_v16  ;;  %v6365_v24 = vpop.f32.mrf.mxu1  ;;  %v5548_v16 = vld [vmem:[#allocation4 + $0xe0] sm:$0xff] }
 0x563   : > { %6630 = vst [vmem:[#allocation4 + $0x78] sm:$0xff] %v6566_v11  ;;  %v6567_v61 = vadd.f32 %v6365_v24, %v5563_v35  ;;  %v6298_v26 = vpop.f32.mrf.mxu0  ;;  %v5543_v35 = vld [vmem:[#allocation4 + $0xe8] sm:$0xff] }
 0x564   : > { %6636 = vst [vmem:[#allocation4 + $0x180] sm:$0xff] %v6572_v62  ;;  %v6573_v45 = vadd.f32 %v6298_v26, %v5569_v0  ;;  %v6369_v12 = vpop.f32.mrf.mxu1  ;;  %v5549_v0 = vld [vmem:[#allocation4 + $0x1a0] sm:$0xff] }
 0x565   : > { %6631 = vst [vmem:[#allocation4 + $0x1c8] sm:$0xff] %v6567_v61  ;;  %v6574_v48 = vadd.f32 %v6369_v12, %v5570_v40  ;;  %v6300_v54 = vpop.f32.mrf.mxu0  ;;  %v5550_v40 = vld [vmem:[#allocation4 + $0x138] sm:$0xff] }
 0x566   : > { %6637 = vst [vmem:[#allocation4 + $0xc8] sm:$0xff] %v6573_v45  ;;  %v6580_v37 = vadd.f32 %v6300_v54, %v5576_v17  ;;  %v6371_v1 = vpop.f32.mrf.mxu1  ;;  %v5556_v17 = vld [vmem:[#allocation4 + $0x10] sm:$0xff] }
 0x567   : > { %6638 = vst [vmem:[#allocation4 + $0x80] sm:$0xff] %v6574_v48  ;;  %v6575_v9 = vadd.f32 %v6371_v1, %v5571_v8  ;;  %v6302_v28 = vpop.f32.mrf.mxu0  ;;  %v5551_v8 = vld [vmem:[#allocation4 + $0x1c0] sm:$0xff] }
 0x568   : > { %6644 = vst [vmem:[#allocation4 + $0x28] sm:$0xff] %v6580_v37  ;;  %v6581_v22 = vadd.f32 %v6302_v28, %v5577_v34  ;;  %v6373_v51 = vpop.f32.mrf.mxu1  ;;  %v5557_v34 = vld [vmem:[#allocation4 + $0xd8] sm:$0xff] }
 0x569   : > { %6639 = vst [vmem:[#allocation4 + $0x68] sm:$0xff] %v6575_v9  ;;  %v6582_v33 = vadd.f32 %v6373_v51, %v5578_v32  ;;  %v5558_v32 = vld [vmem:[#allocation4 + $0x1f0] sm:$0xff] }
 0x56a   : > { %6645 = vst [vmem:[#allocation4 + $0xc0] sm:$0xff] %v6581_v22  ;;  %v6375_v25 = vpop.f32.mrf.mxu1  ;;  %v5564_v22 = vld [vmem:[#allocation4 + $0x48] sm:$0xff] }
 0x56b   : > { %6646 = vst [vmem:[#allocation4 + $0x58] sm:$0xff] %v6582_v33  ;;  %v6583_v10 = vadd.f32 %v6375_v25, %v5579_v2  ;;  %v5559_v33 = vld [vmem:[#allocation4 + $0x98] sm:$0xff] }
 0x56d   : > { %6647 = vst [vmem:[#allocation4 + $0x60] sm:$0xff] %v6583_v10 }
 0x589   : > { %v6412_v41 = vpop.f32.mrf.mxu0 }
 0x58a   : > { %v6528_v60 = vadd.f32 %v6412_v41, %v5524_v38  ;;  %v5565_v38 = vld [vmem:[#allocation4 + $0x90] sm:$0xff] }
 0x58b   : > { %v6414_v52 = vpop.f32.mrf.mxu0 }
 0x58c   : > { %6592 = vst [vmem:[#allocation4 + $0x120] sm:$0xff] %v6528_v60  ;;  %v6529_v49 = vadd.f32 %v6414_v52, %v5525_v23  ;;  %v6485_v13 = vpop.f32.mrf.mxu1  ;;  %v5566_v60 = vld [vmem:[#allocation4 + $0xa8] sm:$0xff] }
 0x58d   : > { %v6530_v47 = vadd.f32 %v6485_v13, %v5526_v27  ;;  %v6416_v43 = vpop.f32.mrf.mxu0 }
 0x58e   : > { %6593 = vst [vmem:[#allocation4 + $0x8] sm:$0xff] %v6529_v49  ;;  %v6536_v4 = vadd.f32 %v6416_v43, %v5532_v18  ;;  %v6487_v57 = vpop.f32.mrf.mxu1  ;;  %v5572_v18 = vld [vmem:[#allocation4 + $0xb0] sm:$0xff] }
 0x58f   : > { %6594 = vst [vmem:[#allocation4 + $0x170] sm:$0xff] %v6530_v47  ;;  %v6531_v53 = vadd.f32 %v6487_v57, %v5527_v14  ;;  %v6418_v36 = vpop.f32.mrf.mxu0  ;;  %v5567_v14 = vld [vmem:[#allocation4 + $0x160] sm:$0xff] }
 0x590   : > { %6600 = vst [vmem:[#allocation4 + $0xf8] sm:$0xff] %v6536_v4  ;;  %v6537_v50 = vadd.f32 %v6418_v36, %v5533_v39  ;;  %v6489_v63 = vpop.f32.mrf.mxu1  ;;  %v5573_v39 = vld [vmem:[#allocation4 + $0x168] sm:$0xff] }
 0x591   : > { %6595 = vst [vmem:[#allocation4 + $0x100] sm:$0xff] %v6531_v53  ;;  %v6538_v15 = vadd.f32 %v6489_v63, %v5534_v44  ;;  %v6422_v55 = vpop.f32.mrf.mxu0  ;;  %v5574_v44 = vld [vmem:[#allocation4 + $0x1b8] sm:$0xff] }
 0x592   : > { %6601 = vst [vmem:[#allocation4 + $0x50] sm:$0xff] %v6537_v50  ;;  %v6544_v19 = vadd.f32 %v6422_v55, %v5540_v42  ;;  %v6491_v58 = vpop.f32.mrf.mxu1  ;;  %v5580_v42 = vld [vmem:[#allocation4 + $0x188] sm:$0xff] }
 0x593   : > { %6602 = vst [vmem:[#allocation4 + $0xd0] sm:$0xff] %v6538_v15  ;;  %v6539_v59 = vadd.f32 %v6491_v58, %v5535_v30  ;;  %v6424_v31 = vpop.f32.mrf.mxu0  ;;  %v5575_v30 = vld [vmem:[#allocation4 + $0x190] sm:$0xff] }
 0x594   : > { %6608 = vst [vmem:[#allocation4 + $0x1a8] sm:$0xff] %v6544_v19  ;;  %v6545_v5 = vadd.f32 %v6424_v31, %v5541_v7  ;;  %v6495_v56 = vpop.f32.mrf.mxu1  ;;  %v5581_v7 = vld [vmem:[#allocation4 + $0x148] sm:$0xff] }
 0x595   : > { %6603 = vst [vmem:[#allocation4 + $0x178] sm:$0xff] %v6539_v59  ;;  %v6546_v11 = vadd.f32 %v6495_v56, %v5542_v21  ;;  %v6426_v6 = vpop.f32.mrf.mxu0  ;;  %v5582_v21 = vld [vmem:[#allocation4 + $0x40] sm:$0xff] }
 0x596   : > { %6609 = vst [vmem:[#allocation4 + $0x18] sm:$0xff] %v6545_v5  ;;  %v6552_v62 = vadd.f32 %v6426_v6, %v5548_v16  ;;  %v6497_v24 = vpop.f32.mrf.mxu1  ;;  %v5583_v56 = vld [vmem:[#allocation4 + $0x1e0] sm:$0xff] }
 0x597   : > { %6610 = vst [vmem:[#allocation4 + $0x1d8] sm:$0xff] %v6546_v11  ;;  %v6547_v61 = vadd.f32 %v6497_v24, %v5543_v35  ;;  %v6428_v26 = vpop.f32.mrf.mxu0 }
 0x598   : > { %6616 = vst [vmem:[#allocation4 + $0xe0] sm:$0xff] %v6552_v62  ;;  %v6553_v45 = vadd.f32 %v6428_v26, %v5549_v0  ;;  %v6499_v12 = vpop.f32.mrf.mxu1 }
 0x599   : > { %6611 = vst [vmem:[#allocation4 + $0xe8] sm:$0xff] %v6547_v61  ;;  %v6554_v48 = vadd.f32 %v6499_v12, %v5550_v40  ;;  %v6432_v54 = vpop.f32.mrf.mxu0 }
 0x59a   : > { %6617 = vst [vmem:[#allocation4 + $0x1a0] sm:$0xff] %v6553_v45  ;;  %v6560_v37 = vadd.f32 %v6432_v54, %v5556_v17  ;;  %v6501_v1 = vpop.f32.mrf.mxu1 }
 0x59b   : > { %6618 = vst [vmem:[#allocation4 + $0x138] sm:$0xff] %v6554_v48  ;;  %v6555_v9 = vadd.f32 %v6501_v1, %v5551_v8  ;;  %v6434_v28 = vpop.f32.mrf.mxu0 }
 0x59c   : > { %6624 = vst [vmem:[#allocation4 + $0x10] sm:$0xff] %v6560_v37  ;;  %v6561_v51 = vadd.f32 %v6434_v28, %v5557_v34  ;;  %v6505_v2 = vpop.f32.mrf.mxu1 }
 0x59d   : > { %6619 = vst [vmem:[#allocation4 + $0x1c0] sm:$0xff] %v6555_v9  ;;  %v6562_v25 = vadd.f32 %v6505_v2, %v5558_v32  ;;  %v6436_v10 = vpop.f32.mrf.mxu0 }
 0x59e   : > { %6625 = vst [vmem:[#allocation4 + $0xd8] sm:$0xff] %v6561_v51  ;;  %v6568_v41 = vadd.f32 %v6436_v10, %v5564_v22  ;;  %v6507_v23 = vpop.f32.mrf.mxu1 }
 0x59f   : > { %6626 = vst [vmem:[#allocation4 + $0x1f0] sm:$0xff] %v6562_v25  ;;  %v6563_v27 = vadd.f32 %v6507_v23, %v5559_v33  ;;  %v6438_v52 = vpop.f32.mrf.mxu0 }
 0x5a0   : > { %6632 = vst [vmem:[#allocation4 + $0x48] sm:$0xff] %v6568_v41  ;;  %v6569_v49 = vadd.f32 %v6438_v52, %v5565_v38  ;;  %v6509_v13 = vpop.f32.mrf.mxu1 }
 0x5a1   : > { %6627 = vst [vmem:[#allocation4 + $0x98] sm:$0xff] %v6563_v27  ;;  %v6570_v47 = vadd.f32 %v6509_v13, %v5566_v60  ;;  %v6442_v43 = vpop.f32.mrf.mxu0 }
 0x5a2   : > { %6633 = vst [vmem:[#allocation4 + $0x90] sm:$0xff] %v6569_v49  ;;  %v6576_v4 = vadd.f32 %v6442_v43, %v5572_v18  ;;  %v6511_v57 = vpop.f32.mrf.mxu1 }
 0x5a3   : > { %6634 = vst [vmem:[#allocation4 + $0xa8] sm:$0xff] %v6570_v47  ;;  %v6571_v53 = vadd.f32 %v6511_v57, %v5567_v14  ;;  %v6444_v36 = vpop.f32.mrf.mxu0 }
 0x5a4   : > { %6640 = vst [vmem:[#allocation4 + $0xb0] sm:$0xff] %v6576_v4  ;;  %v6577_v50 = vadd.f32 %v6444_v36, %v5573_v39  ;;  %v6515_v63 = vpop.f32.mrf.mxu1 }
 0x5a5   : > { %6635 = vst [vmem:[#allocation4 + $0x160] sm:$0xff] %v6571_v53  ;;  %v6578_v15 = vadd.f32 %v6515_v63, %v5574_v44  ;;  %v6446_v55 = vpop.f32.mrf.mxu0 }
 0x5a6   : > { %6641 = vst [vmem:[#allocation4 + $0x168] sm:$0xff] %v6577_v50  ;;  %v6584_v19 = vadd.f32 %v6446_v55, %v5580_v42  ;;  %v6517_v58 = vpop.f32.mrf.mxu1 }
 0x5a7   : > { %6642 = vst [vmem:[#allocation4 + $0x1b8] sm:$0xff] %v6578_v15  ;;  %v6579_v59 = vadd.f32 %v6517_v58, %v5575_v30  ;;  %v6448_v31 = vpop.f32.mrf.mxu0 }
 0x5a8   : > { %6648 = vst [vmem:[#allocation4 + $0x188] sm:$0xff] %v6584_v19  ;;  %v6585_v16 = vadd.f32 %v6448_v31, %v5581_v7  ;;  %v6519_v5 = vpop.f32.mrf.mxu1 }
 0x5a9   : > { %6643 = vst [vmem:[#allocation4 + $0x190] sm:$0xff] %v6579_v59  ;;  %v6586_v35 = vadd.f32 %v6519_v5, %v5582_v21  ;;  %6655 = sbr.rel (%p9205_p6) target bundleno = 2641 (0xa51), region = 136 }
 0x5aa   : > { %6649 = vst [vmem:[#allocation4 + $0x148] sm:$0xff] %v6585_v16  ;;  %v6521_v11 = vpop.f32.mrf.mxu1 }
 0x5ab   : > { %6650 = vst [vmem:[#allocation4 + $0x40] sm:$0xff] %v6586_v35  ;;  %v6587_v6 = vadd.f32 %v6521_v11, %v5583_v56 }
 0x5ad   : > { %6651 = vst [vmem:[#allocation4 + $0x1e0] sm:$0xff] %v6587_v6 }
 0x5ae   : > { %v6656_v0 = vld [vmem:[#allocation2] sm:$0xf]  ;;  %v6703_v12 = vld [vmem:[#allocation4 + $0x88] sm:$0xff]  ;;  %v6705_v48 = vld [vmem:[#allocation4 + $0x140] sm:$0xff]  ;;  %v10503_v28 = vmov 0.0   ;;  %vm6758_vm5 = vcmask 130048  }
 0x5af   : > { %v6657_v62 = vmul.f32 0.03125, %v6656_v0  ;;  %v6702_v8 = vld [vmem:[#allocation4 + $0x108] sm:$0xff]  ;;  %6789 = vmatprep.subr.mxu0 %v6703_v12  ;;  %6860 = vmatprep.subr.mxu1 %v6705_v48  ;;  %v6695_v54 = vld [vmem:[#allocation4 + $0x38] sm:$0xff]  ;;  %v6704_v34 = vld [vmem:[#allocation4 + $0x110] sm:$0xff]  ;;  %vm8003_vm6 = vcmask 1045509   ;;  %vm8007_vm7 = vcmask 1046534  }
 0x5b0   : > { %v6694_v37 = vld [vmem:[#allocation4] sm:$0xff]  ;;  %6790 = vmatpush1.msra.mxu0 %v6702_v8  ;;  %6861 = vmatpush1.msra.mxu1 %v6704_v34  ;;  %v6697_v1 = vld [vmem:[#allocation4 + $0x158] sm:$0xff]  ;;  %v6707_v9 = vld [vmem:[#allocation4 + $0x50] sm:$0xff]  ;;  %vm8011_vm8 = vcmask 1047559   ;;  %vm8106_vm9 = vcmask 1043456   ;;  %vm8296_vm10 = vcmask 24576  }
 0x5b1   : > { %v6658_v24 = vsel %vm4430_vm4, %v6657_v62, -inf  ;;  %v6696_v32 = vld [vmem:[#allocation4 + $0x1f8] sm:$0xff]  ;;  %6791 = vmatprep.subr.mxu0 %v6695_v54  ;;  %6862 = vmatprep.subr.mxu1 %v6697_v1  ;;  %v6708_v41 = vld [vmem:[#allocation4 + $0xd0] sm:$0xff]  ;;  %v6699_v23 = vld [vmem:[#allocation4 + $0x8] sm:$0xff] }
 0x5b2   : > { %6659 = vmax.xlane.f32.xlu0 %v6658_v24  ;;  %6792 = vmatpush1.msra.mxu0 %v6694_v37  ;;  %v6709_v22 = vld [vmem:[#allocation4 + $0x178] sm:$0xff]  ;;  %v6701_v60 = vld [vmem:[#allocation4 + $0x100] sm:$0xff]  ;;  %v6700_v52 = vld [vmem:[#allocation4 + $0x170] sm:$0xff] }
 0x5b3   : > { %6825 = vmatprep.mubr.f32.mxu0 %v10503_v28  ;;  %6863 = vmatpush1.msra.mxu1 %v6696_v32  ;;  %v6706_v38 = vld [vmem:[#allocation4 + $0xf8] sm:$0xff]  ;;  %v6698_v27 = vld [vmem:[#allocation4 + $0x120] sm:$0xff]  ;;  %v6718_v49 = vld [vmem:[#allocation4 + $0x150] sm:$0xff] }
 0x5b4   : > { %6896 = vmatprep.mubr.f32.mxu1 %v10503_v28  ;;  %6931 = vmatprep.subr.mxu0 %v6707_v9  ;;  %v6719_v18 = vld [vmem:[#allocation4 + $0x20] sm:$0xff]  ;;  %v6711_v14 = vld [vmem:[#allocation4 + $0x130] sm:$0xff]  ;;  %v6710_v43 = vld [vmem:[#allocation4 + $0x128] sm:$0xff] }
 0x5b5   : > { %7002 = vmatprep.subr.mxu1 %v6709_v22  ;;  %v6721_v13 = vld [vmem:[#allocation4 + $0xa0] sm:$0xff]  ;;  %v6720_v47 = vld [vmem:[#allocation4 + $0x1d0] sm:$0xff]  ;;  %v6713_v4 = vld [vmem:[#allocation4 + $0x198] sm:$0xff] }
 0x5b6   : > { %v6712_v57 = vld [vmem:[#allocation4 + $0x70] sm:$0xff]  ;;  %v6723_v44 = vld [vmem:[#allocation4 + $0x1a0] sm:$0xff]  ;;  %v6715_v50 = vld [vmem:[#allocation4 + $0x18] sm:$0xff] }
 0x5b7   : > { %v6722_v36 = vld [vmem:[#allocation4 + $0xe0] sm:$0xff]  ;;  %v6724_v63 = vld [vmem:[#allocation4 + $0x138] sm:$0xff]  ;;  %v6714_v30 = vld [vmem:[#allocation4 + $0x1a8] sm:$0xff] }
 0x5b8   : > { %v6725_v42 = vld [vmem:[#allocation4 + $0x1c0] sm:$0xff]  ;;  %v6717_v15 = vld [vmem:[#allocation4 + $0xe8] sm:$0xff]  ;;  %v6735_v55 = vld [vmem:[#allocation4 + $0x1b0] sm:$0xff] }
 0x5b9   : > { %v6734_v7 = vld [vmem:[#allocation4 + $0x118] sm:$0xff]  ;;  %v6737_v19 = vld [vmem:[#allocation4 + $0x1c8] sm:$0xff]  ;;  %v6726_v59 = vld [vmem:[#allocation4 + $0xf0] sm:$0xff] }
 0x5ba   : > { %v6727_v58 = vld [vmem:[#allocation4 + $0xb8] sm:$0xff]  ;;  %v6729_v31 = vld [vmem:[#allocation4 + $0x1e8] sm:$0xff]  ;;  %v6728_v16 = vld [vmem:[#allocation4 + $0x30] sm:$0xff] }
 0x5bb   : > { %v6736_v21 = vld [vmem:[#allocation4 + $0x78] sm:$0xff]  ;;  %v6739_v5 = vld [vmem:[#allocation4 + $0x90] sm:$0xff]  ;;  %v6738_v35 = vld [vmem:[#allocation4 + $0x48] sm:$0xff] }
 0x5bc   : > { %v6741_v11 = vld [vmem:[#allocation4 + $0x160] sm:$0xff]  ;;  %v6731_v6 = vld [vmem:[#allocation4 + $0xd8] sm:$0xff]  ;;  %v6740_v0 = vld [vmem:[#allocation4 + $0xa8] sm:$0xff] }
 0x5bd   : > { %v6733_v24 = vld [vmem:[#allocation4 + $0x98] sm:$0xff]  ;;  %v6742_v8 = vld [vmem:[#allocation4 + $0x180] sm:$0xff]  ;;  %v6745_v48 = vld [vmem:[#allocation4 + $0x68] sm:$0xff] }
 0x5be   : > { %v6752_v12 = vld [vmem:[#allocation4 + $0x58] sm:$0xff]  ;;  %v6744_v54 = vld [vmem:[#allocation4 + $0x80] sm:$0xff]  ;;  %v6755_v37 = vld [vmem:[#allocation4 + $0x148] sm:$0xff] }
 0x5bf   : > { %v6757_v1 = vld [vmem:[#allocation4 + $0x1e0] sm:$0xff]  ;;  %v6754_v32 = vld [vmem:[#allocation4 + $0x188] sm:$0xff] }
 0x5c0   : > { %v6756_v9 = vld [vmem:[#allocation4 + $0x40] sm:$0xff]  ;;  %v6747_v22 = vld [vmem:[#allocation4 + $0x168] sm:$0xff] }
 0x63b   : > { %v6660_v40 = vpop.xlane.xlu0 %6659 }
 0x63c   : > { %v6661_v61 = vsub.f32 %v6657_v62, %v6660_v40  ;;  %v6730_v62 = vld [vmem:[#allocation4 + $0x10] sm:$0xff] }
 0x63d   : > { %v6732_v40 = vld [vmem:[#allocation4 + $0x1f0] sm:$0xff] }
 0x63e   : > { %v6662_v26 = vmul.f32 1.442695, %v6661_v61  ;;  %v6751_v61 = vld [vmem:[#allocation4 + $0xc0] sm:$0xff] }
 0x640   : > { %10041 = vpow2.f32 %v6662_v26  ;;  %v6750_v26 = vld [vmem:[#allocation4 + $0x28] sm:$0xff] }
 0x64d   : > { %v10042_v17 = vpop.eup %10041 }
 0x64e   : > { %v6664_v45 = vsel %vm4430_vm4, %v10042_v17, 0.0 }
 0x64f   : > { %6665 = vadd.xlane.f32.xlu0 %v6664_v45  ;;  %v6743_v45 = vld [vmem:[#allocation4 + $0xc8] sm:$0xff] }
 0x6d8   : > { %v6666_v51 = vpop.xlane.xlu0 %6665 }
 0x6d9   : > { %10043 = vrcp.f32 %v6666_v51  ;;  %v6749_v51 = vld [vmem:[#allocation4 + $0x190] sm:$0xff] }
 0x6e6   : > { %v10044_v2 = vpop.eup %10043 }
 0x6e7   : > { %v6668_v33 = vmul.f32 %v10044_v2, %v10042_v17  ;;  %v6753_v17 = vld [vmem:[#allocation4 + $0x60] sm:$0xff]  ;;  %v6746_v2 = vld [vmem:[#allocation4 + $0xb0] sm:$0xff] }
 0x6e9   : > { %v6676_v25 = vrot.slane %v6668_v33, %v11803_v3  ;;  %v6748_v33 = vld [vmem:[#allocation4 + $0x1b8] sm:$0xff] }
 0x6eb   : > { %v12137_v10 = vrot.slane %v6676_v25, %v11803_v3  ;;  %v6677_v39 = vcombine.high %v6676_v25, %v6676_v25 }
 0x6ed   : > { %9206 = vmatmul.mubr.msk.f32.vlgmr.msra.gmra.mxu0 %vm6758_vm5, %v12137_v10  ;;  %9207 = vmatmul.mubr.msk.f32.vlgmr.msra.gmra.mxu1 %vm6758_vm5, %v12137_v10  ;;  %v12151_v53 = vrot.slane %v6677_v39, %v11803_v3  ;;  %v6716_v3 = vld [vmem:[#allocation4 + $0x1d8] sm:$0xff]  ;;  %v6692_v56 = vcombine.high %v12137_v10, %v12137_v10 }
 0x6ee   : > { %6932 = vmatpush1.msra.mxu0 %v6706_v38  ;;  %7003 = vmatpush1.msra.mxu1 %v6708_v41 }
 0x6ef   : > { %6933 = vmatprep.subr.mxu0 %v6699_v23  ;;  %7004 = vmatprep.subr.mxu1 %v6701_v60  ;;  %v6693_v34 = vcombine.high %v12151_v53, %v12151_v53 }
 0x6f0   : > { %6934 = vmatpush1.msra.mxu0 %v6698_v27  ;;  %6967 = vmatprep.mubr.f32.mxu0 %v10503_v28 }
 0x6f1   : > { %7005 = vmatpush1.msra.mxu1 %v6700_v52  ;;  %7038 = vmatprep.mubr.f32.mxu1 %v10503_v28 }
 0x6f2   : > { %7075 = vmatprep.subr.mxu0 %v6719_v18  ;;  %9208 = vmatmul.mubr.msk.f32.vlgmr.msra.gmra.mxu0 %vm6758_vm5, %v12137_v10 }
 0x6f3   : > { %9209 = vmatmul.mubr.msk.f32.vlgmr.msra.gmra.mxu1 %vm6758_vm5, %v12137_v10  ;;  %7076 = vmatpush1.msra.mxu0 %v6718_v49 }
 0x6f4   : > { %7146 = vmatprep.subr.mxu1 %v6721_v13  ;;  %7077 = vmatprep.subr.mxu0 %v6711_v14 }
 0x6f5   : > { %7147 = vmatpush1.msra.mxu1 %v6720_v47  ;;  %7078 = vmatpush1.msra.mxu0 %v6710_v43 }
 0x6f6   : > { %7148 = vmatprep.subr.mxu1 %v6713_v4  ;;  %7111 = vmatprep.mubr.f32.mxu0 %v10503_v28  ;;  %v12192_v4 = vld [vmem:[#allocation17] sm:$0xff] }
 0x6f7   : > { %7149 = vmatpush1.msra.mxu1 %v6712_v57  ;;  %7182 = vmatprep.mubr.f32.mxu1 %v10503_v28 }
 0x6f8   : > { %7217 = vmatprep.subr.mxu0 %v6723_v44  ;;  %9210 = vmatmul.mubr.msk.f32.vlgmr.msra.gmra.mxu0 %vm6758_vm5, %v12151_v53 }
 0x6f9   : > { %9211 = vmatmul.mubr.msk.f32.vlgmr.msra.gmra.mxu1 %vm6758_vm5, %v12151_v53  ;;  %7218 = vmatpush1.msra.mxu0 %v6722_v36 }
 0x6fa   : > { %7288 = vmatprep.subr.mxu1 %v6725_v42  ;;  %7219 = vmatprep.subr.mxu0 %v6715_v50  ;;  %v12437_v42 = vld [vmem:[#allocation40_spill] sm:$0xff] }
 0x6fb   : > { %7289 = vmatpush1.msra.mxu1 %v6724_v63  ;;  %7220 = vmatpush1.msra.mxu0 %v6714_v30  ;;  %v7916_v50 = vrot.slane %v12192_v4, %v12437_v42  ;;  %v7920_v63 = vrot.slane %v12192_v4, %v11708_v29  ;;  %v7924_v30 = vrot.slane %v12192_v4, %v11711_v46 }
 0x6fc   : > { %7290 = vmatprep.subr.mxu1 %v6717_v15  ;;  %7253 = vmatprep.mubr.f32.mxu0 %v10503_v28 }
 0x6fd   : > { %7291 = vmatpush1.msra.mxu1 %v6716_v3  ;;  %7324 = vmatprep.mubr.f32.mxu1 %v10503_v28 }
 0x6fe   : > { %7361 = vmatprep.subr.mxu0 %v6735_v55  ;;  %9212 = vmatmul.mubr.msk.f32.vlgmr.msra.gmra.mxu0 %vm6758_vm5, %v12151_v53 }
 0x6ff   : > { %9213 = vmatmul.mubr.msk.f32.vlgmr.msra.gmra.mxu1 %vm6758_vm5, %v12151_v53  ;;  %7362 = vmatpush1.msra.mxu0 %v6734_v7  ;;  %v12436_v53 = vld [vmem:[#allocation38_spill] sm:$0xff] }
 0x700   : > { %7432 = vmatprep.subr.mxu1 %v6737_v19  ;;  %7363 = vmatprep.subr.mxu0 %v6727_v58  ;;  %v7912_v36 = vrot.slane %v12192_v4, %v12436_v53  ;;  %v12202_v19 = vld [vmem:[#allocation18] sm:$0xff] }
 0x701   : > { %7433 = vmatpush1.msra.mxu1 %v6736_v21  ;;  %7364 = vmatpush1.msra.mxu0 %v6726_v59  ;;  %v7942_v21 = vcombine.low %v7920_v63, %v7924_v30  ;;  %v12205_v59 = vsub.s32 4, %v11398_v20 }
 0x702   : > { %7434 = vmatprep.subr.mxu1 %v6729_v31  ;;  %7397 = vmatprep.mubr.f32.mxu0 %v10503_v28  ;;  %v7941_v58 = vcombine.low %v7912_v36, %v7916_v50  ;;  %v12208_v31 = vsub.s32 5, %v11398_v20 }
 0x703   : > { %7435 = vmatpush1.msra.mxu1 %v6728_v16  ;;  %7468 = vmatprep.mubr.f32.mxu1 %v10503_v28 }
 0x704   : > { %7503 = vmatprep.subr.mxu0 %v6739_v5  ;;  %9214 = vmatmul.mubr.msk.f32.vlgmr.msra.gmra.mxu0 %vm6758_vm5, %v6692_v56  ;;  %v8053_v5 = vrot.slane %v12202_v19, %v12436_v53 }
 0x705   : > { %9215 = vmatmul.mubr.msk.f32.vlgmr.msra.gmra.mxu1 %vm6758_vm5, %v6692_v56  ;;  %7504 = vmatpush1.msra.mxu0 %v6738_v35  ;;  %v12215_v35 = vsub.s32 6, %v11398_v20 }
 0x706   : > { %7574 = vmatprep.subr.mxu1 %v6741_v11  ;;  %7505 = vmatprep.subr.mxu0 %v6731_v6  ;;  %v12218_v11 = vsub.s32 7, %v11398_v20 }
 0x707   : > { %7575 = vmatpush1.msra.mxu1 %v6740_v0  ;;  %7506 = vmatpush1.msra.mxu0 %v6730_v62 }
 0x708   : > { %7576 = vmatprep.subr.mxu1 %v6733_v24  ;;  %7539 = vmatprep.mubr.f32.mxu0 %v10503_v28 }
 0x709   : > { %7577 = vmatpush1.msra.mxu1 %v6732_v40  ;;  %7610 = vmatprep.mubr.f32.mxu1 %v10503_v28 }
 0x70a   : > { %7647 = vmatprep.subr.mxu0 %v6751_v61  ;;  %9216 = vmatmul.mubr.msk.f32.vlgmr.msra.gmra.mxu0 %vm6758_vm5, %v6692_v56  ;;  %v7903_v61 = vld [vmem:[#allocation3 + $0x10] sm:$0xff] }
 0x70b   : > { %9217 = vmatmul.mubr.msk.f32.vlgmr.msra.gmra.mxu1 %vm6758_vm5, %v6692_v56  ;;  %7648 = vmatpush1.msra.mxu0 %v6750_v26  ;;  %v8057_v56 = vrot.slane %v12202_v19, %v12437_v42  ;;  %v7904_v26 = vld [vmem:[#allocation3] sm:$0xff] }
 0x70c   : > { %7718 = vmatprep.subr.mxu1 %v6753_v17  ;;  %7649 = vmatprep.subr.mxu0 %v6743_v45 }
 0x70d   : > { %7719 = vmatpush1.msra.mxu1 %v6752_v12  ;;  %7650 = vmatpush1.msra.mxu0 %v6742_v8  ;;  %v8061_v8 = vrot.slane %v12202_v19, %v11708_v29 }
 0x70e   : > { %7720 = vmatprep.subr.mxu1 %v6745_v48  ;;  %7683 = vmatprep.mubr.f32.mxu0 %v10503_v28  ;;  %v8065_v48 = vrot.slane %v12202_v19, %v11711_v46 }
 0x70f   : > { %7721 = vmatpush1.msra.mxu1 %v6744_v54  ;;  %7754 = vmatprep.mubr.f32.mxu1 %v10503_v28 }
 0x710   : > { %9218 = vmatmul.mubr.msk.f32.vlgmr.msra.gmra.mxu0 %vm6758_vm5, %v6693_v34  ;;  %9219 = vmatmul.mubr.msk.f32.vlgmr.msra.gmra.mxu1 %vm6758_vm5, %v6693_v34 }
 0x711   : > { %7789 = vmatprep.subr.mxu0 %v6755_v37  ;;  %7860 = vmatprep.subr.mxu1 %v6757_v1  ;;  %v7928_v1 = vrot.slane %v12192_v4, %v12205_v59 }
 0x712   : > { %7790 = vmatpush1.msra.mxu0 %v6754_v32  ;;  %7861 = vmatpush1.msra.mxu1 %v6756_v9  ;;  %v7932_v32 = vrot.slane %v12192_v4, %v12208_v31  ;;  %v7949_v9 = vadd.f32 %v7941_v58, %v7903_v61 }
 0x713   : > { %7791 = vmatprep.subr.mxu0 %v6747_v22  ;;  %7862 = vmatprep.subr.mxu1 %v6749_v51  ;;  %v7950_v22 = vadd.f32 %v7942_v21, %v7904_v26  ;;  %v7936_v51 = vrot.slane %v12192_v4, %v12215_v35 }
 0x714   : > { %7792 = vmatpush1.msra.mxu0 %v6746_v2  ;;  %7825 = vmatprep.mubr.f32.mxu0 %v10503_v28 }
 0x715   : > { %7863 = vmatpush1.msra.mxu1 %v6748_v33  ;;  %7896 = vmatprep.mubr.f32.mxu1 %v10503_v28 }
 0x716   : > { %9220 = vmatmul.mubr.msk.f32.vlgmr.msra.gmra.mxu0 %vm6758_vm5, %v6693_v34  ;;  %9221 = vmatmul.mubr.msk.f32.vlgmr.msra.gmra.mxu1 %vm6758_vm5, %v6693_v34 }
 0x7ad   : > { %v6827_v25 = vpop.f32.mrf.mxu0  ;;  %v6898_v10 = vpop.f32.mrf.mxu1 }
 0x7af   : > { %v6829_v38 = vpop.f32.mrf.mxu0  ;;  %v6900_v41 = vpop.f32.mrf.mxu1 }
 0x7b0   : > { %v7985_v54 = vcombine.low %v6827_v25, %v6829_v38  ;;  %v7986_v34 = vcombine.low %v6898_v10, %v6900_v41 }
 0x7b2   : > { %v12184_v23 = vpop.f32.mrf.mxu0 }
 0x7b3   : > { %v12186_v60 = vpop.f32.mrf.mxu1 }
 0x7b4   : > { %v12188_v27 = vpop.f32.mrf.mxu0 }
 0x7b5   : > { %v12190_v52 = vpop.f32.mrf.mxu1 }
 0x7b8   : > { %v7113_v18 = vpop.f32.mrf.mxu0 }
 0x7b9   : > { %v7184_v49 = vpop.f32.mrf.mxu1 }
 0x7ba   : > { %v7115_v13 = vpop.f32.mrf.mxu0 }
 0x7bb   : > { %v7186_v28 = vpop.f32.mrf.mxu1  ;;  %v7989_v3 = vcombine.low %v7113_v18, %v7115_v13 }
 0x7bc   : > { %v7990_v55 = vcombine.low %v7184_v49, %v7186_v28 }
 0x7bd   : > { %v8001_v6 = vrot.slane %v7989_v3, 7 }
 0x7be   : > { %v7255_v14 = vpop.f32.mrf.mxu0  ;;  %v8013_v0 = vrot.slane %v7990_v55, 7 }
 0x7bf   : > { %v7326_v47 = vpop.f32.mrf.mxu1  ;;  %v8002_v2 = vsel %vm4420_vm1, %v8001_v6, %v7985_v54 }
 0x7c0   : > { %v7257_v43 = vpop.f32.mrf.mxu0  ;;  %v8014_v33 = vsel %vm4420_vm1, %v8013_v0, %v7986_v34  ;;  %v8004_v36 = vsel %vm8003_vm6, %v8001_v6, %v8002_v2 }
 0x7c1   : > { %v7328_v39 = vpop.f32.mrf.mxu1  ;;  %v7991_v17 = vcombine.low %v7255_v14, %v7257_v43  ;;  %v8082_v14 = vcombine.low %v8053_v5, %v8057_v56  ;;  %v7943_v43 = vcombine.low %v7928_v1, %v7932_v32  ;;  %v8015_v50 = vsel %vm8003_vm6, %v8013_v0, %v8014_v33 }
 0x7c2   : > { %v7992_v45 = vcombine.low %v7326_v47, %v7328_v39  ;;  %v8083_v47 = vcombine.low %v8061_v8, %v8065_v48  ;;  %v7940_v39 = vrot.slane %v12192_v4, %v12218_v11  ;;  %v8073_v0 = vrot.slane %v12202_v19, %v12208_v31 }
 0x7c3   : > { %v8022_v10 = vrot.slane %v7991_v17, 7  ;;  %v7905_v17 = vld [vmem:[#allocation3 + $0x18] sm:$0xff] }
 0x7c4   : > { %v7399_v57 = vpop.f32.mrf.mxu0  ;;  %v8031_v38 = vrot.slane %v7992_v45, 7  ;;  %v7906_v45 = vld [vmem:[#allocation3 + $0x8] sm:$0xff]  ;;  %v7951_v33 = vadd.f32 %v7943_v43, %v7905_v17 }
 0x7c5   : > { %v7470_v44 = vpop.f32.mrf.mxu1 }
 0x7c6   : > { %v7401_v15 = vpop.f32.mrf.mxu0 }
 0x7c7   : > { %v7472_v7 = vpop.f32.mrf.mxu1  ;;  %v7993_v62 = vcombine.low %v7399_v57, %v7401_v15  ;;  %v7987_v57 = vcombine.low %v12184_v23, %v12188_v27 }
 0x7c8   : > { %v7994_v24 = vcombine.low %v7470_v44, %v7472_v7  ;;  %v7988_v44 = vcombine.low %v12186_v60, %v12190_v52  ;;  %v8069_v52 = vrot.slane %v12202_v19, %v12205_v59 }
 0x7c9   : > { %v8005_v18 = vrot.slane %v7993_v62, 6  ;;  %v8023_v4 = vsel %vm4420_vm1, %v8022_v10, %v7987_v57  ;;  %v7944_v62 = vcombine.low %v7936_v51, %v7940_v39 }
 0x7ca   : > { %v7541_v16 = vpop.f32.mrf.mxu0  ;;  %v8016_v25 = vrot.slane %v7994_v24, 6  ;;  %v8032_v58 = vsel %vm4420_vm1, %v8031_v38, %v7988_v44  ;;  %v8024_v24 = vsel %vm8003_vm6, %v8022_v10, %v8023_v4  ;;  %v8081_v10 = vrot.slane %v12202_v19, %v12218_v11 }
 0x7cb   : > { %v7612_v40 = vpop.f32.mrf.mxu1  ;;  %v8006_v15 = vsel %vm4423_vm2, %v8005_v18, %v8004_v36  ;;  %v8084_v57 = vcombine.low %v8069_v52, %v8073_v0 }
 0x7cc   : > { %v7543_v12 = vpop.f32.mrf.mxu0  ;;  %v8017_v3 = vsel %vm4423_vm2, %v8016_v25, %v8015_v50 }
 0x7cd   : > { %v7614_v37 = vpop.f32.mrf.mxu1  ;;  %v7995_v41 = vcombine.low %v7541_v16, %v7543_v12  ;;  %v8008_v16 = vsel %vm8007_vm7, %v8005_v18, %v8006_v15  ;;  %v8018_v5 = vsel %vm8007_vm7, %v8016_v25, %v8017_v3  ;;  %v7952_v18 = vadd.f32 %v7944_v62, %v7906_v45 }
 0x7ce   : > { %v7996_v49 = vcombine.low %v7612_v40, %v7614_v37  ;;  %v8033_v40 = vsel %vm8003_vm6, %v8031_v38, %v8032_v58  ;;  %v8077_v25 = vrot.slane %v12202_v19, %v12215_v35 }
 0x7cf   : > { %v8025_v23 = vrot.slane %v7995_v41, 6 }
 0x7d0   : > { %v7685_v13 = vpop.f32.mrf.mxu0  ;;  %v7756_v28 = vpop.f32.mrf.mxu1  ;;  %v8034_v27 = vrot.slane %v7996_v49, 6 }
 0x7d1   : > { %v8026_v12 = vsel %vm4423_vm2, %v8025_v23, %v8024_v24 }
 0x7d2   : > { %v7687_v63 = vpop.f32.mrf.mxu0  ;;  %v7758_v30 = vpop.f32.mrf.mxu1  ;;  %v8035_v8 = vsel %vm4423_vm2, %v8034_v27, %v8033_v40 }
 0x7d3   : > { %v7997_v55 = vcombine.low %v7685_v13, %v7687_v63  ;;  %v7998_v7 = vcombine.low %v7756_v28, %v7758_v30  ;;  %v8027_v28 = vsel %vm8007_vm7, %v8025_v23, %v8026_v12  ;;  %v8036_v39 = vsel %vm8007_vm7, %v8034_v27, %v8035_v8 }
 0x7d5   : > { %v8009_v21 = vrot.slane %v7997_v55, 5  ;;  %v8019_v60 = vrot.slane %v7998_v7, 5 }
 0x7d6   : > { %v7827_v56 = vpop.f32.mrf.mxu0  ;;  %v7898_v6 = vpop.f32.mrf.mxu1 }
 0x7d7   : > { %v8010_v61 = vsel %vm4426_vm3, %v8009_v21, %v8008_v16  ;;  %v8020_v26 = vsel %vm4426_vm3, %v8019_v60, %v8018_v5 }
 0x7d8   : > { %v8012_v48 = vsel %vm8011_vm8, %v8009_v21, %v8010_v61  ;;  %v8021_v54 = vsel %vm8011_vm8, %v8019_v60, %v8020_v26  ;;  %v7829_v34 = vpop.f32.mrf.mxu0  ;;  %v7900_v37 = vpop.f32.mrf.mxu1 }
 0x7d9   : > { %v8044_v1 = vadd.f32 %v8012_v48, %v7949_v9  ;;  %v8045_v32 = vadd.f32 %v8021_v54, %v7950_v22  ;;  %v7999_v51 = vcombine.low %v7827_v56, %v7829_v34  ;;  %v8000_v2 = vcombine.low %v7898_v6, %v7900_v37 }
 0x7db   : > { %v8090_v38 = vadd.f32 %v8082_v14, %v8044_v1  ;;  %v8091_v41 = vadd.f32 %v8083_v47, %v8045_v32  ;;  %v8028_v49 = vrot.slane %v7999_v51, 5  ;;  %v8037_v13 = vrot.slane %v8000_v2, 5 }
 0x7dc   : > { %v8085_v14 = vcombine.low %v8077_v25, %v8081_v10 }
 0x7dd   : > { %v8098_v9 = vcombine.high %v8090_v38, %v8090_v38  ;;  %v8029_v22 = vsel %vm4426_vm3, %v8028_v49, %v8027_v28  ;;  %v8038_v43 = vsel %vm4426_vm3, %v8037_v13, %v8036_v39  ;;  %v8107_v44 = vsel %vm8106_vm9, %v8090_v38, 0.0 }
 0x7de   : > { %v8030_v36 = vsel %vm8011_vm8, %v8028_v49, %v8029_v22  ;;  %v8039_v19 = vsel %vm8011_vm8, %v8037_v13, %v8038_v43  ;;  %v8099_v63 = vcombine.high %v8091_v41, %v8091_v41  ;;  %v8110_v55 = vsel %vm8106_vm9, %v8091_v41, 0.0 }
 0x7df   : > { %v8046_v47 = vadd.f32 %v8030_v36, %v7951_v33  ;;  %v8047_v50 = vadd.f32 %v8039_v19, %v7952_v18  ;;  %v8108_v30 = vsel %vm8106_vm9, %v8098_v9, 0.0 }
 0x7e0   : > { %v8109_v15 = vadd.f32 %v8108_v30, %v8107_v44  ;;  %v8112_v23 = vsel %vm8106_vm9, %v8099_v63, 0.0  ;;  %v8277_v63 = vld [vmem:[#allocation5] sm:$0x1]  ;;  %v10504_v30 = vmov 0  }
 0x7e1   : > { %v8092_v3 = vadd.f32 %v8084_v57, %v8046_v47  ;;  %v8093_v4 = vadd.f32 %v8085_v14, %v8047_v50  ;;  %10039 = vset.pattern.permute.xlu1 %v10504_v30  ;;  %10040 = vset.pattern.permute.xlu0 %v10504_v30 }
 0x7e2   : > { %v8111_v7 = vadd.f32 %v8110_v55, %v8109_v15 }
 0x7e3   : > { %v8100_v58 = vcombine.high %v8092_v3, %v8092_v3  ;;  %v8114_v21 = vsel %vm8106_vm9, %v8092_v3, 0.0  ;;  %v8101_v52 = vcombine.high %v8093_v4, %v8093_v4  ;;  %v8118_v56 = vsel %vm8106_vm9, %v8093_v4, 0.0 }
 0x7e4   : > { %v8113_v27 = vadd.f32 %v8112_v23, %v8111_v7 }
 0x7e5   : > { %v8116_v16 = vsel %vm8106_vm9, %v8100_v58, 0.0  ;;  %v8120_v0 = vsel %vm8106_vm9, %v8101_v52, 0.0  ;;  %v8202_v52 = vld [vmem:[#allocation23] sm:$0xff] }
 0x7e6   : > { %v8115_v60 = vadd.f32 %v8114_v21, %v8113_v27 }
 0x7e8   : > { %v8117_v5 = vadd.f32 %v8116_v16, %v8115_v60  ;;  %v8207_v16 = vrot.slane %v8202_v52, %v12436_v53 }
 0x7ea   : > { %v8119_v6 = vadd.f32 %v8118_v56, %v8117_v5  ;;  %v8211_v5 = vrot.slane %v8202_v52, %v12437_v42  ;;  %v8215_v56 = vrot.slane %v8202_v52, %v11708_v29  ;;  %v8189_v42 = vld [vmem:[#allocation20 + $0x18] sm:$0xff] }
 0x7ec   : > { %v8121_v62 = vadd.f32 %v8120_v0, %v8119_v6  ;;  %v8219_v6 = vrot.slane %v8202_v52, %v11711_v46 }
 0x7ee   : > { %8122 = vadd.xlane.f32.xlu1 %v8121_v62  ;;  %v8186_v62 = vld [vmem:[#allocation20] sm:$0xff]  ;;  %v8237_v46 = vcombine.low %v8215_v56, %v8219_v6 }
 0x877   : > { %v8123_v24 = vpop.xlane.xlu1 %8122 }
 0x878   : > { %v8124_v40 = vrot.slane %v8123_v24, 4 }
 0x87a   : > { %v8125_v61 = vadd.f32 %v8124_v40, %v8123_v24  ;;  %v8187_v24 = vld [vmem:[#allocation20 + $0x8] sm:$0xff]  ;;  %v8188_v40 = vld [vmem:[#allocation20 + $0x10] sm:$0xff] }
 0x87c   : > { %v8126_v26 = vrot.slane %v8125_v61, 2 }
 0x87e   : > { %v8127_v17 = vadd.f32 %v8126_v26, %v8125_v61 }
 0x880   : > { %v8128_v45 = vrot.slane %v8127_v17, 1 }
 0x882   : > { %v8129_v12 = vadd.f32 %v8128_v45, %v8127_v17 }
 0x884   : > { %9233 = vpush %v8129_v12  ;;  %v8194_v12 = vld [vmem:[#allocation21] sm:$0xff] }
 0x8b5   : > { %s9234_s21 = spop %9233 }
 0x8b6   : > { %v8131_v8 = vstv %s9234_s21 }
 0x8b7   : > { %v8133_v48 = vmul.f32 0.00024414063, %v8131_v8  ;;  %v8195_v8 = vld [vmem:[#allocation21 + $0x8] sm:$0xff] }
 0x8b9   : > { %v8134_v54 = vsub.f32 %v8090_v38, %v8133_v48  ;;  %v8135_v34 = vsub.f32 %v8091_v41, %v8133_v48  ;;  %v8136_v37 = vsub.f32 %v8092_v3, %v8133_v48  ;;  %v8137_v2 = vsub.f32 %v8093_v4, %v8133_v48 }
 0x8ba   : > { %v8223_v48 = vrot.slane %v8202_v52, %v12205_v59 }
 0x8bb   : > { %v8138_v1 = vmul.f32 %v8134_v54, %v8134_v54  ;;  %v8139_v32 = vmul.f32 %v8135_v34, %v8135_v34  ;;  %v8140_v18 = vmul.f32 %v8136_v37, %v8136_v37  ;;  %v8141_v39 = vmul.f32 %v8137_v2, %v8137_v2 }
 0x8bd   : > { %v8146_v51 = vcombine.high %v8138_v1, %v8138_v1  ;;  %v8154_v33 = vsel %vm8106_vm9, %v8138_v1, 0.0  ;;  %v8147_v25 = vcombine.high %v8139_v32, %v8139_v32  ;;  %v8157_v13 = vsel %vm8106_vm9, %v8139_v32, 0.0 }
 0x8be   : > { %v8148_v9 = vcombine.high %v8140_v18, %v8140_v18  ;;  %v8161_v22 = vsel %vm8106_vm9, %v8140_v18, 0.0  ;;  %v8149_v43 = vcombine.high %v8141_v39, %v8141_v39  ;;  %v8165_v19 = vsel %vm8106_vm9, %v8141_v39, 0.0  ;;  %v8196_v18 = vld [vmem:[#allocation21 + $0x10] sm:$0xff] }
 0x8bf   : > { %v8155_v10 = vsel %vm8106_vm9, %v8146_v51, 0.0  ;;  %v8159_v38 = vsel %vm8106_vm9, %v8147_v25, 0.0  ;;  %v8227_v1 = vrot.slane %v8202_v52, %v12208_v31  ;;  %v8236_v32 = vcombine.low %v8207_v16, %v8211_v5 }
 0x8c0   : > { %v8156_v49 = vadd.f32 %v8155_v10, %v8154_v33  ;;  %v8163_v44 = vsel %vm8106_vm9, %v8148_v9, 0.0  ;;  %v8167_v47 = vsel %vm8106_vm9, %v8149_v43, 0.0 }
 0x8c2   : > { %v8158_v28 = vadd.f32 %v8157_v13, %v8156_v49  ;;  %v8238_v13 = vcombine.low %v8223_v48, %v8227_v1 }
 0x8c4   : > { %v8160_v41 = vadd.f32 %v8159_v38, %v8158_v28 }
 0x8c6   : > { %v8162_v57 = vadd.f32 %v8161_v22, %v8160_v41 }
 0x8c8   : > { %v8164_v36 = vadd.f32 %v8163_v44, %v8162_v57 }
 0x8ca   : > { %v8166_v14 = vadd.f32 %v8165_v19, %v8164_v36 }
 0x8cc   : > { %v8168_v50 = vadd.f32 %v8167_v47, %v8166_v14 }
 0x8ce   : > { %8169 = vadd.xlane.f32.xlu1 %v8168_v50 }
 0x8df   : > { %8280 = vperm.xlu1 %10039, %v8277_v63  }
 0x957   : > { %v8170_v15 = vpop.xlane.xlu1 %8169 }
 0x958   : > { %v8171_v3 = vrot.slane %v8170_v15, 4 }
 0x95a   : > { %v8172_v55 = vadd.f32 %v8171_v3, %v8170_v15 }
 0x95c   : > { %v8173_v7 = vrot.slane %v8172_v55, 2 }
 0x95e   : > { %v8174_v4 = vadd.f32 %v8173_v7, %v8172_v55 }
 0x960   : > { %v8175_v58 = vrot.slane %v8174_v4, 1 }
 0x962   : > { %v8176_v23 = vadd.f32 %v8175_v58, %v8174_v4  ;;  %v8281_v58 = vpop.permute.xlu1 %8280 }
 0x964   : > { %9235 = vpush %v8176_v23  ;;  %v12438_v23 = vlaneseq }
 0x995   : > { %s9236_s16 = spop %9235 }
 0x996   : > { %v8178_v27 = vstv %s9236_s16 }
 0x997   : > { %v8179_v21 = vmul.f32 0.00024414063, %v8178_v27  ;;  %v8290_v27 = vand.u32 127, %v12438_v23 }
 0x999   : > { %v8180_v60 = vadd.f32 1e-05, %v8179_v21  ;;  %v8286_v21 = vrot.slane %v8281_v58, %v12436_v53 }
 0x99b   : > { %10045 = vrsqrt.f32 %v8180_v60  ;;  %v8293_v60 = vsub.s32 %v8290_v27, %v11398_v20 }
 0x9a8   : > { %v10046_v0 = vpop.eup %10045 }
 0x9a9   : > { %v8182_v61 = vmul.f32 %v10046_v0, %v8134_v54  ;;  %v8183_v26 = vmul.f32 %v10046_v0, %v8135_v34  ;;  %v8184_v17 = vmul.f32 %v10046_v0, %v8136_v37  ;;  %v8185_v45 = vmul.f32 %v10046_v0, %v8137_v2  ;;  %v8197_v37 = vld [vmem:[#allocation21 + $0x18] sm:$0xff] }
 0x9aa   : > { %v8231_v54 = vrot.slane %v8202_v52, %v12215_v35  ;;  %v8235_v34 = vrot.slane %v8202_v52, %v12218_v11 }
 0x9ab   : > { %v8190_v51 = vmul.f32 %v8186_v62, %v8182_v61  ;;  %v8191_v29 = vmul.f32 %v8187_v24, %v8183_v26  ;;  %v8192_v33 = vmul.f32 %v8188_v40, %v8184_v17  ;;  %v8193_v49 = vmul.f32 %v8189_v42, %v8185_v45 }
 0x9ac   : > { %v8239_v9 = vcombine.low %v8231_v54, %v8235_v34 }
 0x9ad   : > { %v8198_v25 = vadd.f32 %v8194_v12, %v8190_v51  ;;  %v8199_v10 = vadd.f32 %v8195_v8, %v8191_v29  ;;  %v8200_v2 = vadd.f32 %v8196_v18, %v8192_v33  ;;  %v8201_v39 = vadd.f32 %v8197_v37, %v8193_v49 }
 0x9af   : > { %v8244_v59 = vmul.f32 %v8236_v32, %v8198_v25  ;;  %v8245_v28 = vmul.f32 %v8237_v46, %v8199_v10  ;;  %v8246_v38 = vmul.f32 %v8238_v13, %v8200_v2  ;;  %v8247_v36 = vmul.f32 %v8239_v9, %v8201_v39 }
 0x9b1   : > { %v8252_v31 = vcombine.high %v8244_v59, %v8244_v59  ;;  %v8253_v41 = vcombine.high %v8245_v28, %v8245_v28  ;;  %v8260_v22 = vsel %vm8106_vm9, %v8244_v59, 0.0  ;;  %v8263_v44 = vsel %vm8106_vm9, %v8245_v28, 0.0 }
 0x9b2   : > { %v8254_v11 = vcombine.high %v8246_v38, %v8246_v38  ;;  %v8267_v47 = vsel %vm8106_vm9, %v8246_v38, 0.0  ;;  %v8255_v63 = vcombine.high %v8247_v36, %v8247_v36  ;;  %v8271_v3 = vsel %vm8106_vm9, %v8247_v36, 0.0 }
 0x9b3   : > { %v8261_v57 = vsel %vm8106_vm9, %v8252_v31, 0.0  ;;  %v8265_v19 = vsel %vm8106_vm9, %v8253_v41, 0.0 }
 0x9b4   : > { %v8262_v43 = vadd.f32 %v8261_v57, %v8260_v22  ;;  %v8269_v30 = vsel %vm8106_vm9, %v8254_v11, 0.0  ;;  %v8273_v7 = vsel %vm8106_vm9, %v8255_v63, 0.0 }
 0x9b6   : > { %v8264_v35 = vadd.f32 %v8263_v44, %v8262_v43 }
 0x9b8   : > { %v8266_v14 = vadd.f32 %v8265_v19, %v8264_v35 }
 0x9ba   : > { %v8268_v50 = vadd.f32 %v8267_v47, %v8266_v14 }
 0x9bc   : > { %v8270_v15 = vadd.f32 %v8269_v30, %v8268_v50 }
 0x9be   : > { %v8272_v55 = vadd.f32 %v8271_v3, %v8270_v15 }
 0x9c0   : > { %v8274_v4 = vadd.f32 %v8273_v7, %v8272_v55 }
 0x9c2   : > { %8275 = vadd.xlane.f32.xlu0 %v8274_v4 }
 0xa4b   : > { %v8276_v52 = vpop.xlane.xlu0 %8275 }
 0xa4c   : > { %v8287_v16 = vadd.f32 %v8286_v21, %v8276_v52 }
 0xa4e   : > { %v8294_v5 = vrot.slane %v8287_v16, %v8293_v60 }
 0xa50   : > { %8297 = vst.msk [vmem:[#allocation24] sm:$0x1] %vm8296_vm10, %v8294_v5 }
 0xa51 PF: > { %p9337_p3 = scmp.eq.s32.totalorder %s10605_s20, 3  ;;  %s10505_s14 = smov [#allocation24]  }
 0xa52   : > { %s8305_s29 = sshll.u32 %s10505_s14, 4  ;;  %s8306_s29 = int_to_ptr.vmem [resolvable:$true] %s8305_s29 }
 0xa53   : > { %s10397_s13 = scalar_lea.vmem %s8306_s29, 16  ;;  %s10403_s19 = scalar_lea.vmem %s8306_s29, 32 }
 0xa54   : > { %p10398_p11 = scmp.ne.s32.totalorder %s8306_s29, %s10397_s13  ;;  %p10404_p9 = scmp.lt.s32.totalorder %s8306_s29, %s8306_s29 }
 0xa55   : > { %p10405_p4 = scmp.lt.s32.totalorder %s10403_s19, %s10397_s13 }
 0xa56   : > { %p10399_p8 = pnand %p10398_p11, %p9337_p3 }
 0xa57   : > { %p10406_p7 = por %p10405_p4, %p10404_p9 }
 0xa58   : > { %p10400_p12 = pneg %p10399_p8 }
 0xa5a   : > { %p10407_p13 = pnand %p10406_p7, %p10400_p12 }
 0xa5c   : > { %10410 = shalt.err (!%p10407_p13)
}
 0xa5d   : > { %s12439_s17 = sld [smem:[#allocation47_spill]] }
 0xa63   : > { %9278 = dma.vmem_to_hbm [thread:$0]  (%p9337_p3), %s8306_s29, 16, %s12439_s17, [#allocation8]  }
 0xa64   : > { %10462 = dma.done.wait (%p9337_p3), [#allocation8], 16  }
 0xa65   : > { %10464 = vsyncadd (%p9337_p3), [#allocation8], 4294967280 }
 0xa66 PF: > { %s12440_s18 = sld [smem:[#allocation35_spill]] }
 0xa67   : > { %s12441_s15 = sld [smem:[#allocation32_spill]] }
 0xa68   : > { %s12442_s16 = sld [smem:[#allocation33_spill]] }
 0xa69   : > { %s12443_s17 = sld [smem:[#allocation36_spill]] }
 0xa6c   : > { %p28_p0 = scmp.ge.s32.totalorder %s12440_s18, 6  }
 0xa6e   :  { %30 = sbr.rel (!%p28_p0) target bundleno = 13 (0xd), region = 203 }
 0xa73   :  { %8318 = vsyncpa [#allocation7], 1 }
 0xa74   :  { %8320 = vsyncpa [#allocation7 + $0x1], 1 }
 0xa75   :  { %8321 = vsyncpa [#allocation10], 1 }
 0xa76   :  { %8322 = vsyncpa [#allocation19], 1 }
 0xa77   :  { %8323 = vsyncpa [#allocation22], 1 }
 0xa78   :  { %8324 = vsyncpa [#allocation8], 1 }
 0xa79   :  { %8326 = vsyncpa [#allocation8 + $0x1], 1 }

</bundles_post_ra>
